<compile_context>
chip_gen: v7x
topology: tpu7x:2x2x1
jax: 0.10.0
libtpu: 0.0.40
codegen_flags: <defaults>
</compile_context>

<pallas_src>
import functools

import jax
import jax.numpy as jnp
from jax.experimental import pallas as pl
from jax.experimental.pallas import tpu as pltpu

# ----------------------------- model config (small, synthetic) ------------------
B = 2              # batch
C_IN = 3           # image channels
IMG = 16           # spatial size
PATCH = 4          # patch size -> 4x4 = 16 patches
D = 32             # embed_dim
HEADS = 4
HEAD_DIM = D // HEADS
DEPTH = 2
MLP_HIDDEN = 4 * D
PROJ_DIM = 32      # CFG.projection_dim
NUM_PATCHES = (IMG // PATCH) ** 2
NUM_TOKENS = NUM_PATCHES + 1       # + cls token
PATCH_VEC = C_IN * PATCH * PATCH   # flattened (C, p, p) patch
VIT_LN_EPS = 1e-6                  # timm ViT LayerNorm eps
HEAD_LN_EPS = 1e-5                 # nn.LayerNorm default eps in ProjectionHead


# ----------------------------- in-kernel math helpers ---------------------------
def _gelu(x):
    # tanh-approximate GELU (== nn.GELU(approximate='tanh')); ~1e-3 max deviation from
    # the exact erf GELU used by nn.GELU() default.  5 VPU ops + 1 EUP tanh.
    c = 0.7978845608028654  # sqrt(2/pi)
    return 0.5 * x * (1.0 + jnp.tanh(c * (x + 0.044715 * x * x * x)))


def _center_norm(x, eps):
    # LayerNorm with gamma/beta folded into the consuming matmul: center + rsqrt only.
    mean = jnp.mean(x, axis=-1, keepdims=True)
    xc = x - mean
    var = jnp.mean(xc * xc, axis=-1, keepdims=True)
    return xc * jax.lax.rsqrt(var + eps)


def _ln(x, g, b, eps):
    mean = jnp.mean(x, axis=-1, keepdims=True)
    xc = x - mean
    var = jnp.mean(xc * xc, axis=-1, keepdims=True)
    return xc * jax.lax.rsqrt(var + eps) * g + b


# ----------------------------- fused encoder kernel -----------------------------
def _encoder_kernel(
    imgs,                    # python int: images in this block (1 in grid mode, B folded)
    patches_ref,             # (imgs*N, PATCH_VEC)   row 0 of each image is zeros (cls slot)
    patch_w_ref,             # (PATCH_VEC, D)
    tok_bias_ref,            # (imgs*N, D)  = [cls ; patch_b] + pos_embed (per image)
    w_qkv_ref,               # (DEPTH, D, 3D)        LN1-gamma + q-scale folded
    w_proj_ref,              # (DEPTH, D, D)
    w_mlp_ref,               # (DEPTH, 2D, MLP_HIDDEN)  rows 0:D fc1 (LN2 folded), D:2D fc2^T
    b_wide_ref,              # (DEPTH, 2, MLP_HIDDEN)   row 0 qkv_b (padded), row 1 fc1_b
    b_narrow_ref,            # (DEPTH, 2, D)            row 0 proj_b, row 1 fc2_b
    head_ref,                # (2D+4, PROJ_DIM)  p1_w | p2_w | p1_b | p2_b | ph_g | ph_b
    out_ref,                 # (imgs*N, PROJ_DIM)
):
    f32 = jnp.float32
    N = NUM_TOKENS
    T = imgs * N

    # --- patch embedding (stride-p Conv2d == patch matmul) + cls/pos via tok_bias ---
    x = jnp.dot(patches_ref[...], patch_w_ref[...], preferred_element_type=f32)
    x = x + tok_bias_ref[...]                                    # (T, D)

    # --- transformer blocks (pre-LN), statically unrolled over DEPTH ---
    for l in range(DEPTH):
        # ----- attention -----
        xn = _center_norm(x, VIT_LN_EPS)
        qkv = (jnp.dot(xn, w_qkv_ref[l], preferred_element_type=f32)
               + b_wide_ref[l, 0:1, 0:3 * D])                    # (T, 3D)

        # split (image, head) onto a leading batch axis with static slices,
        # then ONE batched score matmul, ONE softmax, ONE batched PV matmul.
        def gather(base, qkv=qkv):
            return jnp.stack(
                [qkv[b * N:(b + 1) * N,
                     base + h * HEAD_DIM: base + (h + 1) * HEAD_DIM]
                 for b in range(imgs) for h in range(HEADS)], axis=0)   # (G, N, dh)

        q3 = gather(0)           # scale already folded into weights/bias
        k3 = gather(D)
        v3 = gather(2 * D)
        s = jnp.einsum('gnd,gmd->gnm', q3, k3, preferred_element_type=f32)   # (G, N, N)
        s = s - jnp.max(s, axis=-1, keepdims=True)
        p = jnp.exp(s)
        o3 = jnp.einsum('gnm,gmd->gnd', p, v3, preferred_element_type=f32)   # (G, N, dh)
        o3 = o3 * (1.0 / jnp.sum(p, axis=-1, keepdims=True))    # exact softmax divide

        # merge heads back to lanes (per image) and images back to rows, then one
        # K=32 output projection (head merge folded into this single matmul).
        o_merged = jnp.concatenate(
            [jnp.concatenate([o3[b * HEADS + h] for h in range(HEADS)], axis=1)
             for b in range(imgs)], axis=0)                       # (T, D)
        attn = jnp.dot(o_merged, w_proj_ref[l], preferred_element_type=f32)
        x = x + attn + b_narrow_ref[l, 0:1, :]                    # residual

        # ----- MLP -----
        xn = _center_norm(x, VIT_LN_EPS)
        h1 = jnp.dot(xn, w_mlp_ref[l, 0:D, :], preferred_element_type=f32) \
            + b_wide_ref[l, 1:2, :]
        h1 = _gelu(h1)                                            # (T, MLP_HIDDEN)
        h2 = jax.lax.dot_general(h1, w_mlp_ref[l, D:2 * D, :],    # fc2 stored transposed
                                 (((1,), (1,)), ((), ())),
                                 preferred_element_type=f32)      # (T, D)
        x = x + h2 + b_narrow_ref[l, 1:2, :]

    # --- final ViT LayerNorm folded into the first projection-head linear ---
    xn = _center_norm(x, VIT_LN_EPS)

    # --- ProjectionHead: Linear -> GELU -> Linear -> Dropout(eval) -> LayerNorm ---
    # TODO(synk): nn.Dropout is identity at inference (eval mode); no-op here.
    h = jnp.dot(xn, head_ref[0:D, :], preferred_element_type=f32) \
        + head_ref[2 * D:2 * D + 1, :]
    h = _gelu(h)
    h = jnp.dot(h, head_ref[D:2 * D, :], preferred_element_type=f32) \
        + head_ref[2 * D + 1:2 * D + 2, :]
    out_ref[...] = _ln(h, head_ref[2 * D + 2:2 * D + 3, :],
                       head_ref[2 * D + 3:2 * D + 4, :], HEAD_LN_EPS)


# ----------------------------- parameters ---------------------------------------
def init_params(key):
    def nrm(k, shape, scale=0.02):
        return scale * jax.random.normal(k, shape, dtype=jnp.float32)

    keys = iter(jax.random.split(key, 8 * DEPTH + 16))
    params = {
        "patch_w": nrm(next(keys), (PATCH_VEC, D)),
        "patch_b": jnp.zeros((D,), jnp.float32),
        "cls_token": nrm(next(keys), (1, 1, D)),
        "pos_embed": nrm(next(keys), (1, NUM_TOKENS, D)),
        "norm_g": jnp.ones((D,), jnp.float32),
        "norm_b": jnp.zeros((D,), jnp.float32),
        "proj1_w": nrm(next(keys), (D, PROJ_DIM)),
        "proj1_b": jnp.zeros((PROJ_DIM,), jnp.float32),
        "proj2_w": nrm(next(keys), (PROJ_DIM, PROJ_DIM)),
        "proj2_b": jnp.zeros((PROJ_DIM,), jnp.float32),
        "ph_ln_g": jnp.ones((PROJ_DIM,), jnp.float32),
        "ph_ln_b": jnp.zeros((PROJ_DIM,), jnp.float32),
        "blocks": [],
    }
    for _ in range(DEPTH):
        params["blocks"].append({
            "ln1_g": jnp.ones((D,), jnp.float32),
            "ln1_b": jnp.zeros((D,), jnp.float32),
            "qkv_w": nrm(next(keys), (D, 3 * D)),
            "qkv_b": jnp.zeros((3 * D,), jnp.float32),
            "proj_w": nrm(next(keys), (D, D)),
            "proj_b": jnp.zeros((D,), jnp.float32),
            "ln2_g": jnp.ones((D,), jnp.float32),
            "ln2_b": jnp.zeros((D,), jnp.float32),
            "fc1_w": nrm(next(keys), (D, MLP_HIDDEN)),
            "fc1_b": jnp.zeros((MLP_HIDDEN,), jnp.float32),
            "fc2_w": nrm(next(keys), (MLP_HIDDEN, D)),
            "fc2_b": jnp.zeros((D,), jnp.float32),
        })
    return params


def prepare_params(params, batch, fold_batch):
    """One-time host-side preparation: LN/scale folding + operand blobbing.

    Everything here runs ONCE (outside the per-call jitted path).
    """
    scale = HEAD_DIM ** -0.5
    reps = batch if fold_batch else 1

    # token-wise additive constant: row 0 -> cls + pos[0]; rows 1.. -> patch_b + pos[1:]
    tok = params["pos_embed"].reshape(NUM_TOKENS, D) + jnp.concatenate(
        [params["cls_token"].reshape(1, D),
         jnp.broadcast_to(params["patch_b"].reshape(1, D), (NUM_PATCHES, D))], axis=0)
    tok_bias = jnp.tile(tok, (reps, 1))                              # (reps*N, D)

    w_qkv, w_proj, w_mlp, b_wide, b_narrow = [], [], [], [], []
    for blk in params["blocks"]:
        g1, be1 = blk["ln1_g"], blk["ln1_b"]
        wq = (blk["qkv_w"] * g1[:, None]).at[:, :D].multiply(scale)      # LN1-g + q-scale
        bq = (be1 @ blk["qkv_w"] + blk["qkv_b"]).at[:D].multiply(scale)  # LN1-b + q-scale

        g2, be2 = blk["ln2_g"], blk["ln2_b"]
        wf1 = blk["fc1_w"] * g2[:, None]                                 # LN2-g folded
        bf1 = be2 @ blk["fc1_w"] + blk["fc1_b"]                          # LN2-b folded

        w_qkv.append(wq)                                                 # (D, 3D)
        w_proj.append(blk["proj_w"])                                     # (D, D)
        w_mlp.append(jnp.concatenate([wf1, blk["fc2_w"].T], axis=0))     # (2D, MLP_HIDDEN)
        b_wide.append(jnp.stack(
            [jnp.pad(bq, (0, MLP_HIDDEN - 3 * D)), bf1], axis=0))        # (2, MLP_HIDDEN)
        b_narrow.append(jnp.stack([blk["proj_b"], blk["fc2_b"]], axis=0))  # (2, D)

    # projection head blob: final ViT norm gamma/beta folded into linear1
    ng, nb = params["norm_g"], params["norm_b"]
    p1w = params["proj1_w"] * ng[:, None]
    p1b = nb @ params["proj1_w"] + params["proj1_b"]
    head = jnp.concatenate(
        [p1w, params["proj2_w"],
         p1b.reshape(1, PROJ_DIM), params["proj2_b"].reshape(1, PROJ_DIM),
         params["ph_ln_g"].reshape(1, PROJ_DIM),
         params["ph_ln_b"].reshape(1, PROJ_DIM)], axis=0)                # (2D+4, PROJ_DIM)

    return {
        "patch_w": params["patch_w"],
        "tok_bias": tok_bias,
        "w_qkv": jnp.stack(w_qkv),
        "w_proj": jnp.stack(w_proj),
        "w_mlp": jnp.stack(w_mlp),
        "b_wide": jnp.stack(b_wide),
        "b_narrow": jnp.stack(b_narrow),
        "head": head,
    }


def _should_fold_batch():
    """Fold the batch into one grid step on single-TensorCore chips (v2-v6); keep a
    parallel per-image grid on multi-TC chips (v7x)."""
    try:
        kind = jax.devices()[0].device_kind.lower()
    except Exception:
        return True
    return not any(tag in kind for tag in ("v7", "7x", "tpu7"))


# ----------------------------- forward pass --------------------------------------
def image_encoder_forward(images, prm, *, fold_batch):
    """ImageEncoder.forward: ViT forward_features -> ProjectionHead.

    images: (B, C, H, W) float32 (NCHW, like PyTorch).
    returns: (B, NUM_TOKENS, PROJ_DIM) float32.
    """
    b, c, h, w = images.shape
    hp, wp = h // PATCH, w // PATCH

    # inherent input glue: extract & flatten patches (matching Conv2d(D, C, p, p)
    # weight flattening order); prepend one zero row per image as the cls-token slot.
    patches = images.reshape(b, c, hp, PATCH, wp, PATCH)
    patches = patches.transpose(0, 2, 4, 1, 3, 5).reshape(b, hp * wp, PATCH_VEC)
    patches = jnp.pad(patches, ((0, 0), (1, 0), (0, 0)))          # (B, N_tok, PATCH_VEC)

    imgs = b if fold_batch else 1
    grid = (1,) if fold_batch else (b,)

    def cmap(shape):
        n = len(shape)
        return pl.BlockSpec(shape, lambda i, n=n: (0,) * n)

    if fold_batch:
        patches_arg = patches.reshape(b * NUM_TOKENS, PATCH_VEC)
        patches_spec = pl.BlockSpec((b * NUM_TOKENS, PATCH_VEC), lambda i: (0, 0))
        out_shape = jax.ShapeDtypeStruct((b * NUM_TOKENS, PROJ_DIM), jnp.float32)
        out_spec = pl.BlockSpec((b * NUM_TOKENS, PROJ_DIM), lambda i: (0, 0))
        dims = ("arbitrary",)
    else:
        patches_arg = patches
        patches_spec = pl.BlockSpec((None, NUM_TOKENS, PATCH_VEC), lambda i: (i, 0, 0))
        out_shape = jax.ShapeDtypeStruct((b, NUM_TOKENS, PROJ_DIM), jnp.float32)
        out_spec = pl.BlockSpec((None, NUM_TOKENS, PROJ_DIM), lambda i: (i, 0, 0))
        dims = ("parallel",)

    in_specs = [patches_spec,
                cmap(prm["patch_w"].shape), cmap(prm["tok_bias"].shape),
                cmap(prm["w_qkv"].shape), cmap(prm["w_proj"].shape),
                cmap(prm["w_mlp"].shape), cmap(prm["b_wide"].shape),
                cmap(prm["b_narrow"].shape), cmap(prm["head"].shape)]

    out = pl.pallas_call(
        functools.partial(_encoder_kernel, imgs),
        out_shape=out_shape,
        grid=grid,
        in_specs=in_specs,
        out_specs=out_spec,
        compiler_params=pltpu.CompilerParams(dimension_semantics=dims),
    )(patches_arg, prm["patch_w"], prm["tok_bias"], prm["w_qkv"], prm["w_proj"],
      prm["w_mlp"], prm["b_wide"], prm["b_narrow"], prm["head"])

    if fold_batch:
        out = out.reshape(b, NUM_TOKENS, PROJ_DIM)     # free split of leading dim
    return out


# ----------------------------- main -----------------------------------------------
if __name__ == "__main__":
    key = jax.random.PRNGKey(0)
    pkey, xkey = jax.random.split(key)
    params = init_params(pkey)
    images = jax.random.normal(xkey, (B, C_IN, IMG, IMG), dtype=jnp.float32)

    fold = _should_fold_batch()
    prepared = prepare_params(params, batch=B, fold_batch=fold)    # one-time host prep

    encode = jax.jit(functools.partial(image_encoder_forward, fold_batch=fold))
    out = jax.block_until_ready(encode(images, prepared))

    assert out.shape == (B, NUM_TOKENS, PROJ_DIM), out.shape
    assert bool(jnp.all(jnp.isfinite(out)))
    print("KERNEL_OK")
</pallas_src>

<mosaic_0001>
module attributes {stable_mosaic.version = 11 : i64} {
  func.func @_encoder_kernel(%arg0: i32, %arg1: memref<34x48xf32, #tpu.memory_space<vmem>>, %arg2: memref<48x32xf32, #tpu.memory_space<vmem>>, %arg3: memref<34x32xf32, #tpu.memory_space<vmem>>, %arg4: memref<2x32x96xf32, #tpu.memory_space<vmem>>, %arg5: memref<2x32x32xf32, #tpu.memory_space<vmem>>, %arg6: memref<2x64x128xf32, #tpu.memory_space<vmem>>, %arg7: memref<2x2x128xf32, #tpu.memory_space<vmem>>, %arg8: memref<2x2x32xf32, #tpu.memory_space<vmem>>, %arg9: memref<68x32xf32, #tpu.memory_space<vmem>>, %arg10: memref<34x32xf32, #tpu.memory_space<vmem>>) attributes {dimension_semantics = [#tpu.dimension_semantics<arbitrary>], iteration_bounds = array<i64: 1>, scalar_prefetch = 0 : i64, scratch_operands = 0 : i64, tpu.core_type = #tpu.core_type<tc>, window_params = [{pipeline_mode = #tpu.pipeline_mode<synchronous>, transform_indices = @transform_0, window_bounds = array<i64: 34, 48>}, {pipeline_mode = #tpu.pipeline_mode<synchronous>, transform_indices = @transform_1, window_bounds = array<i64: 48, 32>}, {pipeline_mode = #tpu.pipeline_mode<synchronous>, transform_indices = @transform_2, window_bounds = array<i64: 34, 32>}, {pipeline_mode = #tpu.pipeline_mode<synchronous>, transform_indices = @transform_3, window_bounds = array<i64: 2, 32, 96>}, {pipeline_mode = #tpu.pipeline_mode<synchronous>, transform_indices = @transform_4, window_bounds = array<i64: 2, 32, 32>}, {pipeline_mode = #tpu.pipeline_mode<synchronous>, transform_indices = @transform_5, window_bounds = array<i64: 2, 64, 128>}, {pipeline_mode = #tpu.pipeline_mode<synchronous>, transform_indices = @transform_6, window_bounds = array<i64: 2, 2, 128>}, {pipeline_mode = #tpu.pipeline_mode<synchronous>, transform_indices = @transform_7, window_bounds = array<i64: 2, 2, 32>}, {pipeline_mode = #tpu.pipeline_mode<synchronous>, transform_indices = @transform_8, window_bounds = array<i64: 68, 32>}, {pipeline_mode = #tpu.pipeline_mode<synchronous>, transform_indices = @transform_9, window_bounds = array<i64: 34, 32>}]} {
    %c0 = arith.constant 0 : index
    %c0_0 = arith.constant 0 : index
    %0 = vector.load %arg1[%c0, %c0_0] : memref<34x48xf32, #tpu.memory_space<vmem>>, vector<34x48xf32>
    %c0_1 = arith.constant 0 : index
    %c0_2 = arith.constant 0 : index
    %1 = vector.load %arg2[%c0_1, %c0_2] : memref<48x32xf32, #tpu.memory_space<vmem>>, vector<48x32xf32>
    %cst = arith.constant dense<0.000000e+00> : vector<34x32xf32>
    %2 = tpu.matmul %0, %1, %cst {dimension_numbers = #tpu.dot_dimension_numbers<[1], [0], [0], [1], [0, 0, 1, 1], [], []>} : vector<34x48xf32>, vector<48x32xf32>, vector<34x32xf32> -> vector<34x32xf32>
    %c0_3 = arith.constant 0 : index
    %c0_4 = arith.constant 0 : index
    %3 = vector.load %arg3[%c0_3, %c0_4] : memref<34x32xf32, #tpu.memory_space<vmem>>, vector<34x32xf32>
    %4 = arith.addf %2, %3 : vector<34x32xf32>
    %cst_5 = arith.constant dense<0.000000e+00> : vector<34xf32>
    %5 = vector.multi_reduction <add>, %4, %cst_5 [1] : vector<34x32xf32> to vector<34xf32>
    %6 = vector.shape_cast %5 : vector<34xf32> to vector<34x1xf32>
    %cst_6 = arith.constant 3.200000e+01 : f32
    %7 = vector.broadcast %cst_6 : f32 to vector<34x1xf32>
    %8 = arith.divf %6, %7 : vector<34x1xf32>
    %9 = vector.broadcast %8 : vector<34x1xf32> to vector<34x32xf32>
    %10 = arith.subf %4, %9 : vector<34x32xf32>
    %11 = arith.mulf %10, %10 : vector<34x32xf32>
    %cst_7 = arith.constant dense<0.000000e+00> : vector<34xf32>
    %12 = vector.multi_reduction <add>, %11, %cst_7 [1] : vector<34x32xf32> to vector<34xf32>
    %13 = vector.shape_cast %12 : vector<34xf32> to vector<34x1xf32>
    %cst_8 = arith.constant 3.200000e+01 : f32
    %14 = vector.broadcast %cst_8 : f32 to vector<34x1xf32>
    %15 = arith.divf %13, %14 : vector<34x1xf32>
    %cst_9 = arith.constant 9.99999997E-7 : f32
    %16 = vector.broadcast %cst_9 : f32 to vector<34x1xf32>
    %17 = arith.addf %15, %16 : vector<34x1xf32>
    %18 = math.rsqrt %17 : vector<34x1xf32>
    %19 = vector.broadcast %18 : vector<34x1xf32> to vector<34x32xf32>
    %20 = arith.mulf %10, %19 : vector<34x32xf32>
    %c0_10 = arith.constant 0 : index
    %c0_11 = arith.constant 0 : index
    %c0_12 = arith.constant 0 : index
    %21 = vector.load %arg4[%c0_10, %c0_11, %c0_12] : memref<2x32x96xf32, #tpu.memory_space<vmem>>, vector<1x32x96xf32>
    %22 = vector.shape_cast %21 : vector<1x32x96xf32> to vector<32x96xf32>
    %cst_13 = arith.constant dense<0.000000e+00> : vector<34x96xf32>
    %23 = tpu.matmul %20, %22, %cst_13 {dimension_numbers = #tpu.dot_dimension_numbers<[1], [0], [0], [1], [0, 0, 1, 1], [], []>} : vector<34x32xf32>, vector<32x96xf32>, vector<34x96xf32> -> vector<34x96xf32>
    %c0_14 = arith.constant 0 : index
    %c0_15 = arith.constant 0 : index
    %c0_16 = arith.constant 0 : index
    %24 = vector.load %arg7[%c0_14, %c0_15, %c0_16] : memref<2x2x128xf32, #tpu.memory_space<vmem>>, vector<1x1x96xf32>
    %25 = vector.shape_cast %24 : vector<1x1x96xf32> to vector<1x96xf32>
    %26 = vector.broadcast %25 : vector<1x96xf32> to vector<34x96xf32>
    %27 = arith.addf %23, %26 : vector<34x96xf32>
    %28 = vector.extract_strided_slice %27 {offsets = [0, 0], sizes = [17, 8], strides = [1, 1]} : vector<34x96xf32> to vector<17x8xf32>
    %29 = vector.extract_strided_slice %27 {offsets = [0, 8], sizes = [17, 8], strides = [1, 1]} : vector<34x96xf32> to vector<17x8xf32>
    %30 = vector.extract_strided_slice %27 {offsets = [0, 16], sizes = [17, 8], strides = [1, 1]} : vector<34x96xf32> to vector<17x8xf32>
    %31 = vector.extract_strided_slice %27 {offsets = [0, 24], sizes = [17, 8], strides = [1, 1]} : vector<34x96xf32> to vector<17x8xf32>
    %32 = vector.extract_strided_slice %27 {offsets = [17, 0], sizes = [17, 8], strides = [1, 1]} : vector<34x96xf32> to vector<17x8xf32>
    %33 = vector.extract_strided_slice %27 {offsets = [17, 8], sizes = [17, 8], strides = [1, 1]} : vector<34x96xf32> to vector<17x8xf32>
    %34 = vector.extract_strided_slice %27 {offsets = [17, 16], sizes = [17, 8], strides = [1, 1]} : vector<34x96xf32> to vector<17x8xf32>
    %35 = vector.extract_strided_slice %27 {offsets = [17, 24], sizes = [17, 8], strides = [1, 1]} : vector<34x96xf32> to vector<17x8xf32>
    %36 = vector.shape_cast %28 : vector<17x8xf32> to vector<1x17x8xf32>
    %37 = vector.shape_cast %29 : vector<17x8xf32> to vector<1x17x8xf32>
    %38 = vector.shape_cast %30 : vector<17x8xf32> to vector<1x17x8xf32>
    %39 = vector.shape_cast %31 : vector<17x8xf32> to vector<1x17x8xf32>
    %40 = vector.shape_cast %32 : vector<17x8xf32> to vector<1x17x8xf32>
    %41 = vector.shape_cast %33 : vector<17x8xf32> to vector<1x17x8xf32>
    %42 = vector.shape_cast %34 : vector<17x8xf32> to vector<1x17x8xf32>
    %43 = vector.shape_cast %35 : vector<17x8xf32> to vector<1x17x8xf32>
    %44 = tpu.concatenate %36, %37, %38, %39, %40, %41, %42, %43 in 0 : vector<1x17x8xf32>, vector<1x17x8xf32>, vector<1x17x8xf32>, vector<1x17x8xf32>, vector<1x17x8xf32>, vector<1x17x8xf32>, vector<1x17x8xf32>, vector<1x17x8xf32> -> vector<8x17x8xf32>
    %45 = vector.extract_strided_slice %27 {offsets = [0, 32], sizes = [17, 8], strides = [1, 1]} : vector<34x96xf32> to vector<17x8xf32>
    %46 = vector.extract_strided_slice %27 {offsets = [0, 40], sizes = [17, 8], strides = [1, 1]} : vector<34x96xf32> to vector<17x8xf32>
    %47 = vector.extract_strided_slice %27 {offsets = [0, 48], sizes = [17, 8], strides = [1, 1]} : vector<34x96xf32> to vector<17x8xf32>
    %48 = vector.extract_strided_slice %27 {offsets = [0, 56], sizes = [17, 8], strides = [1, 1]} : vector<34x96xf32> to vector<17x8xf32>
    %49 = vector.extract_strided_slice %27 {offsets = [17, 32], sizes = [17, 8], strides = [1, 1]} : vector<34x96xf32> to vector<17x8xf32>
    %50 = vector.extract_strided_slice %27 {offsets = [17, 40], sizes = [17, 8], strides = [1, 1]} : vector<34x96xf32> to vector<17x8xf32>
    %51 = vector.extract_strided_slice %27 {offsets = [17, 48], sizes = [17, 8], strides = [1, 1]} : vector<34x96xf32> to vector<17x8xf32>
    %52 = vector.extract_strided_slice %27 {offsets = [17, 56], sizes = [17, 8], strides = [1, 1]} : vector<34x96xf32> to vector<17x8xf32>
    %53 = vector.shape_cast %45 : vector<17x8xf32> to vector<1x17x8xf32>
    %54 = vector.shape_cast %46 : vector<17x8xf32> to vector<1x17x8xf32>
    %55 = vector.shape_cast %47 : vector<17x8xf32> to vector<1x17x8xf32>
    %56 = vector.shape_cast %48 : vector<17x8xf32> to vector<1x17x8xf32>
    %57 = vector.shape_cast %49 : vector<17x8xf32> to vector<1x17x8xf32>
    %58 = vector.shape_cast %50 : vector<17x8xf32> to vector<1x17x8xf32>
    %59 = vector.shape_cast %51 : vector<17x8xf32> to vector<1x17x8xf32>
    %60 = vector.shape_cast %52 : vector<17x8xf32> to vector<1x17x8xf32>
    %61 = tpu.concatenate %53, %54, %55, %56, %57, %58, %59, %60 in 0 : vector<1x17x8xf32>, vector<1x17x8xf32>, vector<1x17x8xf32>, vector<1x17x8xf32>, vector<1x17x8xf32>, vector<1x17x8xf32>, vector<1x17x8xf32>, vector<1x17x8xf32> -> vector<8x17x8xf32>
    %62 = vector.extract_strided_slice %27 {offsets = [0, 64], sizes = [17, 8], strides = [1, 1]} : vector<34x96xf32> to vector<17x8xf32>
    %63 = vector.extract_strided_slice %27 {offsets = [0, 72], sizes = [17, 8], strides = [1, 1]} : vector<34x96xf32> to vector<17x8xf32>
    %64 = vector.extract_strided_slice %27 {offsets = [0, 80], sizes = [17, 8], strides = [1, 1]} : vector<34x96xf32> to vector<17x8xf32>
    %65 = vector.extract_strided_slice %27 {offsets = [0, 88], sizes = [17, 8], strides = [1, 1]} : vector<34x96xf32> to vector<17x8xf32>
    %66 = vector.extract_strided_slice %27 {offsets = [17, 64], sizes = [17, 8], strides = [1, 1]} : vector<34x96xf32> to vector<17x8xf32>
    %67 = vector.extract_strided_slice %27 {offsets = [17, 72], sizes = [17, 8], strides = [1, 1]} : vector<34x96xf32> to vector<17x8xf32>
    %68 = vector.extract_strided_slice %27 {offsets = [17, 80], sizes = [17, 8], strides = [1, 1]} : vector<34x96xf32> to vector<17x8xf32>
    %69 = vector.extract_strided_slice %27 {offsets = [17, 88], sizes = [17, 8], strides = [1, 1]} : vector<34x96xf32> to vector<17x8xf32>
    %70 = vector.shape_cast %62 : vector<17x8xf32> to vector<1x17x8xf32>
    %71 = vector.shape_cast %63 : vector<17x8xf32> to vector<1x17x8xf32>
    %72 = vector.shape_cast %64 : vector<17x8xf32> to vector<1x17x8xf32>
    %73 = vector.shape_cast %65 : vector<17x8xf32> to vector<1x17x8xf32>
    %74 = vector.shape_cast %66 : vector<17x8xf32> to vector<1x17x8xf32>
    %75 = vector.shape_cast %67 : vector<17x8xf32> to vector<1x17x8xf32>
    %76 = vector.shape_cast %68 : vector<17x8xf32> to vector<1x17x8xf32>
    %77 = vector.shape_cast %69 : vector<17x8xf32> to vector<1x17x8xf32>
    %78 = tpu.concatenate %70, %71, %72, %73, %74, %75, %76, %77 in 0 : vector<1x17x8xf32>, vector<1x17x8xf32>, vector<1x17x8xf32>, vector<1x17x8xf32>, vector<1x17x8xf32>, vector<1x17x8xf32>, vector<1x17x8xf32>, vector<1x17x8xf32> -> vector<8x17x8xf32>
    "tpu.trace_start"() <{level = 10 : i32, message = "gnd,gmd->gnm"}> : () -> ()
    %cst_17 = arith.constant dense<0.000000e+00> : vector<8x17x17xf32>
    %79 = tpu.matmul %44, %61, %cst_17 {dimension_numbers = #tpu.dot_dimension_numbers<[2], [2], [1], [1], [0, 0, 0, 1, 1, 1], [0], [0]>} : vector<8x17x8xf32>, vector<8x17x8xf32>, vector<8x17x17xf32> -> vector<8x17x17xf32>
    "tpu.trace_stop"() : () -> ()
    %cst_18 = arith.constant dense<0xFF800000> : vector<8x17xf32>
    %80 = vector.multi_reduction <maximumf>, %79, %cst_18 [2] : vector<8x17x17xf32> to vector<8x17xf32>
    %81 = vector.shape_cast %80 : vector<8x17xf32> to vector<8x17x1xf32>
    %82 = vector.broadcast %81 : vector<8x17x1xf32> to vector<8x17x17xf32>
    %83 = arith.subf %79, %82 : vector<8x17x17xf32>
    %84 = math.exp %83 : vector<8x17x17xf32>
    "tpu.trace_start"() <{level = 10 : i32, message = "gnm,gmd->gnd"}> : () -> ()
    %cst_19 = arith.constant dense<0.000000e+00> : vector<8x17x8xf32>
    %85 = tpu.matmul %84, %78, %cst_19 {dimension_numbers = #tpu.dot_dimension_numbers<[2], [1], [1], [2], [0, 0, 0, 1, 1, 2], [0], [0]>} : vector<8x17x17xf32>, vector<8x17x8xf32>, vector<8x17x8xf32> -> vector<8x17x8xf32>
    "tpu.trace_stop"() : () -> ()
    %cst_20 = arith.constant dense<0.000000e+00> : vector<8x17xf32>
    %86 = vector.multi_reduction <add>, %84, %cst_20 [2] : vector<8x17x17xf32> to vector<8x17xf32>
    %87 = vector.shape_cast %86 : vector<8x17xf32> to vector<8x17x1xf32>
    %cst_21 = arith.constant 1.000000e+00 : f32
    %88 = vector.broadcast %cst_21 : f32 to vector<8x17x1xf32>
    %89 = arith.divf %88, %87 : vector<8x17x1xf32>
    %90 = vector.broadcast %89 : vector<8x17x1xf32> to vector<8x17x8xf32>
    %91 = arith.mulf %85, %90 : vector<8x17x8xf32>
    %92 = vector.extract_strided_slice %91 {offsets = [0, 0, 0], sizes = [1, 17, 8], strides = [1, 1, 1]} : vector<8x17x8xf32> to vector<1x17x8xf32>
    %93 = vector.shape_cast %92 : vector<1x17x8xf32> to vector<17x8xf32>
    %94 = vector.extract_strided_slice %91 {offsets = [1, 0, 0], sizes = [1, 17, 8], strides = [1, 1, 1]} : vector<8x17x8xf32> to vector<1x17x8xf32>
    %95 = vector.shape_cast %94 : vector<1x17x8xf32> to vector<17x8xf32>
    %96 = vector.extract_strided_slice %91 {offsets = [2, 0, 0], sizes = [1, 17, 8], strides = [1, 1, 1]} : vector<8x17x8xf32> to vector<1x17x8xf32>
    %97 = vector.shape_cast %96 : vector<1x17x8xf32> to vector<17x8xf32>
    %98 = vector.extract_strided_slice %91 {offsets = [3, 0, 0], sizes = [1, 17, 8], strides = [1, 1, 1]} : vector<8x17x8xf32> to vector<1x17x8xf32>
    %99 = vector.shape_cast %98 : vector<1x17x8xf32> to vector<17x8xf32>
    %100 = tpu.concatenate %93, %95, %97, %99 in 1 : vector<17x8xf32>, vector<17x8xf32>, vector<17x8xf32>, vector<17x8xf32> -> vector<17x32xf32>
    %101 = vector.extract_strided_slice %91 {offsets = [4, 0, 0], sizes = [1, 17, 8], strides = [1, 1, 1]} : vector<8x17x8xf32> to vector<1x17x8xf32>
    %102 = vector.shape_cast %101 : vector<1x17x8xf32> to vector<17x8xf32>
    %103 = vector.extract_strided_slice %91 {offsets = [5, 0, 0], sizes = [1, 17, 8], strides = [1, 1, 1]} : vector<8x17x8xf32> to vector<1x17x8xf32>
    %104 = vector.shape_cast %103 : vector<1x17x8xf32> to vector<17x8xf32>
    %105 = vector.extract_strided_slice %91 {offsets = [6, 0, 0], sizes = [1, 17, 8], strides = [1, 1, 1]} : vector<8x17x8xf32> to vector<1x17x8xf32>
    %106 = vector.shape_cast %105 : vector<1x17x8xf32> to vector<17x8xf32>
    %107 = vector.extract_strided_slice %91 {offsets = [7, 0, 0], sizes = [1, 17, 8], strides = [1, 1, 1]} : vector<8x17x8xf32> to vector<1x17x8xf32>
    %108 = vector.shape_cast %107 : vector<1x17x8xf32> to vector<17x8xf32>
    %109 = tpu.concatenate %102, %104, %106, %108 in 1 : vector<17x8xf32>, vector<17x8xf32>, vector<17x8xf32>, vector<17x8xf32> -> vector<17x32xf32>
    %110 = tpu.concatenate %100, %109 in 0 : vector<17x32xf32>, vector<17x32xf32> -> vector<34x32xf32>
    %c0_22 = arith.constant 0 : index
    %c0_23 = arith.constant 0 : index
    %c0_24 = arith.constant 0 : index
    %111 = vector.load %arg5[%c0_22, %c0_23, %c0_24] : memref<2x32x32xf32, #tpu.memory_space<vmem>>, vector<1x32x32xf32>
    %112 = vector.shape_cast %111 : vector<1x32x32xf32> to vector<32x32xf32>
    %cst_25 = arith.constant dense<0.000000e+00> : vector<34x32xf32>
    %113 = tpu.matmul %110, %112, %cst_25 {dimension_numbers = #tpu.dot_dimension_numbers<[1], [0], [0], [1], [0, 0, 1, 1], [], []>} : vector<34x32xf32>, vector<32x32xf32>, vector<34x32xf32> -> vector<34x32xf32>
    %114 = arith.addf %4, %113 : vector<34x32xf32>
    %c0_26 = arith.constant 0 : index
    %c0_27 = arith.constant 0 : index
    %c0_28 = arith.constant 0 : index
    %115 = vector.load %arg8[%c0_26, %c0_27, %c0_28] : memref<2x2x32xf32, #tpu.memory_space<vmem>>, vector<1x1x32xf32>
    %116 = vector.shape_cast %115 : vector<1x1x32xf32> to vector<1x32xf32>
    %117 = vector.broadcast %116 : vector<1x32xf32> to vector<34x32xf32>
    %118 = arith.addf %114, %117 : vector<34x32xf32>
    %cst_29 = arith.constant dense<0.000000e+00> : vector<34xf32>
    %119 = vector.multi_reduction <add>, %118, %cst_29 [1] : vector<34x32xf32> to vector<34xf32>
    %120 = vector.shape_cast %119 : vector<34xf32> to vector<34x1xf32>
    %cst_30 = arith.constant 3.200000e+01 : f32
    %121 = vector.broadcast %cst_30 : f32 to vector<34x1xf32>
    %122 = arith.divf %120, %121 : vector<34x1xf32>
    %123 = vector.broadcast %122 : vector<34x1xf32> to vector<34x32xf32>
    %124 = arith.subf %118, %123 : vector<34x32xf32>
    %125 = arith.mulf %124, %124 : vector<34x32xf32>
    %cst_31 = arith.constant dense<0.000000e+00> : vector<34xf32>
    %126 = vector.multi_reduction <add>, %125, %cst_31 [1] : vector<34x32xf32> to vector<34xf32>
    %127 = vector.shape_cast %126 : vector<34xf32> to vector<34x1xf32>
    %cst_32 = arith.constant 3.200000e+01 : f32
    %128 = vector.broadcast %cst_32 : f32 to vector<34x1xf32>
    %129 = arith.divf %127, %128 : vector<34x1xf32>
    %cst_33 = arith.constant 9.99999997E-7 : f32
    %130 = vector.broadcast %cst_33 : f32 to vector<34x1xf32>
    %131 = arith.addf %129, %130 : vector<34x1xf32>
    %132 = math.rsqrt %131 : vector<34x1xf32>
    %133 = vector.broadcast %132 : vector<34x1xf32> to vector<34x32xf32>
    %134 = arith.mulf %124, %133 : vector<34x32xf32>
    %c0_34 = arith.constant 0 : index
    %c0_35 = arith.constant 0 : index
    %c0_36 = arith.constant 0 : index
    %135 = vector.load %arg6[%c0_34, %c0_35, %c0_36] : memref<2x64x128xf32, #tpu.memory_space<vmem>>, vector<1x32x128xf32>
    %136 = vector.shape_cast %135 : vector<1x32x128xf32> to vector<32x128xf32>
    %cst_37 = arith.constant dense<0.000000e+00> : vector<34x128xf32>
    %137 = tpu.matmul %134, %136, %cst_37 {dimension_numbers = #tpu.dot_dimension_numbers<[1], [0], [0], [1], [0, 0, 1, 1], [], []>} : vector<34x32xf32>, vector<32x128xf32>, vector<34x128xf32> -> vector<34x128xf32>
    %c0_38 = arith.constant 0 : index
    %c1 = arith.constant 1 : index
    %c0_39 = arith.constant 0 : index
    %138 = vector.load %arg7[%c0_38, %c1, %c0_39] : memref<2x2x128xf32, #tpu.memory_space<vmem>>, vector<1x1x128xf32>
    %139 = vector.shape_cast %138 : vector<1x1x128xf32> to vector<1x128xf32>
    %140 = vector.broadcast %139 : vector<1x128xf32> to vector<34x128xf32>
    %141 = arith.addf %137, %140 : vector<34x128xf32>
    %cst_40 = arith.constant 5.000000e-01 : f32
    %142 = vector.broadcast %cst_40 : f32 to vector<34x128xf32>
    %143 = arith.mulf %142, %141 : vector<34x128xf32>
    %cst_41 = arith.constant 4.471500e-02 : f32
    %144 = vector.broadcast %cst_41 : f32 to vector<34x128xf32>
    %145 = arith.mulf %144, %141 : vector<34x128xf32>
    %146 = arith.mulf %145, %141 : vector<34x128xf32>
    %147 = arith.mulf %146, %141 : vector<34x128xf32>
    %148 = arith.addf %141, %147 : vector<34x128xf32>
    %cst_42 = arith.constant 0.797884583 : f32
    %149 = vector.broadcast %cst_42 : f32 to vector<34x128xf32>
    %150 = arith.mulf %149, %148 : vector<34x128xf32>
    %151 = math.tanh %150 : vector<34x128xf32>
    %cst_43 = arith.constant 1.000000e+00 : f32
    %152 = vector.broadcast %cst_43 : f32 to vector<34x128xf32>
    %153 = arith.addf %152, %151 : vector<34x128xf32>
    %154 = arith.mulf %143, %153 : vector<34x128xf32>
    %c0_44 = arith.constant 0 : index
    %c32 = arith.constant 32 : index
    %c0_45 = arith.constant 0 : index
    %155 = vector.load %arg6[%c0_44, %c32, %c0_45] : memref<2x64x128xf32, #tpu.memory_space<vmem>>, vector<1x32x128xf32>
    %156 = vector.shape_cast %155 : vector<1x32x128xf32> to vector<32x128xf32>
    %cst_46 = arith.constant dense<0.000000e+00> : vector<34x32xf32>
    %157 = tpu.matmul %154, %156, %cst_46 {dimension_numbers = #tpu.dot_dimension_numbers<[1], [1], [0], [0], [0, 0, 1, 0], [], []>} : vector<34x128xf32>, vector<32x128xf32>, vector<34x32xf32> -> vector<34x32xf32>
    %158 = arith.addf %118, %157 : vector<34x32xf32>
    %c0_47 = arith.constant 0 : index
    %c1_48 = arith.constant 1 : index
    %c0_49 = arith.constant 0 : index
    %159 = vector.load %arg8[%c0_47, %c1_48, %c0_49] : memref<2x2x32xf32, #tpu.memory_space<vmem>>, vector<1x1x32xf32>
    %160 = vector.shape_cast %159 : vector<1x1x32xf32> to vector<1x32xf32>
    %161 = vector.broadcast %160 : vector<1x32xf32> to vector<34x32xf32>
    %162 = arith.addf %158, %161 : vector<34x32xf32>
    %cst_50 = arith.constant dense<0.000000e+00> : vector<34xf32>
    %163 = vector.multi_reduction <add>, %162, %cst_50 [1] : vector<34x32xf32> to vector<34xf32>
    %164 = vector.shape_cast %163 : vector<34xf32> to vector<34x1xf32>
    %cst_51 = arith.constant 3.200000e+01 : f32
    %165 = vector.broadcast %cst_51 : f32 to vector<34x1xf32>
    %166 = arith.divf %164, %165 : vector<34x1xf32>
    %167 = vector.broadcast %166 : vector<34x1xf32> to vector<34x32xf32>
    %168 = arith.subf %162, %167 : vector<34x32xf32>
    %169 = arith.mulf %168, %168 : vector<34x32xf32>
    %cst_52 = arith.constant dense<0.000000e+00> : vector<34xf32>
    %170 = vector.multi_reduction <add>, %169, %cst_52 [1] : vector<34x32xf32> to vector<34xf32>
    %171 = vector.shape_cast %170 : vector<34xf32> to vector<34x1xf32>
    %cst_53 = arith.constant 3.200000e+01 : f32
    %172 = vector.broadcast %cst_53 : f32 to vector<34x1xf32>
    %173 = arith.divf %171, %172 : vector<34x1xf32>
    %cst_54 = arith.constant 9.99999997E-7 : f32
    %174 = vector.broadcast %cst_54 : f32 to vector<34x1xf32>
    %175 = arith.addf %173, %174 : vector<34x1xf32>
    %176 = math.rsqrt %175 : vector<34x1xf32>
    %177 = vector.broadcast %176 : vector<34x1xf32> to vector<34x32xf32>
    %178 = arith.mulf %168, %177 : vector<34x32xf32>
    %c1_55 = arith.constant 1 : index
    %c0_56 = arith.constant 0 : index
    %c0_57 = arith.constant 0 : index
    %179 = vector.load %arg4[%c1_55, %c0_56, %c0_57] : memref<2x32x96xf32, #tpu.memory_space<vmem>>, vector<1x32x96xf32>
    %180 = vector.shape_cast %179 : vector<1x32x96xf32> to vector<32x96xf32>
    %cst_58 = arith.constant dense<0.000000e+00> : vector<34x96xf32>
    %181 = tpu.matmul %178, %180, %cst_58 {dimension_numbers = #tpu.dot_dimension_numbers<[1], [0], [0], [1], [0, 0, 1, 1], [], []>} : vector<34x32xf32>, vector<32x96xf32>, vector<34x96xf32> -> vector<34x96xf32>
    %c1_59 = arith.constant 1 : index
    %c0_60 = arith.constant 0 : index
    %c0_61 = arith.constant 0 : index
    %182 = vector.load %arg7[%c1_59, %c0_60, %c0_61] : memref<2x2x128xf32, #tpu.memory_space<vmem>>, vector<1x1x96xf32>
    %183 = vector.shape_cast %182 : vector<1x1x96xf32> to vector<1x96xf32>
    %184 = vector.broadcast %183 : vector<1x96xf32> to vector<34x96xf32>
    %185 = arith.addf %181, %184 : vector<34x96xf32>
    %186 = vector.extract_strided_slice %185 {offsets = [0, 0], sizes = [17, 8], strides = [1, 1]} : vector<34x96xf32> to vector<17x8xf32>
    %187 = vector.extract_strided_slice %185 {offsets = [0, 8], sizes = [17, 8], strides = [1, 1]} : vector<34x96xf32> to vector<17x8xf32>
    %188 = vector.extract_strided_slice %185 {offsets = [0, 16], sizes = [17, 8], strides = [1, 1]} : vector<34x96xf32> to vector<17x8xf32>
    %189 = vector.extract_strided_slice %185 {offsets = [0, 24], sizes = [17, 8], strides = [1, 1]} : vector<34x96xf32> to vector<17x8xf32>
    %190 = vector.extract_strided_slice %185 {offsets = [17, 0], sizes = [17, 8], strides = [1, 1]} : vector<34x96xf32> to vector<17x8xf32>
    %191 = vector.extract_strided_slice %185 {offsets = [17, 8], sizes = [17, 8], strides = [1, 1]} : vector<34x96xf32> to vector<17x8xf32>
    %192 = vector.extract_strided_slice %185 {offsets = [17, 16], sizes = [17, 8], strides = [1, 1]} : vector<34x96xf32> to vector<17x8xf32>
    %193 = vector.extract_strided_slice %185 {offsets = [17, 24], sizes = [17, 8], strides = [1, 1]} : vector<34x96xf32> to vector<17x8xf32>
    %194 = vector.shape_cast %186 : vector<17x8xf32> to vector<1x17x8xf32>
    %195 = vector.shape_cast %187 : vector<17x8xf32> to vector<1x17x8xf32>
    %196 = vector.shape_cast %188 : vector<17x8xf32> to vector<1x17x8xf32>
    %197 = vector.shape_cast %189 : vector<17x8xf32> to vector<1x17x8xf32>
    %198 = vector.shape_cast %190 : vector<17x8xf32> to vector<1x17x8xf32>
    %199 = vector.shape_cast %191 : vector<17x8xf32> to vector<1x17x8xf32>
    %200 = vector.shape_cast %192 : vector<17x8xf32> to vector<1x17x8xf32>
    %201 = vector.shape_cast %193 : vector<17x8xf32> to vector<1x17x8xf32>
    %202 = tpu.concatenate %194, %195, %196, %197, %198, %199, %200, %201 in 0 : vector<1x17x8xf32>, vector<1x17x8xf32>, vector<1x17x8xf32>, vector<1x17x8xf32>, vector<1x17x8xf32>, vector<1x17x8xf32>, vector<1x17x8xf32>, vector<1x17x8xf32> -> vector<8x17x8xf32>
    %203 = vector.extract_strided_slice %185 {offsets = [0, 32], sizes = [17, 8], strides = [1, 1]} : vector<34x96xf32> to vector<17x8xf32>
    %204 = vector.extract_strided_slice %185 {offsets = [0, 40], sizes = [17, 8], strides = [1, 1]} : vector<34x96xf32> to vector<17x8xf32>
    %205 = vector.extract_strided_slice %185 {offsets = [0, 48], sizes = [17, 8], strides = [1, 1]} : vector<34x96xf32> to vector<17x8xf32>
    %206 = vector.extract_strided_slice %185 {offsets = [0, 56], sizes = [17, 8], strides = [1, 1]} : vector<34x96xf32> to vector<17x8xf32>
    %207 = vector.extract_strided_slice %185 {offsets = [17, 32], sizes = [17, 8], strides = [1, 1]} : vector<34x96xf32> to vector<17x8xf32>
    %208 = vector.extract_strided_slice %185 {offsets = [17, 40], sizes = [17, 8], strides = [1, 1]} : vector<34x96xf32> to vector<17x8xf32>
    %209 = vector.extract_strided_slice %185 {offsets = [17, 48], sizes = [17, 8], strides = [1, 1]} : vector<34x96xf32> to vector<17x8xf32>
    %210 = vector.extract_strided_slice %185 {offsets = [17, 56], sizes = [17, 8], strides = [1, 1]} : vector<34x96xf32> to vector<17x8xf32>
    %211 = vector.shape_cast %203 : vector<17x8xf32> to vector<1x17x8xf32>
    %212 = vector.shape_cast %204 : vector<17x8xf32> to vector<1x17x8xf32>
    %213 = vector.shape_cast %205 : vector<17x8xf32> to vector<1x17x8xf32>
    %214 = vector.shape_cast %206 : vector<17x8xf32> to vector<1x17x8xf32>
    %215 = vector.shape_cast %207 : vector<17x8xf32> to vector<1x17x8xf32>
    %216 = vector.shape_cast %208 : vector<17x8xf32> to vector<1x17x8xf32>
    %217 = vector.shape_cast %209 : vector<17x8xf32> to vector<1x17x8xf32>
    %218 = vector.shape_cast %210 : vector<17x8xf32> to vector<1x17x8xf32>
    %219 = tpu.concatenate %211, %212, %213, %214, %215, %216, %217, %218 in 0 : vector<1x17x8xf32>, vector<1x17x8xf32>, vector<1x17x8xf32>, vector<1x17x8xf32>, vector<1x17x8xf32>, vector<1x17x8xf32>, vector<1x17x8xf32>, vector<1x17x8xf32> -> vector<8x17x8xf32>
    %220 = vector.extract_strided_slice %185 {offsets = [0, 64], sizes = [17, 8], strides = [1, 1]} : vector<34x96xf32> to vector<17x8xf32>
    %221 = vector.extract_strided_slice %185 {offsets = [0, 72], sizes = [17, 8], strides = [1, 1]} : vector<34x96xf32> to vector<17x8xf32>
    %222 = vector.extract_strided_slice %185 {offsets = [0, 80], sizes = [17, 8], strides = [1, 1]} : vector<34x96xf32> to vector<17x8xf32>
    %223 = vector.extract_strided_slice %185 {offsets = [0, 88], sizes = [17, 8], strides = [1, 1]} : vector<34x96xf32> to vector<17x8xf32>
    %224 = vector.extract_strided_slice %185 {offsets = [17, 64], sizes = [17, 8], strides = [1, 1]} : vector<34x96xf32> to vector<17x8xf32>
    %225 = vector.extract_strided_slice %185 {offsets = [17, 72], sizes = [17, 8], strides = [1, 1]} : vector<34x96xf32> to vector<17x8xf32>
    %226 = vector.extract_strided_slice %185 {offsets = [17, 80], sizes = [17, 8], strides = [1, 1]} : vector<34x96xf32> to vector<17x8xf32>
    %227 = vector.extract_strided_slice %185 {offsets = [17, 88], sizes = [17, 8], strides = [1, 1]} : vector<34x96xf32> to vector<17x8xf32>
    %228 = vector.shape_cast %220 : vector<17x8xf32> to vector<1x17x8xf32>
    %229 = vector.shape_cast %221 : vector<17x8xf32> to vector<1x17x8xf32>
    %230 = vector.shape_cast %222 : vector<17x8xf32> to vector<1x17x8xf32>
    %231 = vector.shape_cast %223 : vector<17x8xf32> to vector<1x17x8xf32>
    %232 = vector.shape_cast %224 : vector<17x8xf32> to vector<1x17x8xf32>
    %233 = vector.shape_cast %225 : vector<17x8xf32> to vector<1x17x8xf32>
    %234 = vector.shape_cast %226 : vector<17x8xf32> to vector<1x17x8xf32>
    %235 = vector.shape_cast %227 : vector<17x8xf32> to vector<1x17x8xf32>
    %236 = tpu.concatenate %228, %229, %230, %231, %232, %233, %234, %235 in 0 : vector<1x17x8xf32>, vector<1x17x8xf32>, vector<1x17x8xf32>, vector<1x17x8xf32>, vector<1x17x8xf32>, vector<1x17x8xf32>, vector<1x17x8xf32>, vector<1x17x8xf32> -> vector<8x17x8xf32>
    "tpu.trace_start"() <{level = 10 : i32, message = "gnd,gmd->gnm"}> : () -> ()
    %cst_62 = arith.constant dense<0.000000e+00> : vector<8x17x17xf32>
    %237 = tpu.matmul %202, %219, %cst_62 {dimension_numbers = #tpu.dot_dimension_numbers<[2], [2], [1], [1], [0, 0, 0, 1, 1, 1], [0], [0]>} : vector<8x17x8xf32>, vector<8x17x8xf32>, vector<8x17x17xf32> -> vector<8x17x17xf32>
    "tpu.trace_stop"() : () -> ()
    %cst_63 = arith.constant dense<0xFF800000> : vector<8x17xf32>
    %238 = vector.multi_reduction <maximumf>, %237, %cst_63 [2] : vector<8x17x17xf32> to vector<8x17xf32>
    %239 = vector.shape_cast %238 : vector<8x17xf32> to vector<8x17x1xf32>
    %240 = vector.broadcast %239 : vector<8x17x1xf32> to vector<8x17x17xf32>
    %241 = arith.subf %237, %240 : vector<8x17x17xf32>
    %242 = math.exp %241 : vector<8x17x17xf32>
    "tpu.trace_start"() <{level = 10 : i32, message = "gnm,gmd->gnd"}> : () -> ()
    %cst_64 = arith.constant dense<0.000000e+00> : vector<8x17x8xf32>
    %243 = tpu.matmul %242, %236, %cst_64 {dimension_numbers = #tpu.dot_dimension_numbers<[2], [1], [1], [2], [0, 0, 0, 1, 1, 2], [0], [0]>} : vector<8x17x17xf32>, vector<8x17x8xf32>, vector<8x17x8xf32> -> vector<8x17x8xf32>
    "tpu.trace_stop"() : () -> ()
    %cst_65 = arith.constant dense<0.000000e+00> : vector<8x17xf32>
    %244 = vector.multi_reduction <add>, %242, %cst_65 [2] : vector<8x17x17xf32> to vector<8x17xf32>
    %245 = vector.shape_cast %244 : vector<8x17xf32> to vector<8x17x1xf32>
    %cst_66 = arith.constant 1.000000e+00 : f32
    %246 = vector.broadcast %cst_66 : f32 to vector<8x17x1xf32>
    %247 = arith.divf %246, %245 : vector<8x17x1xf32>
    %248 = vector.broadcast %247 : vector<8x17x1xf32> to vector<8x17x8xf32>
    %249 = arith.mulf %243, %248 : vector<8x17x8xf32>
    %250 = vector.extract_strided_slice %249 {offsets = [0, 0, 0], sizes = [1, 17, 8], strides = [1, 1, 1]} : vector<8x17x8xf32> to vector<1x17x8xf32>
    %251 = vector.shape_cast %250 : vector<1x17x8xf32> to vector<17x8xf32>
    %252 = vector.extract_strided_slice %249 {offsets = [1, 0, 0], sizes = [1, 17, 8], strides = [1, 1, 1]} : vector<8x17x8xf32> to vector<1x17x8xf32>
    %253 = vector.shape_cast %252 : vector<1x17x8xf32> to vector<17x8xf32>
    %254 = vector.extract_strided_slice %249 {offsets = [2, 0, 0], sizes = [1, 17, 8], strides = [1, 1, 1]} : vector<8x17x8xf32> to vector<1x17x8xf32>
    %255 = vector.shape_cast %254 : vector<1x17x8xf32> to vector<17x8xf32>
    %256 = vector.extract_strided_slice %249 {offsets = [3, 0, 0], sizes = [1, 17, 8], strides = [1, 1, 1]} : vector<8x17x8xf32> to vector<1x17x8xf32>
    %257 = vector.shape_cast %256 : vector<1x17x8xf32> to vector<17x8xf32>
    %258 = tpu.concatenate %251, %253, %255, %257 in 1 : vector<17x8xf32>, vector<17x8xf32>, vector<17x8xf32>, vector<17x8xf32> -> vector<17x32xf32>
    %259 = vector.extract_strided_slice %249 {offsets = [4, 0, 0], sizes = [1, 17, 8], strides = [1, 1, 1]} : vector<8x17x8xf32> to vector<1x17x8xf32>
    %260 = vector.shape_cast %259 : vector<1x17x8xf32> to vector<17x8xf32>
    %261 = vector.extract_strided_slice %249 {offsets = [5, 0, 0], sizes = [1, 17, 8], strides = [1, 1, 1]} : vector<8x17x8xf32> to vector<1x17x8xf32>
    %262 = vector.shape_cast %261 : vector<1x17x8xf32> to vector<17x8xf32>
    %263 = vector.extract_strided_slice %249 {offsets = [6, 0, 0], sizes = [1, 17, 8], strides = [1, 1, 1]} : vector<8x17x8xf32> to vector<1x17x8xf32>
    %264 = vector.shape_cast %263 : vector<1x17x8xf32> to vector<17x8xf32>
    %265 = vector.extract_strided_slice %249 {offsets = [7, 0, 0], sizes = [1, 17, 8], strides = [1, 1, 1]} : vector<8x17x8xf32> to vector<1x17x8xf32>
    %266 = vector.shape_cast %265 : vector<1x17x8xf32> to vector<17x8xf32>
    %267 = tpu.concatenate %260, %262, %264, %266 in 1 : vector<17x8xf32>, vector<17x8xf32>, vector<17x8xf32>, vector<17x8xf32> -> vector<17x32xf32>
    %268 = tpu.concatenate %258, %267 in 0 : vector<17x32xf32>, vector<17x32xf32> -> vector<34x32xf32>
    %c1_67 = arith.constant 1 : index
    %c0_68 = arith.constant 0 : index
    %c0_69 = arith.constant 0 : index
    %269 = vector.load %arg5[%c1_67, %c0_68, %c0_69] : memref<2x32x32xf32, #tpu.memory_space<vmem>>, vector<1x32x32xf32>
    %270 = vector.shape_cast %269 : vector<1x32x32xf32> to vector<32x32xf32>
    %cst_70 = arith.constant dense<0.000000e+00> : vector<34x32xf32>
    %271 = tpu.matmul %268, %270, %cst_70 {dimension_numbers = #tpu.dot_dimension_numbers<[1], [0], [0], [1], [0, 0, 1, 1], [], []>} : vector<34x32xf32>, vector<32x32xf32>, vector<34x32xf32> -> vector<34x32xf32>
    %272 = arith.addf %162, %271 : vector<34x32xf32>
    %c1_71 = arith.constant 1 : index
    %c0_72 = arith.constant 0 : index
    %c0_73 = arith.constant 0 : index
    %273 = vector.load %arg8[%c1_71, %c0_72, %c0_73] : memref<2x2x32xf32, #tpu.memory_space<vmem>>, vector<1x1x32xf32>
    %274 = vector.shape_cast %273 : vector<1x1x32xf32> to vector<1x32xf32>
    %275 = vector.broadcast %274 : vector<1x32xf32> to vector<34x32xf32>
    %276 = arith.addf %272, %275 : vector<34x32xf32>
    %cst_74 = arith.constant dense<0.000000e+00> : vector<34xf32>
    %277 = vector.multi_reduction <add>, %276, %cst_74 [1] : vector<34x32xf32> to vector<34xf32>
    %278 = vector.shape_cast %277 : vector<34xf32> to vector<34x1xf32>
    %cst_75 = arith.constant 3.200000e+01 : f32
    %279 = vector.broadcast %cst_75 : f32 to vector<34x1xf32>
    %280 = arith.divf %278, %279 : vector<34x1xf32>
    %281 = vector.broadcast %280 : vector<34x1xf32> to vector<34x32xf32>
    %282 = arith.subf %276, %281 : vector<34x32xf32>
    %283 = arith.mulf %282, %282 : vector<34x32xf32>
    %cst_76 = arith.constant dense<0.000000e+00> : vector<34xf32>
    %284 = vector.multi_reduction <add>, %283, %cst_76 [1] : vector<34x32xf32> to vector<34xf32>
    %285 = vector.shape_cast %284 : vector<34xf32> to vector<34x1xf32>
    %cst_77 = arith.constant 3.200000e+01 : f32
    %286 = vector.broadcast %cst_77 : f32 to vector<34x1xf32>
    %287 = arith.divf %285, %286 : vector<34x1xf32>
    %cst_78 = arith.constant 9.99999997E-7 : f32
    %288 = vector.broadcast %cst_78 : f32 to vector<34x1xf32>
    %289 = arith.addf %287, %288 : vector<34x1xf32>
    %290 = math.rsqrt %289 : vector<34x1xf32>
    %291 = vector.broadcast %290 : vector<34x1xf32> to vector<34x32xf32>
    %292 = arith.mulf %282, %291 : vector<34x32xf32>
    %c1_79 = arith.constant 1 : index
    %c0_80 = arith.constant 0 : index
    %c0_81 = arith.constant 0 : index
    %293 = vector.load %arg6[%c1_79, %c0_80, %c0_81] : memref<2x64x128xf32, #tpu.memory_space<vmem>>, vector<1x32x128xf32>
    %294 = vector.shape_cast %293 : vector<1x32x128xf32> to vector<32x128xf32>
    %cst_82 = arith.constant dense<0.000000e+00> : vector<34x128xf32>
    %295 = tpu.matmul %292, %294, %cst_82 {dimension_numbers = #tpu.dot_dimension_numbers<[1], [0], [0], [1], [0, 0, 1, 1], [], []>} : vector<34x32xf32>, vector<32x128xf32>, vector<34x128xf32> -> vector<34x128xf32>
    %c1_83 = arith.constant 1 : index
    %c1_84 = arith.constant 1 : index
    %c0_85 = arith.constant 0 : index
    %296 = vector.load %arg7[%c1_83, %c1_84, %c0_85] : memref<2x2x128xf32, #tpu.memory_space<vmem>>, vector<1x1x128xf32>
    %297 = vector.shape_cast %296 : vector<1x1x128xf32> to vector<1x128xf32>
    %298 = vector.broadcast %297 : vector<1x128xf32> to vector<34x128xf32>
    %299 = arith.addf %295, %298 : vector<34x128xf32>
    %cst_86 = arith.constant 5.000000e-01 : f32
    %300 = vector.broadcast %cst_86 : f32 to vector<34x128xf32>
    %301 = arith.mulf %300, %299 : vector<34x128xf32>
    %cst_87 = arith.constant 4.471500e-02 : f32
    %302 = vector.broadcast %cst_87 : f32 to vector<34x128xf32>
    %303 = arith.mulf %302, %299 : vector<34x128xf32>
    %304 = arith.mulf %303, %299 : vector<34x128xf32>
    %305 = arith.mulf %304, %299 : vector<34x128xf32>
    %306 = arith.addf %299, %305 : vector<34x128xf32>
    %cst_88 = arith.constant 0.797884583 : f32
    %307 = vector.broadcast %cst_88 : f32 to vector<34x128xf32>
    %308 = arith.mulf %307, %306 : vector<34x128xf32>
    %309 = math.tanh %308 : vector<34x128xf32>
    %cst_89 = arith.constant 1.000000e+00 : f32
    %310 = vector.broadcast %cst_89 : f32 to vector<34x128xf32>
    %311 = arith.addf %310, %309 : vector<34x128xf32>
    %312 = arith.mulf %301, %311 : vector<34x128xf32>
    %c1_90 = arith.constant 1 : index
    %c32_91 = arith.constant 32 : index
    %c0_92 = arith.constant 0 : index
    %313 = vector.load %arg6[%c1_90, %c32_91, %c0_92] : memref<2x64x128xf32, #tpu.memory_space<vmem>>, vector<1x32x128xf32>
    %314 = vector.shape_cast %313 : vector<1x32x128xf32> to vector<32x128xf32>
    %cst_93 = arith.constant dense<0.000000e+00> : vector<34x32xf32>
    %315 = tpu.matmul %312, %314, %cst_93 {dimension_numbers = #tpu.dot_dimension_numbers<[1], [1], [0], [0], [0, 0, 1, 0], [], []>} : vector<34x128xf32>, vector<32x128xf32>, vector<34x32xf32> -> vector<34x32xf32>
    %316 = arith.addf %276, %315 : vector<34x32xf32>
    %c1_94 = arith.constant 1 : index
    %c1_95 = arith.constant 1 : index
    %c0_96 = arith.constant 0 : index
    %317 = vector.load %arg8[%c1_94, %c1_95, %c0_96] : memref<2x2x32xf32, #tpu.memory_space<vmem>>, vector<1x1x32xf32>
    %318 = vector.shape_cast %317 : vector<1x1x32xf32> to vector<1x32xf32>
    %319 = vector.broadcast %318 : vector<1x32xf32> to vector<34x32xf32>
    %320 = arith.addf %316, %319 : vector<34x32xf32>
    %cst_97 = arith.constant dense<0.000000e+00> : vector<34xf32>
    %321 = vector.multi_reduction <add>, %320, %cst_97 [1] : vector<34x32xf32> to vector<34xf32>
    %322 = vector.shape_cast %321 : vector<34xf32> to vector<34x1xf32>
    %cst_98 = arith.constant 3.200000e+01 : f32
    %323 = vector.broadcast %cst_98 : f32 to vector<34x1xf32>
    %324 = arith.divf %322, %323 : vector<34x1xf32>
    %325 = vector.broadcast %324 : vector<34x1xf32> to vector<34x32xf32>
    %326 = arith.subf %320, %325 : vector<34x32xf32>
    %327 = arith.mulf %326, %326 : vector<34x32xf32>
    %cst_99 = arith.constant dense<0.000000e+00> : vector<34xf32>
    %328 = vector.multi_reduction <add>, %327, %cst_99 [1] : vector<34x32xf32> to vector<34xf32>
    %329 = vector.shape_cast %328 : vector<34xf32> to vector<34x1xf32>
    %cst_100 = arith.constant 3.200000e+01 : f32
    %330 = vector.broadcast %cst_100 : f32 to vector<34x1xf32>
    %331 = arith.divf %329, %330 : vector<34x1xf32>
    %cst_101 = arith.constant 9.99999997E-7 : f32
    %332 = vector.broadcast %cst_101 : f32 to vector<34x1xf32>
    %333 = arith.addf %331, %332 : vector<34x1xf32>
    %334 = math.rsqrt %333 : vector<34x1xf32>
    %335 = vector.broadcast %334 : vector<34x1xf32> to vector<34x32xf32>
    %336 = arith.mulf %326, %335 : vector<34x32xf32>
    %c0_102 = arith.constant 0 : index
    %c0_103 = arith.constant 0 : index
    %337 = vector.load %arg9[%c0_102, %c0_103] : memref<68x32xf32, #tpu.memory_space<vmem>>, vector<32x32xf32>
    %cst_104 = arith.constant dense<0.000000e+00> : vector<34x32xf32>
    %338 = tpu.matmul %336, %337, %cst_104 {dimension_numbers = #tpu.dot_dimension_numbers<[1], [0], [0], [1], [0, 0, 1, 1], [], []>} : vector<34x32xf32>, vector<32x32xf32>, vector<34x32xf32> -> vector<34x32xf32>
    %c64 = arith.constant 64 : index
    %c0_105 = arith.constant 0 : index
    %339 = vector.load %arg9[%c64, %c0_105] : memref<68x32xf32, #tpu.memory_space<vmem>>, vector<1x32xf32>
    %340 = vector.broadcast %339 : vector<1x32xf32> to vector<34x32xf32>
    %341 = arith.addf %338, %340 : vector<34x32xf32>
    %cst_106 = arith.constant 5.000000e-01 : f32
    %342 = vector.broadcast %cst_106 : f32 to vector<34x32xf32>
    %343 = arith.mulf %342, %341 : vector<34x32xf32>
    %cst_107 = arith.constant 4.471500e-02 : f32
    %344 = vector.broadcast %cst_107 : f32 to vector<34x32xf32>
    %345 = arith.mulf %344, %341 : vector<34x32xf32>
    %346 = arith.mulf %345, %341 : vector<34x32xf32>
    %347 = arith.mulf %346, %341 : vector<34x32xf32>
    %348 = arith.addf %341, %347 : vector<34x32xf32>
    %cst_108 = arith.constant 0.797884583 : f32
    %349 = vector.broadcast %cst_108 : f32 to vector<34x32xf32>
    %350 = arith.mulf %349, %348 : vector<34x32xf32>
    %351 = math.tanh %350 : vector<34x32xf32>
    %cst_109 = arith.constant 1.000000e+00 : f32
    %352 = vector.broadcast %cst_109 : f32 to vector<34x32xf32>
    %353 = arith.addf %352, %351 : vector<34x32xf32>
    %354 = arith.mulf %343, %353 : vector<34x32xf32>
    %c32_110 = arith.constant 32 : index
    %c0_111 = arith.constant 0 : index
    %355 = vector.load %arg9[%c32_110, %c0_111] : memref<68x32xf32, #tpu.memory_space<vmem>>, vector<32x32xf32>
    %cst_112 = arith.constant dense<0.000000e+00> : vector<34x32xf32>
    %356 = tpu.matmul %354, %355, %cst_112 {dimension_numbers = #tpu.dot_dimension_numbers<[1], [0], [0], [1], [0, 0, 1, 1], [], []>} : vector<34x32xf32>, vector<32x32xf32>, vector<34x32xf32> -> vector<34x32xf32>
    %c65 = arith.constant 65 : index
    %c0_113 = arith.constant 0 : index
    %357 = vector.load %arg9[%c65, %c0_113] : memref<68x32xf32, #tpu.memory_space<vmem>>, vector<1x32xf32>
    %358 = vector.broadcast %357 : vector<1x32xf32> to vector<34x32xf32>
    %359 = arith.addf %356, %358 : vector<34x32xf32>
    %c66 = arith.constant 66 : index
    %c0_114 = arith.constant 0 : index
    %360 = vector.load %arg9[%c66, %c0_114] : memref<68x32xf32, #tpu.memory_space<vmem>>, vector<1x32xf32>
    %c67 = arith.constant 67 : index
    %c0_115 = arith.constant 0 : index
    %361 = vector.load %arg9[%c67, %c0_115] : memref<68x32xf32, #tpu.memory_space<vmem>>, vector<1x32xf32>
    %cst_116 = arith.constant dense<0.000000e+00> : vector<34xf32>
    %362 = vector.multi_reduction <add>, %359, %cst_116 [1] : vector<34x32xf32> to vector<34xf32>
    %363 = vector.shape_cast %362 : vector<34xf32> to vector<34x1xf32>
    %cst_117 = arith.constant 3.200000e+01 : f32
    %364 = vector.broadcast %cst_117 : f32 to vector<34x1xf32>
    %365 = arith.divf %363, %364 : vector<34x1xf32>
    %366 = vector.broadcast %365 : vector<34x1xf32> to vector<34x32xf32>
    %367 = arith.subf %359, %366 : vector<34x32xf32>
    %368 = arith.mulf %367, %367 : vector<34x32xf32>
    %cst_118 = arith.constant dense<0.000000e+00> : vector<34xf32>
    %369 = vector.multi_reduction <add>, %368, %cst_118 [1] : vector<34x32xf32> to vector<34xf32>
    %370 = vector.shape_cast %369 : vector<34xf32> to vector<34x1xf32>
    %cst_119 = arith.constant 3.200000e+01 : f32
    %371 = vector.broadcast %cst_119 : f32 to vector<34x1xf32>
    %372 = arith.divf %370, %371 : vector<34x1xf32>
    %cst_120 = arith.constant 9.99999974E-6 : f32
    %373 = vector.broadcast %cst_120 : f32 to vector<34x1xf32>
    %374 = arith.addf %372, %373 : vector<34x1xf32>
    %375 = math.rsqrt %374 : vector<34x1xf32>
    %376 = vector.broadcast %375 : vector<34x1xf32> to vector<34x32xf32>
    %377 = arith.mulf %367, %376 : vector<34x32xf32>
    %378 = vector.broadcast %360 : vector<1x32xf32> to vector<34x32xf32>
    %379 = arith.mulf %377, %378 : vector<34x32xf32>
    %380 = vector.broadcast %361 : vector<1x32xf32> to vector<34x32xf32>
    %381 = arith.addf %379, %380 : vector<34x32xf32>
    %c0_121 = arith.constant 0 : index
    %c0_122 = arith.constant 0 : index
    %382 = vector.load %arg10[%c0_121, %c0_122] : memref<34x32xf32, #tpu.memory_space<vmem>>, vector<34x32xf32>
    tpu.vector_store %arg10[%c0_121, %c0_122], %381 {strides = array<i32>} : memref<34x32xf32, #tpu.memory_space<vmem>>, vector<34x32xf32>,
    return
  }
  func.func @transform_0(%arg0: i32) -> (i32, i32) {
    %c0_i32 = arith.constant 0 : i32
    %c0_i32_0 = arith.constant 0 : i32
    %c0_i32_1 = arith.constant 0 : i32
    return %c0_i32, %c0_i32_0 : i32, i32
  }
  func.func @transform_1(%arg0: i32) -> (i32, i32) {
    %c0_i32 = arith.constant 0 : i32
    %c0_i32_0 = arith.constant 0 : i32
    %c0_i32_1 = arith.constant 0 : i32
    return %c0_i32, %c0_i32_0 : i32, i32
  }
  func.func @transform_2(%arg0: i32) -> (i32, i32) {
    %c0_i32 = arith.constant 0 : i32
    %c0_i32_0 = arith.constant 0 : i32
    %c0_i32_1 = arith.constant 0 : i32
    return %c0_i32, %c0_i32_0 : i32, i32
  }
  func.func @transform_3(%arg0: i32) -> (i32, i32, i32) {
    %c0_i32 = arith.constant 0 : i32
    %c0_i32_0 = arith.constant 0 : i32
    %c0_i32_1 = arith.constant 0 : i32
    %c0_i32_2 = arith.constant 0 : i32
    return %c0_i32, %c0_i32_0, %c0_i32_1 : i32, i32, i32
  }
  func.func @transform_4(%arg0: i32) -> (i32, i32, i32) {
    %c0_i32 = arith.constant 0 : i32
    %c0_i32_0 = arith.constant 0 : i32
    %c0_i32_1 = arith.constant 0 : i32
    %c0_i32_2 = arith.constant 0 : i32
    return %c0_i32, %c0_i32_0, %c0_i32_1 : i32, i32, i32
  }
  func.func @transform_5(%arg0: i32) -> (i32, i32, i32) {
    %c0_i32 = arith.constant 0 : i32
    %c0_i32_0 = arith.constant 0 : i32
    %c0_i32_1 = arith.constant 0 : i32
    %c0_i32_2 = arith.constant 0 : i32
    return %c0_i32, %c0_i32_0, %c0_i32_1 : i32, i32, i32
  }
  func.func @transform_6(%arg0: i32) -> (i32, i32, i32) {
    %c0_i32 = arith.constant 0 : i32
    %c0_i32_0 = arith.constant 0 : i32
    %c0_i32_1 = arith.constant 0 : i32
    %c0_i32_2 = arith.constant 0 : i32
    return %c0_i32, %c0_i32_0, %c0_i32_1 : i32, i32, i32
  }
  func.func @transform_7(%arg0: i32) -> (i32, i32, i32) {
    %c0_i32 = arith.constant 0 : i32
    %c0_i32_0 = arith.constant 0 : i32
    %c0_i32_1 = arith.constant 0 : i32
    %c0_i32_2 = arith.constant 0 : i32
    return %c0_i32, %c0_i32_0, %c0_i32_1 : i32, i32, i32
  }
  func.func @transform_8(%arg0: i32) -> (i32, i32) {
    %c0_i32 = arith.constant 0 : i32
    %c0_i32_0 = arith.constant 0 : i32
    %c0_i32_1 = arith.constant 0 : i32
    return %c0_i32, %c0_i32_0 : i32, i32
  }
  func.func @transform_9(%arg0: i32) -> (i32, i32) {
    %c0_i32 = arith.constant 0 : i32
    %c0_i32_0 = arith.constant 0 : i32
    %c0_i32_1 = arith.constant 0 : i32
    return %c0_i32, %c0_i32_0 : i32, i32
  }
}

</mosaic_0001>

<bundles_post_ra>
// kernel: image_encoder_forward.1
= control target key start
LH: loop header
LB: loop body
LE: loop exit
PB: predicated region body
PF: predicated region fallthrough
CT: control target
= control target key end

     0   :  { %v7794_v0 = vmov 0.0|0.0   ;;  %vm7795_vm0 = vmmov 0   ;;  %v7796_v4 = vmov 0.0   ;;  %vm48_vm1 = vcmask 392192   ;;  %s7797_s26 = smov 120   ;;  %s7798_s27 = smov 112   ;;  %s9692_s1 = inlined_call_operand.vmem [shape: f32[48,32], index: 1, kind: input, shape index: {}]   ;;  %s9693_s0 = inlined_call_operand.vmem [shape: f32[34,48], index: 0, kind: input, shape index: {}]   ;;  %s9694_s2 = inlined_call_operand.vmem [shape: f32[34,32], index: 2, kind: input, shape index: {}]   ;;  %s9695_s3 = inlined_call_operand.vmem [shape: f32[2,32,96], index: 3, kind: input, shape index: {}]   ;;  %s9696_s6 = inlined_call_operand.vmem [shape: f32[2,2,128], index: 6, kind: input, shape index: {}]   ;;  %s9697_s4 = inlined_call_operand.vmem [shape: f32[2,32,32], index: 4, kind: input, shape index: {}]   ;;  %s9698_s7 = inlined_call_operand.vmem [shape: f32[2,2,32], index: 7, kind: input, shape index: {}]   ;;  %s9699_s5 = inlined_call_operand.vmem [shape: f32[2,64,128], index: 5, kind: input, shape index: {}]   ;;  %s9700_s8 = inlined_call_operand.vmem [shape: f32[68,32], index: 8, kind: input, shape index: {}]   ;;  %s9701_s9 = inlined_call_operand.vmem [shape: f32[34,32], index: 9, kind: output, shape index: {}]  }
   0x1   :  { %7156 = vmatprep.subr.bf16.mxu0 %v7794_v0  ;;  %v37_v1 = vld [vmem:[%s9692_s1] sm:$0xff]  ;;  %v38_v2 = vld [vmem:[%s9692_s1 + $0x8] sm:$0xff]  ;;  %v39_v3 = vld [vmem:[%s9692_s1 + $0x10] sm:$0xff]  ;;  %6431 = vmatprep.mubr.msk.f32.mxu0 %vm7795_vm0, %v7796_v4  ;;  %vm154_vm2 = vcmask 261120   ;;  %vm167_vm3 = vcmask 254976   ;;  %s7799_s28 = smov 104  }
   0x2   :  { %v7157_v5 = vpack.c.bf16 %v38_v2, %v37_v1  ;;  %v40_v6 = vld [vmem:[%s9692_s1 + $0x18] sm:$0xff]  ;;  %7165 = vmatprep.subr.bf16.mxu1 %v7794_v0  ;;  %6454 = vmatprep.mubr.msk.f32.mxu1 %vm7795_vm0, %v7796_v4  ;;  %v41_v8 = vld [vmem:[%s9692_s1 + $0x20] sm:$0xff]  ;;  %v42_v9 = vld [vmem:[%s9692_s1 + $0x28] sm:$0xff]  ;;  %vm359_vm4 = vcmask 1046528   ;;  %s7800_s29 = smov 96   ;;  %vm389_vm5 = vcmask 64512  }
   0x3   :  { %v7160_v7 = vpack.c.bf16 %v40_v6, %v39_v3  ;;  %v7163_v10 = vpack.c.bf16 %v42_v9, %v41_v8  ;;  %v32_v11 = vld [vmem:[%s9693_s0] sm:$0xff]  ;;  %v33_v12 = vld [vmem:[%s9693_s0 + $0x8] sm:$0xff]  ;;  %v34_v13 = vld [vmem:[%s9693_s0 + $0x10] sm:$0xff]  ;;  %s7801_s30 = smov 64   ;;  %vm1331_vm7 = vcmask 1040384   ;;  %vm1168_vm8 = vcmask 138240  }
   0x4   :  { %7158 = vmatpush3.bf16.msra.mxu0 %v7157_v5  ;;  %v35_v14 = vld [vmem:[%s9693_s0 + $0x18] sm:$0xff]  ;;  %v36_v15 = vld [vmem:[%s9693_s0 + $0x20] sm:$0x3]  ;;  %v44_v20 = vld [vmem:[%s9694_s2 + $0x8] sm:$0xff]  ;;  %vm1175_vm9 = vcmask 131072   ;;  %s7802_s17 = smov 8  }
   0x5   :  { %7159 = vmatprep.subr.bf16.mxu0 %v7794_v0  ;;  %v43_v16 = vld [vmem:[%s9694_s2] sm:$0xff]  ;;  %v45_v25 = vld [vmem:[%s9694_s2 + $0x10] sm:$0xff]  ;;  %v46_v30 = vld [vmem:[%s9694_s2 + $0x18] sm:$0xff]  ;;  %s7804_s18 = smov 24   ;;  %vm2290_vm10 = vcmask 130048   ;;  %vm2294_vm11 = vcmask 195584  }
   0x6   :  { %v47_v35 = vld [vmem:[%s9694_s2 + $0x20] sm:$0x3]  ;;  %v223_v5 = vld [vmem:[%s9695_s3 + $0x8] sm:$0xff]  ;;  %v225_v8 = vld [vmem:[%s9695_s3 + $0x18] sm:$0xff]  ;;  %s7803_s2 = smov 16  }
   0x7   :  { %v222_v3 = vld [vmem:[%s9695_s3] sm:$0xff]  ;;  %vm8107_vm6 = vmpackc.low %vm389_vm5, %vm389_vm5 }
   0x8   :  { %7161 = vmatpush3.bf16.msra.mxu0 %v7160_v7  ;;  %v7166_v6 = vpack.c.bf16 %v223_v5, %v222_v3  ;;  %v224_v7 = vld [vmem:[%s9695_s3 + $0x10] sm:$0xff] }
   0x9   :  { %7162 = vmatprep.subr.bf16.mxu0 %v7794_v0  ;;  %v7169_v9 = vpack.c.bf16 %v225_v8, %v224_v7 }
   0xa   :  { %7167 = vmatpush3.bf16.msra.mxu1 %v7166_v6 }
   0xb   :  { %7168 = vmatprep.subr.bf16.mxu1 %v7794_v0 }
   0xc   :  { %7164 = vmatpush3.bf16.msra.mxu0 %v7163_v10 }
   0xd   :  { %7175 = vmatprep.subr.bf16.mxu0 %v7794_v0 }
   0xe   :  { %7170 = vmatpush3.bf16.msra.mxu1 %v7169_v9 }
   0xf   :  { %6432 = vmatmul.mubr.msk.f32.vlgmr.msra.gmra.mrb[0].mxu0 %vm48_vm1, %v32_v11  ;;  %7171 = vmatprep.subr.bf16.mxu1 %v7794_v0 }
  0x10   :  { %6434 = vmatprep.mubr.msk.f32.mxu0 %vm7795_vm0, %v7796_v4 }
  0x13   :  { %6435 = vmatmul.mubr.msk.f32.gmra.mrb[2].mxu0 %vm48_vm1, %v33_v12 }
  0x14   :  { %6437 = vmatprep.mubr.msk.f32.mxu0 %vm7795_vm0, %v7796_v4 }
  0x17   :  { %6438 = vmatmul.mubr.msk.f32.gmra.mrb[4].mxu0 %vm48_vm1, %v34_v13 }
  0x18   :  { %6440 = vmatprep.mubr.msk.f32.mxu0 %vm7795_vm0, %v7796_v4 }
  0x1b   :  { %6441 = vmatmul.mubr.msk.f32.gmra.mrb[6].mxu0 %vm48_vm1, %v35_v14 }
  0x1c   :  { %6443 = vmatprep.mubr.msk.f32.mxu0 %vm7795_vm0, %v7796_v4 }
  0x1f   :  { %6444 = vmatmul.mubr.msk.f32.gmra.mrb[8].mxu0 %vm48_vm1, %v36_v15 }
  0x20   :  { %6490 = vmatprep.mubr.msk.f32.mxu0 %vm7795_vm0, %v7796_v4 }
  0xe2   :  { %v130_v17 = vpop.f32.mrb[0].mxu0 }
  0xe3   :  { %v7910_v18 = vadd.f32 %v130_v17, %v43_v16  ;;  %v6433_v19 = vpop.f32.mrb[1].mxu0 }
  0xe5   :  { %v155_v21 = vsel %vm154_vm2, %v7910_v18, 0.0 }
  0xe6   :  { %156 = vadd.xlane.f32.xlu0 %v155_v21  ;;  %v135_v22 = vpop.f32.mrb[2].mxu0 }
  0xe7   :  { %v7917_v23 = vadd.f32 %v135_v22, %v44_v20  ;;  %v6436_v24 = vpop.f32.mrb[3].mxu0 }
  0xe9   :  { %v158_v26 = vsel %vm154_vm2, %v7917_v23, 0.0 }
  0xea   :  { %159 = vadd.xlane.f32.xlu0 %v158_v26  ;;  %v140_v27 = vpop.f32.mrb[4].mxu0 }
  0xeb   :  { %v7924_v28 = vadd.f32 %v140_v27, %v45_v25  ;;  %v6439_v29 = vpop.f32.mrb[5].mxu0 }
  0xed   :  { %v161_v31 = vsel %vm154_vm2, %v7924_v28, 0.0 }
  0xee   :  { %162 = vadd.xlane.f32.xlu1 %v161_v31  ;;  %v145_v32 = vpop.f32.mrb[6].mxu0 }
  0xef   :  { %v7931_v33 = vadd.f32 %v145_v32, %v46_v30  ;;  %v6442_v34 = vpop.f32.mrb[7].mxu0 }
  0xf1   :  { %v164_v36 = vsel %vm154_vm2, %v7931_v33, 0.0 }
  0xf2   :  { %165 = vadd.xlane.f32.xlu1 %v164_v36  ;;  %v150_v37 = vpop.f32.mrb[8].mxu0 }
  0xf3   :  { %v7938_v38 = vadd.f32 %v150_v37, %v47_v35  ;;  %v6445_v39 = vpop.f32.mrb[9].mxu0 }
  0xf5   :  { %v168_v40 = vsel %vm167_vm3, %v7938_v38, 0.0 }
  0xf6   :  { %169 = vadd.xlane.f32.xlu0 %v168_v40  ;;  %v5894_v40 = vld [vmem:[%s9696_s6] ss:$0 sm:$0xff] }
 0x173   :  { %v157_v41 = vpop.xlane.xlu0 %156 }
 0x174   :  { %v172_v42 = vmul.f32 0.03125, %v157_v41 }
 0x176   :  { %v177_v43 = vsub.f32 %v7910_v18, %v172_v42 }
 0x177   :  { %v160_v44 = vpop.xlane.xlu0 %159 }
 0x178   :  { %v173_v45 = vmul.f32 0.03125, %v160_v44  ;;  %v182_v46 = vmul.f32 %v177_v43, %v177_v43 }
 0x17a   :  { %v178_v47 = vsub.f32 %v7917_v23, %v173_v45  ;;  %v187_v48 = vsel %vm154_vm2, %v182_v46, 0.0 }
 0x17b   :  { %v163_v49 = vpop.xlane.xlu1 %162  ;;  %188 = vadd.xlane.f32.xlu1 %v187_v48 }
 0x17c   :  { %v174_v50 = vmul.f32 0.03125, %v163_v49  ;;  %v183_v51 = vmul.f32 %v178_v47, %v178_v47 }
 0x17e   :  { %v179_v52 = vsub.f32 %v7924_v28, %v174_v50  ;;  %v190_v53 = vsel %vm154_vm2, %v183_v51, 0.0 }
 0x17f   :  { %v166_v54 = vpop.xlane.xlu1 %165  ;;  %191 = vadd.xlane.f32.xlu0 %v190_v53 }
 0x180   :  { %v175_v55 = vmul.f32 0.03125, %v166_v54  ;;  %v184_v56 = vmul.f32 %v179_v52, %v179_v52 }
 0x182   :  { %v180_v57 = vsub.f32 %v7931_v33, %v175_v55  ;;  %v193_v58 = vsel %vm154_vm2, %v184_v56, 0.0 }
 0x183   :  { %194 = vadd.xlane.f32.xlu1 %v193_v58  ;;  %v170_v59 = vpop.xlane.xlu0 %169 }
 0x184   :  { %v176_v60 = vmul.f32 0.03125, %v170_v59  ;;  %v185_v61 = vmul.f32 %v180_v57, %v180_v57 }
 0x186   :  { %v181_v62 = vsub.f32 %v7938_v38, %v176_v60  ;;  %v196_v63 = vsel %vm154_vm2, %v185_v61, 0.0 }
 0x187   :  { %197 = vadd.xlane.f32.xlu0 %v196_v63 }
 0x188   :  { %v186_v1 = vmul.f32 %v181_v62, %v181_v62 }
 0x18a   :  { %v199_v2 = vsel %vm167_vm3, %v186_v1, 0.0 }
 0x18b   :  { %200 = vadd.xlane.f32.xlu1 %v199_v2 }
 0x208   :  { %v189_v10 = vpop.xlane.xlu1 %188 }
 0x209   :  { %v202_v11 = vmul.f32 0.03125, %v189_v10 }
 0x20b   :  { %v207_v12 = vadd.f32 1e-06, %v202_v11 }
 0x20c   :  { %v192_v13 = vpop.xlane.xlu0 %191 }
 0x20d   :  { %7512 = vrsqrt.f32 %v207_v12  ;;  %v203_v14 = vmul.f32 0.03125, %v192_v13 }
 0x20f   :  { %v208_v15 = vadd.f32 1e-06, %v203_v14 }
 0x210   :  { %v195_v16 = vpop.xlane.xlu1 %194 }
 0x211   :  { %7514 = vrsqrt.f32 %v208_v15  ;;  %v204_v17 = vmul.f32 0.03125, %v195_v16 }
 0x213   :  { %v209_v19 = vadd.f32 1e-06, %v204_v17 }
 0x214   :  { %v198_v20 = vpop.xlane.xlu0 %197 }
 0x215   :  { %7516 = vrsqrt.f32 %v209_v19  ;;  %v205_v21 = vmul.f32 0.03125, %v198_v20 }
 0x217   :  { %v7513_v22 = vpop.eup %7512  ;;  %v210_v24 = vadd.f32 1e-06, %v205_v21 }
 0x218   :  { %v201_v25 = vpop.xlane.xlu1 %200  ;;  %v217_v26 = vmul.f32 %v7513_v22, %v177_v43 }
 0x219   :  { %7518 = vrsqrt.f32 %v210_v24  ;;  %v206_v27 = vmul.f32 0.03125, %v201_v25 }
 0x21a   :  { %6455 = vmatmul.mubr.msk.f32.vlgmr.msra.gmra.mrb[0].mxu1 %vm154_vm2, %v217_v26 }
 0x21b   :  { %v7515_v29 = vpop.eup %7514  ;;  %v211_v30 = vadd.f32 1e-06, %v206_v27  ;;  %6457 = vmatprep.mubr.msk.f32.mxu1 %vm7795_vm0, %v7796_v4 }
 0x21c   :  { %v218_v31 = vmul.f32 %v7515_v29, %v178_v47 }
 0x21d   :  { %7520 = vrsqrt.f32 %v211_v30 }
 0x21e   :  { %6458 = vmatmul.mubr.msk.f32.gmra.mrb[2].mxu1 %vm154_vm2, %v218_v31 }
 0x21f   :  { %v7517_v32 = vpop.eup %7516  ;;  %6460 = vmatprep.mubr.msk.f32.mxu1 %vm7795_vm0, %v7796_v4 }
 0x220   :  { %v219_v34 = vmul.f32 %v7517_v32, %v179_v52 }
 0x222   :  { %6461 = vmatmul.mubr.msk.f32.gmra.mrb[4].mxu1 %vm154_vm2, %v219_v34 }
 0x223   :  { %v7519_v35 = vpop.eup %7518  ;;  %6463 = vmatprep.mubr.msk.f32.mxu1 %vm7795_vm0, %v7796_v4 }
 0x224   :  { %v220_v36 = vmul.f32 %v7519_v35, %v180_v57 }
 0x226   :  { %6464 = vmatmul.mubr.msk.f32.gmra.mrb[6].mxu1 %vm154_vm2, %v220_v36 }
 0x227   :  { %v7521_v37 = vpop.eup %7520  ;;  %6466 = vmatprep.mubr.msk.f32.mxu1 %vm7795_vm0, %v7796_v4 }
 0x228   :  { %v221_v39 = vmul.f32 %v7521_v37, %v181_v62 }
 0x22a   :  { %6467 = vmatmul.mubr.msk.f32.gmra.mrb[8].mxu1 %vm154_vm2, %v221_v39 }
 0x22b   :  { %6475 = vmatprep.mubr.msk.f32.mxu1 %vm7795_vm0, %v7796_v4 }
 0x2ed   :  { %v312_v41 = vpop.f32.mrb[0].mxu1 }
 0x2ee   :  { %v7984_v42 = vadd.f32 %v5894_v40, %v312_v41  ;;  %v6456_v43 = vpop.f32.mrb[1].mxu1 }
 0x2f0   :  { %339 = vrot.lane.b32.xlu0 %v7984_v42, %s7797_s26 }
 0x2f1   :  { %v317_v44 = vpop.f32.mrb[2].mxu1 }
 0x2f2   :  { %v7988_v45 = vadd.f32 %v5894_v40, %v317_v44  ;;  %v6459_v46 = vpop.f32.mrb[3].mxu1 }
 0x2f4   :  { %347 = vrot.lane.b32.xlu0 %v7988_v45, %s7798_s27  ;;  %341 = vrot.lane.b32.xlu1 %v7988_v45, %s7797_s26  ;;  %v7352_v61 = vpack.i.bf16 %v7988_v45, %v7984_v42 }
 0x2f5   :  { %v322_v47 = vpop.f32.mrb[4].mxu1 }
 0x2f6   :  { %v6462_v48 = vpop.f32.mrb[5].mxu1  ;;  %v7998_v50 = vadd.f32 %v5894_v40, %v322_v47 }
 0x2f8   :  { %353 = vrot.lane.b32.xlu0 %v7988_v45, %s7799_s28  ;;  %345 = vrot.lane.b32.xlu1 %v7984_v42, %s7798_s27  ;;  %v360_v59 = vrot.slane %v7998_v50, 1 }
 0x2f9   :  { %v327_v49 = vpop.f32.mrb[6].mxu1 }
 0x2fa   :  { %v6465_v51 = vpop.f32.mrb[7].mxu1  ;;  %v328_v52 = vadd.f32 %v5894_v40, %v327_v49 }
 0x2fc   :  { %355 = vrot.lane.b32.xlu0 %v7998_v50, %s7799_s28  ;;  %343 = vrot.lane.b32.xlu1 %v7998_v50, %s7797_s26  ;;  %v361_v56 = vrot.slane %v328_v52, 1 }
 0x2fd   :  { %v332_v53 = vpop.f32.mrb[8].mxu1 }
 0x2fe   :  { %v333_v54 = vadd.f32 %v5894_v40, %v332_v53  ;;  %v6468_v55 = vpop.f32.mrb[9].mxu1  ;;  %v8018_v60 = vsel %vm359_vm4, %v360_v59, %v361_v56 }
 0x300   :  { %v8004_v57 = vrot.slane %v333_v54, 1  ;;  %351 = vrot.lane.b32.xlu1 %v7984_v42, %s7799_s28 }
 0x302   :  { %v8010_v58 = vsel %vm359_vm4, %v361_v56, %v8004_v57 }
 0x303   :  { %367 = vrot.lane.b32.xlu0 %v8010_v58, %s7797_s26  ;;  %v7372_v14 = vpack.i.bf16 %v8010_v58, %v8018_v60 }
 0x304   :  { %349 = vrot.lane.b32.xlu1 %v7998_v50, %s7798_s27 }
 0x307   :  { %371 = vrot.lane.b32.xlu0 %v8018_v60, %s7798_s27 }
 0x308   :  { %365 = vrot.lane.b32.xlu1 %v8018_v60, %s7797_s26 }
 0x30b   :  { %377 = vrot.lane.b32.xlu0 %v8018_v60, %s7799_s28 }
 0x30c   :  { %369 = vrot.lane.b32.xlu1 %v8004_v57, %s7797_s26 }
 0x30f   :  { %375 = vrot.lane.b32.xlu0 %v8004_v57, %s7798_s27 }
 0x310   :  { %373 = vrot.lane.b32.xlu1 %v8010_v58, %s7798_s27 }
 0x313   :  { %7353 = vrot.lane.b32.xlu0 %v7352_v61, %s7800_s29 }
 0x314   :  { %379 = vrot.lane.b32.xlu1 %v8010_v58, %s7799_s28 }
 0x317   :  { %387 = vrot.lane.b32.xlu0 %v7998_v50, %s7800_s29 }
 0x318   :  { %381 = vrot.lane.b32.xlu1 %v8004_v57, %s7799_s28 }
 0x362   :  { %v8041_v62 = vpop.permute.xlu0 %339 }
 0x366   :  { %v8043_v63 = vpop.permute.xlu1 %341  ;;  %v8045_v1 = vpop.permute.xlu0 %347 }
 0x367   :  { %v7357_v2 = vpack.i.bf16 %v8043_v63, %v8041_v62 }
 0x369   :  { %7358 = vrot.lane.b32.xlu1 %v7357_v2, %s7800_s29 }
 0x36a   :  { %v8050_v3 = vpop.permute.xlu1 %345  ;;  %v8052_v5 = vpop.permute.xlu0 %353 }
 0x36b   :  { %v7362_v6 = vpack.i.bf16 %v8045_v1, %v8050_v3 }
 0x36d   :  { %7363 = vrot.lane.b32.xlu0 %v7362_v6, %s7800_s29 }
 0x36e   :  { %v8057_v7 = vpop.permute.xlu1 %343  ;;  %v8061_v8 = vpop.permute.xlu0 %355 }
 0x36f   :  { %486 = vrot.lane.b32.xlu1 %v8057_v7, %s7800_s29 }
 0x372   :  { %v8063_v9 = vpop.permute.xlu1 %351 }
 0x373   :  { %v7367_v10 = vpack.i.bf16 %v8052_v5, %v8063_v9 }
 0x375   :  { %7368 = vrot.lane.b32.xlu1 %v7367_v10, %s7800_s29  ;;  %v8068_v11 = vpop.permute.xlu0 %367 }
 0x376   :  { %v8070_v12 = vpop.permute.xlu1 %349 }
 0x377   :  { %584 = vrot.lane.b32.xlu0 %v8070_v12, %s7800_s29 }
 0x379   :  { %682 = vrot.lane.b32.xlu1 %v8061_v8, %s7800_s29  ;;  %v8076_v13 = vpop.permute.xlu0 %371 }
 0x37a   :  { %v8080_v15 = vpop.permute.xlu1 %365 }
 0x37b   :  { %7373 = vrot.lane.b32.xlu0 %v7372_v14, %s7800_s29  ;;  %v7377_v16 = vpack.i.bf16 %v8068_v11, %v8080_v15 }
 0x37d   :  { %7378 = vrot.lane.b32.xlu1 %v7377_v16, %s7800_s29  ;;  %v8086_v17 = vpop.permute.xlu0 %377 }
 0x37e   :  { %v8088_v19 = vpop.permute.xlu1 %369 }
 0x37f   :  { %780 = vrot.lane.b32.xlu0 %v8004_v57, %s7800_s29 }
 0x381   :  { %878 = vrot.lane.b32.xlu1 %v8088_v19, %s7800_s29  ;;  %v8094_v20 = vpop.permute.xlu0 %375 }
 0x382   :  { %v8096_v21 = vpop.permute.xlu1 %373 }
 0x383   :  { %v7382_v22 = vpack.i.bf16 %v8096_v21, %v8076_v13 }
 0x385   :  { %7383 = vrot.lane.b32.xlu0 %v7382_v22, %s7800_s29  ;;  %v7354_v24 = vpop.permute.xlu0 %7353 }
 0x386   :  { %v7356_v25 = vunpack.i.h.bf16 %v7354_v24  ;;  %v7355_v26 = vunpack.i.l.bf16 %v7354_v24  ;;  %v8101_v27 = vpop.permute.xlu1 %379 }
 0x387   :  { %v7387_v29 = vpack.i.bf16 %v8101_v27, %v8086_v17 }
 0x388   :  { %v7172_v31 = vpack.c.bf16 %v7356_v25, %v7355_v26 }
 0x389   :  { %7388 = vrot.lane.b32.xlu1 %v7387_v29, %s7800_s29  ;;  %976 = vrot.lane.b32.xlu0 %v8094_v20, %s7800_s29  ;;  %v388_v34 = vpop.permute.xlu0 %387 }
 0x38a   :  { %7174 = vmatpush3.bf16.xpose.msk.msra.mxu1 %vm8107_vm6, %v7172_v31  ;;  %v8117_v32 = vpop.permute.xlu1 %381 }
 0x38b   :  { %6473 = vmatprep.subr.mxu1 %v7796_v4 }
 0x38d   :  { %1074 = vrot.lane.b32.xlu1 %v8117_v32, %s7800_s29  ;;  %7393 = vrot.lane.b32.xlu0 %v7352_v61, %s7801_s30 }
 0x391   :  { %7398 = vrot.lane.b32.xlu1 %v7357_v2, %s7801_s30  ;;  %1418 = vrot.lane.b32.xlu0 %v8057_v7, %s7801_s30 }
 0x392   :  { %6474 = vmatpush3.xpose.msk.msra.mxu1 %vm389_vm5, %v388_v34 }
 0x393   :  { %7179 = vmatprep.subr.bf16.mxu1 %v7794_v0 }
 0x395   :  { %1318 = vrot.lane.b32.xlu1 %v7998_v50, %s7801_s30  ;;  %7408 = vrot.lane.b32.xlu0 %v7367_v10, %s7801_s30 }
 0x396   :  { %6476 = vmatmul.mubr.msk.f32.vlgmr.msra.gmra.mrb[10].mxu1 %vm389_vm5, %v7984_v42 }
 0x397   :  { %6478 = vmatprep.mubr.msk.f32.mxu1 %vm7795_vm0, %v7796_v4 }
 0x399   :  { %7403 = vrot.lane.b32.xlu1 %v7362_v6, %s7801_s30  ;;  %1616 = vrot.lane.b32.xlu0 %v8061_v8, %s7801_s30 }
 0x39a   :  { %6479 = vmatmul.mubr.msk.f32.gmra.mrb[12].mxu1 %vm389_vm5, %v7988_v45 }
 0x39b   :  { %6481 = vmatprep.mubr.msk.f32.mxu1 %vm7795_vm0, %v7796_v4 }
 0x39d   :  { %1517 = vrot.lane.b32.xlu1 %v8070_v12, %s7801_s30  ;;  %1715 = vrot.lane.b32.xlu0 %v8004_v57, %s7801_s30 }
 0x39e   :  { %6482 = vmatmul.mubr.msk.f32.gmra.mrb[14].mxu1 %vm389_vm5, %v7998_v50 }
 0x39f   :  { %6505 = vmatprep.mubr.msk.f32.mxu1 %vm7795_vm0, %v7796_v4 }
 0x3a1   :  { %7413 = vrot.lane.b32.xlu1 %v7372_v14, %s7801_s30  ;;  %1814 = vrot.lane.b32.xlu0 %v8088_v19, %s7801_s30 }
 0x3a5   :  { %7418 = vrot.lane.b32.xlu0 %v7377_v16, %s7801_s30 }
 0x3a9   :  { %7423 = vrot.lane.b32.xlu0 %v7382_v22, %s7801_s30 }
 0x3ad   :  { %7428 = vrot.lane.b32.xlu0 %v7387_v29, %s7801_s30 }
 0x3db   :  { %v7359_v35 = vpop.permute.xlu1 %7358 }
 0x3dc   :  { %v7361_v36 = vunpack.i.h.bf16 %v7359_v35  ;;  %v7360_v37 = vunpack.i.l.bf16 %v7359_v35 }
 0x3de   :  { %v7176_v39 = vpack.c.bf16 %v7361_v36, %v7360_v37 }
 0x3df   :  { %v7364_v40 = vpop.permute.xlu0 %7363 }
 0x3e0   :  { %v7366_v41 = vunpack.i.h.bf16 %v7364_v40  ;;  %v7365_v42 = vunpack.i.l.bf16 %v7364_v40  ;;  %7178 = vmatpush3.bf16.xpose.msk.msra.mxu0 %vm8107_vm6, %v7176_v39 }
 0x3e1   :  { %6488 = vmatprep.subr.mxu0 %v7796_v4  ;;  %v487_v44 = vpop.permute.xlu1 %486 }
 0x3e2   :  { %v7180_v43 = vpack.c.bf16 %v7366_v41, %v7365_v42 }
 0x3e4   :  { %7182 = vmatpush3.bf16.xpose.msk.msra.mxu1 %vm8107_vm6, %v7180_v43 }
 0x3e5   :  { %6503 = vmatprep.subr.mxu1 %v7796_v4 }
 0x3e7   :  { %v7369_v45 = vpop.permute.xlu1 %7368 }
 0x3e8   :  { %v7371_v46 = vunpack.i.h.bf16 %v7369_v45  ;;  %v7370_v47 = vunpack.i.l.bf16 %v7369_v45  ;;  %6489 = vmatpush3.xpose.msk.msra.mxu0 %vm389_vm5, %v487_v44 }
 0x3e9   :  { %v585_v48 = vpop.permute.xlu0 %584  ;;  %7183 = vmatprep.subr.bf16.mxu0 %v7794_v0 }
 0x3ea   :  { %v7184_v49 = vpack.c.bf16 %v7371_v46, %v7370_v47 }
 0x3eb   :  { %6491 = vmatmul.mubr.msk.f32.vlgmr.msra.gmra.mrb[10].mxu0 %vm389_vm5, %v8041_v62  ;;  %v683_v50 = vpop.permute.xlu1 %682 }
 0x3ec   :  { %6504 = vmatpush3.xpose.msk.msra.mxu1 %vm389_vm5, %v585_v48  ;;  %7186 = vmatpush3.bf16.xpose.msk.msra.mxu0 %vm8107_vm6, %v7184_v49 }
 0x3ed   :  { %v7374_v51 = vpop.permute.xlu0 %7373  ;;  %6493 = vmatprep.mubr.msk.f32.mxu0 %vm7795_vm0, %v7796_v4  ;;  %7187 = vmatprep.subr.bf16.mxu1 %v7794_v0 }
 0x3ee   :  { %v7376_v52 = vunpack.i.h.bf16 %v7374_v51  ;;  %v7375_v53 = vunpack.i.l.bf16 %v7374_v51  ;;  %6518 = vmatprep.subr.mxu0 %v7796_v4 }
 0x3ef   :  { %6494 = vmatmul.mubr.msk.f32.gmra.mrb[12].mxu0 %vm389_vm5, %v8043_v63  ;;  %v7379_v54 = vpop.permute.xlu1 %7378  ;;  %6506 = vmatmul.mubr.msk.f32.vlgmr.msra.gmra.mrb[16].mxu1 %vm389_vm5, %v8050_v3 }
 0x3f0   :  { %v7188_v55 = vpack.c.bf16 %v7376_v52, %v7375_v53  ;;  %6496 = vmatprep.mubr.msk.f32.mxu0 %vm7795_vm0, %v7796_v4  ;;  %6508 = vmatprep.mubr.msk.f32.mxu1 %vm7795_vm0, %v7796_v4  ;;  %v7381_v56 = vunpack.i.h.bf16 %v7379_v54  ;;  %v7380_v59 = vunpack.i.l.bf16 %v7379_v54 }
 0x3f1   :  { %v781_v61 = vpop.permute.xlu0 %780 }
 0x3f2   :  { %7190 = vmatpush3.bf16.xpose.msk.msra.mxu1 %vm8107_vm6, %v7188_v55  ;;  %v7192_v62 = vpack.c.bf16 %v7381_v56, %v7380_v59 }
 0x3f3   :  { %6497 = vmatmul.mubr.msk.f32.gmra.mrb[14].mxu0 %vm389_vm5, %v8057_v7  ;;  %6509 = vmatmul.mubr.msk.f32.gmra.mrb[18].mxu1 %vm389_vm5, %v8045_v1  ;;  %v879_v63 = vpop.permute.xlu1 %878 }
 0x3f4   :  { %6519 = vmatpush3.xpose.msk.msra.mxu0 %vm389_vm5, %v683_v50  ;;  %6511 = vmatprep.mubr.msk.f32.mxu1 %vm7795_vm0, %v7796_v4 }
 0x3f5   :  { %6520 = vmatprep.mubr.msk.f32.mxu0 %vm7795_vm0, %v7796_v4  ;;  %7191 = vmatprep.subr.bf16.mxu0 %v7794_v0 }
 0x3f6   :  { %6533 = vmatprep.subr.mxu1 %v7796_v4 }
 0x3f7   :  { %6521 = vmatmul.mubr.msk.f32.vlgmr.msra.gmra.mrb[16].mxu0 %vm389_vm5, %v8063_v9  ;;  %v7384_v2 = vpop.permute.xlu0 %7383  ;;  %6512 = vmatmul.mubr.msk.f32.gmra.mrb[20].mxu1 %vm389_vm5, %v8070_v12 }
 0x3f8   :  { %v7386_v1 = vunpack.i.h.bf16 %v7384_v2  ;;  %v7385_v3 = vunpack.i.l.bf16 %v7384_v2  ;;  %7194 = vmatpush3.bf16.xpose.msk.msra.mxu0 %vm8107_vm6, %v7192_v62  ;;  %6523 = vmatprep.mubr.msk.f32.mxu0 %vm7795_vm0, %v7796_v4 }
 0x3f9   :  { %6535 = vmatprep.mubr.msk.f32.mxu1 %vm7795_vm0, %v7796_v4  ;;  %6548 = vmatprep.subr.mxu0 %v7796_v4 }
 0x3fa   :  { %6534 = vmatpush3.xpose.msk.msra.mxu1 %vm389_vm5, %v781_v61  ;;  %v7196_v9 = vpack.c.bf16 %v7386_v1, %v7385_v3 }
 0x3fb   :  { %6524 = vmatmul.mubr.msk.f32.gmra.mrb[18].mxu0 %vm389_vm5, %v8052_v5  ;;  %v7389_v6 = vpop.permute.xlu1 %7388  ;;  %v977_v7 = vpop.permute.xlu0 %976  ;;  %7195 = vmatprep.subr.bf16.mxu1 %v7794_v0 }
 0x3fc   :  { %6526 = vmatprep.mubr.msk.f32.mxu0 %vm7795_vm0, %v7796_v4  ;;  %v7391_v10 = vunpack.i.h.bf16 %v7389_v6  ;;  %v7390_v12 = vunpack.i.l.bf16 %v7389_v6 }
 0x3fd   :  { %6536 = vmatmul.mubr.msk.f32.vlgmr.msra.gmra.mrb[22].mxu1 %vm389_vm5, %v8018_v60 }
 0x3fe   :  { %7198 = vmatpush3.bf16.xpose.msk.msra.mxu1 %vm8107_vm6, %v7196_v9  ;;  %6538 = vmatprep.mubr.msk.f32.mxu1 %vm7795_vm0, %v7796_v4  ;;  %v7200_v14 = vpack.c.bf16 %v7391_v10, %v7390_v12 }
 0x3ff   :  { %6527 = vmatmul.mubr.msk.f32.gmra.mrb[20].mxu0 %vm389_vm5, %v8061_v8  ;;  %6563 = vmatprep.subr.mxu1 %v7796_v4  ;;  %v1075_v5 = vpop.permute.xlu1 %1074  ;;  %v7394_v60 = vpop.permute.xlu0 %7393 }
 0x400   :  { %6549 = vmatpush3.xpose.msk.msra.mxu0 %vm389_vm5, %v879_v63  ;;  %6550 = vmatprep.mubr.msk.f32.mxu0 %vm7795_vm0, %v7796_v4  ;;  %v7396_v8 = vunpack.i.h.bf16 %v7394_v60  ;;  %v7395_v16 = vunpack.i.l.bf16 %v7394_v60 }
 0x401   :  { %6539 = vmatmul.mubr.msk.f32.gmra.mrb[24].mxu1 %vm389_vm5, %v8010_v58  ;;  %7199 = vmatprep.subr.bf16.mxu0 %v7794_v0 }
 0x402   :  { %6541 = vmatprep.mubr.msk.f32.mxu1 %vm7795_vm0, %v7796_v4 }
 0x403   :  { %6551 = vmatmul.mubr.msk.f32.vlgmr.msra.gmra.mrb[22].mxu0 %vm389_vm5, %v8080_v15  ;;  %v7399_v58 = vpop.permute.xlu1 %7398  ;;  %v7204_v15 = vpack.c.bf16 %v7396_v8, %v7395_v16 }
 0x404   :  { %7202 = vmatpush3.bf16.xpose.msk.msra.mxu0 %vm8107_vm6, %v7200_v14  ;;  %6553 = vmatprep.mubr.msk.f32.mxu0 %vm7795_vm0, %v7796_v4  ;;  %v7400_v22 = vunpack.i.l.bf16 %v7399_v58 }
 0x405   :  { %6542 = vmatmul.mubr.msk.f32.gmra.mrb[26].mxu1 %vm389_vm5, %v8004_v57  ;;  %6578 = vmatprep.subr.mxu0 %v7796_v4  ;;  %v7401_v57 = vunpack.i.h.bf16 %v7399_v58 }
 0x406   :  { %6564 = vmatpush3.xpose.msk.msra.mxu1 %vm389_vm5, %v977_v7  ;;  %6565 = vmatprep.mubr.msk.f32.mxu1 %vm7795_vm0, %v7796_v4 }
 0x407   :  { %6554 = vmatmul.mubr.msk.f32.gmra.mrb[24].mxu0 %vm389_vm5, %v8068_v11  ;;  %7203 = vmatprep.subr.bf16.mxu1 %v7794_v0  ;;  %v1319_v11 = vpop.permute.xlu1 %1318 }
 0x408   :  { %6556 = vmatprep.mubr.msk.f32.mxu0 %vm7795_vm0, %v7796_v4 }
 0x409   :  { %6566 = vmatmul.mubr.msk.f32.vlgmr.msra.gmra.mrb[28].mxu1 %vm389_vm5, %v8076_v13  ;;  %v7207_v13 = vpack.c.bf16 %v7401_v57, %v7400_v22 }
 0x40a   :  { %7205 = vmatpush3.bf16.msra.mxu1 %v7204_v15  ;;  %6568 = vmatprep.mubr.msk.f32.mxu1 %vm7795_vm0, %v7796_v4 }
 0x40b   :  { %6557 = vmatmul.mubr.msk.f32.gmra.mrb[26].mxu0 %vm389_vm5, %v8088_v19  ;;  %6593 = vmatprep.subr.mxu1 %v7796_v4  ;;  %v1419_v19 = vpop.permute.xlu0 %1418 }
 0x40c   :  { %6579 = vmatpush3.xpose.msk.msra.mxu0 %vm389_vm5, %v1075_v5  ;;  %6580 = vmatprep.mubr.msk.f32.mxu0 %vm7795_vm0, %v7796_v4 }
 0x40d   :  { %6569 = vmatmul.mubr.msk.f32.gmra.mrb[30].mxu1 %vm389_vm5, %v8096_v21  ;;  %7206 = vmatprep.subr.bf16.mxu0 %v7794_v0 }
 0x40e   :  { %6594 = vmatpush3.msk.msra.mxu1 %vm1331_vm7, %v1319_v11  ;;  %6571 = vmatprep.mubr.msk.f32.mxu1 %vm7795_vm0, %v7796_v4 }
 0x40f   :  { %6581 = vmatmul.mubr.msk.f32.vlgmr.msra.gmra.mrb[28].mxu0 %vm389_vm5, %v8086_v17  ;;  %7209 = vmatprep.subr.bf16.mxu1 %v7794_v0  ;;  %v8322_v62 = vpop.permute.xlu0 %7408 }
 0x410   :  { %7208 = vmatpush3.bf16.msra.mxu0 %v7207_v13  ;;  %6583 = vmatprep.mubr.msk.f32.mxu0 %vm7795_vm0, %v7796_v4 }
 0x411   :  { %6572 = vmatmul.mubr.msk.f32.gmra.mrb[32].mxu1 %vm389_vm5, %v8094_v20  ;;  %6608 = vmatprep.subr.mxu0 %v7796_v4 }
 0x412   :  { %6595 = vmatprep.mubr.msk.f32.mxu1 %vm7795_vm0, %v7796_v4 }
 0x413   :  { %6584 = vmatmul.mubr.msk.f32.gmra.mrb[30].mxu0 %vm389_vm5, %v8101_v27  ;;  %v8336_v5 = vpop.permute.xlu0 %1616 }
 0x414   :  { %6609 = vmatpush3.msk.msra.mxu0 %vm1331_vm7, %v1419_v19  ;;  %6586 = vmatprep.mubr.msk.f32.mxu0 %vm7795_vm0, %v7796_v4 }
 0x415   :  { %7212 = vmatprep.subr.bf16.mxu0 %v7794_v0 }
 0x417   :  { %6587 = vmatmul.mubr.msk.f32.gmra.mrb[32].mxu0 %vm389_vm5, %v8117_v32  ;;  %v8348_v11 = vpop.permute.xlu0 %1715 }
 0x418   :  { %6610 = vmatprep.mubr.msk.f32.mxu0 %vm7795_vm0, %v7796_v4 }
 0x469   :  { %v8280_v17 = vpop.f32.mrb[10].mxu1 }
 0x46a   :  { %v6477_v21 = vpop.f32.mrb[11].mxu1  ;;  %v1169_v24 = vsel %vm1168_vm8, %v8280_v17, -inf }
 0x46b   :  { %1170 = vmax.xlane.f32.xlu0 %v1169_v24 }
 0x46d   :  { %v8284_v25 = vpop.f32.mrb[12].mxu1 }
 0x46e   :  { %v6480_v26 = vpop.f32.mrb[13].mxu1  ;;  %v1172_v27 = vsel %vm1168_vm8, %v8284_v25, -inf }
 0x46f   :  { %1173 = vmax.xlane.f32.xlu0 %v1172_v27 }
 0x471   :  { %v8288_v29 = vpop.f32.mrb[14].mxu1 }
 0x472   :  { %v6483_v31 = vpop.f32.mrb[15].mxu1  ;;  %v1176_v34 = vsel %vm1175_vm9, %v8288_v29, -inf }
 0x473   :  { %1177 = vmax.xlane.f32.xlu0 %v1176_v34 }
 0x4be   :  { %v8292_v35 = vpop.f32.mrb[10].mxu0 }
 0x4bf   :  { %v6492_v36 = vpop.f32.mrb[11].mxu0  ;;  %v1179_v37 = vsel %vm1168_vm8, %v8292_v35, -inf }
 0x4c0   :  { %1180 = vmax.xlane.f32.xlu1 %v1179_v37 }
 0x4c2   :  { %v8296_v39 = vpop.f32.mrb[12].mxu0  ;;  %v8298_v40 = vpop.f32.mrb[16].mxu1 }
 0x4c3   :  { %v6495_v41 = vpop.f32.mrb[13].mxu0  ;;  %v6507_v42 = vpop.f32.mrb[17].mxu1  ;;  %v1188_v43 = vsel %vm1168_vm8, %v8298_v40, -inf  ;;  %v1182_v48 = vsel %vm1168_vm8, %v8296_v39, -inf }
 0x4c4   :  { %1189 = vmax.xlane.f32.xlu0 %v1188_v43  ;;  %v8364_v41 = vpop.permute.xlu0 %1814 }
 0x4c6   :  { %v8302_v44 = vpop.f32.mrb[14].mxu0  ;;  %v8304_v45 = vpop.f32.mrb[18].mxu1 }
 0x4c7   :  { %v6498_v46 = vpop.f32.mrb[15].mxu0  ;;  %v6510_v47 = vpop.f32.mrb[19].mxu1  ;;  %v1185_v49 = vsel %vm1175_vm9, %v8302_v44, -inf  ;;  %v1191_v54 = vsel %vm1168_vm8, %v8304_v45, -inf }
 0x4c8   :  { %1183 = vmax.xlane.f32.xlu0 %v1182_v48  ;;  %1186 = vmax.xlane.f32.xlu1 %v1185_v49 }
 0x4ca   :  { %v8310_v50 = vpop.f32.mrb[20].mxu1  ;;  %v8312_v51 = vpop.f32.mrb[16].mxu0 }
 0x4cb   :  { %v6513_v52 = vpop.f32.mrb[21].mxu1  ;;  %v6522_v53 = vpop.f32.mrb[17].mxu0  ;;  %v1197_v55 = vsel %vm1168_vm8, %v8312_v51, -inf  ;;  %v1194_v61 = vsel %vm1175_vm9, %v8310_v50, -inf }
 0x4cc   :  { %1192 = vmax.xlane.f32.xlu0 %v1191_v54  ;;  %1198 = vmax.xlane.f32.xlu1 %v1197_v55  ;;  %v8376_v54 = vpop.permute.xlu0 %7418 }
 0x4ce   :  { %v8318_v56 = vpop.f32.mrb[18].mxu0 }
 0x4cf   :  { %v6525_v59 = vpop.f32.mrb[19].mxu0  ;;  %v1200_v12 = vsel %vm1168_vm8, %v8318_v56, -inf }
 0x4d0   :  { %v8324_v63 = vpop.f32.mrb[22].mxu1  ;;  %1195 = vmax.xlane.f32.xlu0 %v1194_v61 }
 0x4d1   :  { %v6537_v2 = vpop.f32.mrb[23].mxu1  ;;  %v1206_v1 = vsel %vm1168_vm8, %v8324_v63, -inf }
 0x4d2   :  { %1207 = vmax.xlane.f32.xlu1 %v1206_v1  ;;  %v8328_v3 = vpop.f32.mrb[20].mxu0 }
 0x4d3   :  { %v6528_v6 = vpop.f32.mrb[21].mxu0  ;;  %v1203_v58 = vsel %vm1175_vm9, %v8328_v3, -inf }
 0x4d4   :  { %v8330_v7 = vpop.f32.mrb[24].mxu1  ;;  %v8386_v6 = vpop.permute.xlu0 %7423 }
 0x4d5   :  { %v6540_v9 = vpop.f32.mrb[25].mxu1  ;;  %v1209_v10 = vsel %vm1168_vm8, %v8330_v7, -inf }
 0x4d6   :  { %1210 = vmax.xlane.f32.xlu0 %v1209_v10  ;;  %1201 = vmax.xlane.f32.xlu1 %v1200_v12  ;;  %v8338_v60 = vpop.f32.mrb[22].mxu0 }
 0x4d7   :  { %v6552_v14 = vpop.f32.mrb[23].mxu0  ;;  %v1215_v15 = vsel %vm1168_vm8, %v8338_v60, -inf }
 0x4d8   :  { %v8340_v8 = vpop.f32.mrb[26].mxu1  ;;  %v8388_v9 = vpop.permute.xlu0 %7428 }
 0x4d9   :  { %v6543_v16 = vpop.f32.mrb[27].mxu1  ;;  %v1212_v21 = vsel %vm1175_vm9, %v8340_v8, -inf }
 0x4da   :  { %1204 = vmax.xlane.f32.xlu1 %v1203_v58  ;;  %1216 = vmax.xlane.f32.xlu0 %v1215_v15  ;;  %v8346_v57 = vpop.f32.mrb[24].mxu0 }
 0x4db   :  { %v6555_v22 = vpop.f32.mrb[25].mxu0  ;;  %v1218_v24 = vsel %vm1168_vm8, %v8346_v57, -inf }
 0x4dc   :  { %v8350_v13 = vpop.f32.mrb[28].mxu1  ;;  %v7404_v22 = vpop.permute.xlu1 %7403 }
 0x4dd   :  { %v6567_v19 = vpop.f32.mrb[29].mxu1  ;;  %v1224_v36 = vsel %vm1168_vm8, %v8350_v13, -inf }
 0x4de   :  { %1213 = vmax.xlane.f32.xlu1 %v1212_v21  ;;  %1219 = vmax.xlane.f32.xlu0 %v1218_v24  ;;  %v8356_v26 = vpop.f32.mrb[26].mxu0  ;;  %v7406_v24 = vunpack.i.h.bf16 %v7404_v22 }
 0x4df   :  { %v6558_v27 = vpop.f32.mrb[27].mxu0  ;;  %v1221_v37 = vsel %vm1175_vm9, %v8356_v26, -inf }
 0x4e0   :  { %v8358_v31 = vpop.f32.mrb[30].mxu1  ;;  %v7405_v27 = vunpack.i.l.bf16 %v7404_v22 }
 0x4e1   :  { %v6570_v34 = vpop.f32.mrb[31].mxu1  ;;  %v1227_v48 = vsel %vm1168_vm8, %v8358_v31, -inf }
 0x4e2   :  { %1225 = vmax.xlane.f32.xlu1 %v1224_v36  ;;  %1222 = vmax.xlane.f32.xlu0 %v1221_v37  ;;  %v8366_v42 = vpop.f32.mrb[28].mxu0  ;;  %v7210_v36 = vpack.c.bf16 %v7406_v24, %v7405_v27 }
 0x4e3   :  { %v6582_v43 = vpop.f32.mrb[29].mxu0  ;;  %v1233_v55 = vsel %vm1168_vm8, %v8366_v42, -inf }
 0x4e4   :  { %v8368_v46 = vpop.f32.mrb[32].mxu1 }
 0x4e5   :  { %v6573_v47 = vpop.f32.mrb[33].mxu1  ;;  %v1230_v49 = vsel %vm1175_vm9, %v8368_v46, -inf }
 0x4e6   :  { %1228 = vmax.xlane.f32.xlu1 %v1227_v48  ;;  %1231 = vmax.xlane.f32.xlu0 %v1230_v49  ;;  %v8374_v52 = vpop.f32.mrb[30].mxu0 }
 0x4e7   :  { %v6585_v53 = vpop.f32.mrb[31].mxu0  ;;  %v1236_v1 = vsel %vm1168_vm8, %v8374_v52, -inf }
 0x4ea   :  { %1234 = vmax.xlane.f32.xlu0 %v1233_v55  ;;  %v8380_v59 = vpop.f32.mrb[32].mxu0 }
 0x4eb   :  { %v6588_v61 = vpop.f32.mrb[33].mxu0  ;;  %v1239_v2 = vsel %vm1175_vm9, %v8380_v59, -inf }
 0x4ec   :  { %1240 = vmax.xlane.f32.xlu1 %v1239_v2 }
 0x4ee   :  { %1237 = vmax.xlane.f32.xlu0 %v1236_v1 }
 0x4f8   :  { %v1171_v10 = vpop.xlane.xlu0 %1170 }
 0x4f9   :  { %v1242_v12 = vsub.f32 %v8280_v17, %v1171_v10  ;;  %v7411_v10 = vunpack.i.h.bf16 %v8322_v62 }
 0x4fb   :  { %v1266_v14 = vmul.f32 1.442695, %v1242_v12  ;;  %v7410_v12 = vunpack.i.l.bf16 %v8322_v62 }
 0x4fc   :  { %v1174_v16 = vpop.xlane.xlu0 %1173 }
 0x4fd   :  { %7522 = vpow2.f32 %v1266_v14  ;;  %v1243_v58 = vsub.f32 %v8284_v25, %v1174_v16  ;;  %2012 = vrot.lane.b32.xlu1 %v8117_v32, %s7801_s30  ;;  %v1518_v25 = vpop.permute.xlu1 %1517  ;;  %v7213_v22 = vpack.c.bf16 %v7411_v10, %v7410_v12 }
 0x4ff   :  { %v1268_v15 = vmul.f32 1.442695, %v1243_v58 }
 0x500   :  { %v1178_v19 = vpop.xlane.xlu0 %1177 }
 0x501   :  { %7524 = vpow2.f32 %v1268_v15  ;;  %v1244_v21 = vsub.f32 %v8288_v29, %v1178_v19  ;;  %v7414_v29 = vpop.permute.xlu1 %7413 }
 0x503   :  { %v1270_v34 = vmul.f32 1.442695, %v1244_v21  ;;  %v7416_v21 = vunpack.i.h.bf16 %v7414_v29 }
 0x504   :  { %1913 = vrot.lane.b32.xlu0 %v8094_v20, %s7801_s30 }
 0x505   :  { %7526 = vpow2.f32 %v1270_v34 }
 0x507   :  { %v8397_v17 = vpop.eup %7522 }
 0x508   :  { %6596 = vmatmul.mubr.msk.f32.vlgmr.msra.gmra.mrb[34].mxu1 %vm1168_vm8, %v8397_v17 }
 0x509   :  { %7211 = vmatpush3.bf16.msra.mxu1 %v7210_v36  ;;  %6598 = vmatprep.mubr.msk.f32.mxu1 %vm7795_vm0, %v7796_v4 }
 0x50a   :  { %6623 = vmatprep.subr.mxu1 %v7796_v4 }
 0x50b   :  { %v8404_v32 = vpop.eup %7524 }
 0x50c   :  { %6599 = vmatmul.mubr.msk.f32.gmra.mrb[36].mxu1 %vm1168_vm8, %v8404_v32 }
 0x50d   :  { %6624 = vmatpush3.msk.msra.mxu1 %vm1331_vm7, %v1518_v25  ;;  %6601 = vmatprep.mubr.msk.f32.mxu1 %vm7795_vm0, %v7796_v4 }
 0x50e   :  { %7215 = vmatprep.subr.bf16.mxu1 %v7794_v0 }
 0x50f   :  { %v8412_v20 = vpop.eup %7526 }
 0x510   :  { %6602 = vmatmul.mubr.msk.f32.gmra.mrb[38].mxu1 %vm1168_vm8, %v8412_v20 }
 0x511   :  { %6625 = vmatprep.mubr.msk.f32.mxu1 %vm7795_vm0, %v7796_v4 }
 0x54d   :  { %v1181_v37 = vpop.xlane.xlu1 %1180 }
 0x54e   :  { %v1245_v43 = vsub.f32 %v8292_v35, %v1181_v37 }
 0x550   :  { %v1272_v47 = vmul.f32 1.442695, %v1245_v43 }
 0x551   :  { %v1190_v48 = vpop.xlane.xlu0 %1189 }
 0x552   :  { %7528 = vpow2.f32 %v1272_v47  ;;  %v1248_v49 = vsub.f32 %v8298_v40, %v1190_v48 }
 0x554   :  { %v1278_v53 = vmul.f32 1.442695, %v1248_v49 }
 0x555   :  { %v1184_v55 = vpop.xlane.xlu0 %1183  ;;  %v1187_v61 = vpop.xlane.xlu1 %1186 }
 0x556   :  { %7530 = vpow2.f32 %v1278_v53  ;;  %v1246_v2 = vsub.f32 %v8296_v39, %v1184_v55  ;;  %v1247_v1 = vsub.f32 %v8302_v44, %v1187_v61  ;;  %v7415_v39 = vunpack.i.l.bf16 %v7414_v29 }
 0x558   :  { %v1274_v14 = vmul.f32 1.442695, %v1246_v2  ;;  %v1276_v16 = vmul.f32 1.442695, %v1247_v1  ;;  %v7216_v36 = vpack.c.bf16 %v7416_v21, %v7415_v39  ;;  %v7420_v2 = vunpack.i.l.bf16 %v8376_v54 }
 0x559   :  { %v1193_v35 = vpop.xlane.xlu0 %1192  ;;  %v1199_v58 = vpop.xlane.xlu1 %1198 }
 0x55a   :  { %7532 = vpow2.f32 %v1274_v14  ;;  %v1249_v15 = vsub.f32 %v8304_v45, %v1193_v35  ;;  %v1251_v40 = vsub.f32 %v8312_v51, %v1199_v58 }
 0x55b   :  { %7534 = vpow2.f32 %v1276_v16 }
 0x55c   :  { %v7529_v19 = vpop.eup %7528  ;;  %v1280_v24 = vmul.f32 1.442695, %v1249_v15  ;;  %v1284_v44 = vmul.f32 1.442695, %v1251_v40 }
 0x55d   :  { %6611 = vmatmul.mubr.msk.f32.vlgmr.msra.gmra.mrb[34].mxu0 %vm1168_vm8, %v7529_v19  ;;  %v1196_v27 = vpop.xlane.xlu0 %1195  ;;  %v2116_v62 = vsel %vm1168_vm8, %v7529_v19, 0.0  ;;  %v7425_v19 = vunpack.i.l.bf16 %v8386_v6 }
 0x55e   :  { %7536 = vpow2.f32 %v1280_v24  ;;  %7214 = vmatpush3.bf16.msra.mxu0 %v7213_v22  ;;  %v1250_v34 = vsub.f32 %v8310_v50, %v1196_v27  ;;  %2117 = vadd.xlane.f32.xlu0 %v2116_v62 }
 0x55f   :  { %v1208_v45 = vpop.xlane.xlu1 %1207  ;;  %6638 = vmatprep.subr.mxu0 %v7796_v4  ;;  %6613 = vmatprep.mubr.msk.f32.mxu0 %vm7795_vm0, %v7796_v4  ;;  %7538 = vpow2.f32 %v1284_v44 }
 0x560   :  { %v7531_v51 = vpop.eup %7530  ;;  %v1282_v25 = vmul.f32 1.442695, %v1250_v34  ;;  %v1254_v29 = vsub.f32 %v8324_v63, %v1208_v45 }
 0x561   :  { %6626 = vmatmul.mubr.msk.f32.vlgmr.msra.gmra.mrb[40].mxu1 %vm1168_vm8, %v7531_v51  ;;  %v2125_v37 = vsel %vm1168_vm8, %v7531_v51, 0.0 }
 0x562   :  { %7540 = vpow2.f32 %v1282_v25  ;;  %v1290_v43 = vmul.f32 1.442695, %v1254_v29  ;;  %6639 = vmatpush3.msk.msra.mxu0 %vm1331_vm7, %v8336_v5  ;;  %7217 = vmatpush3.bf16.msra.mxu1 %v7216_v36 }
 0x563   :  { %2126 = vadd.xlane.f32.xlu1 %v2125_v37  ;;  %v1211_v50 = vpop.xlane.xlu0 %1210  ;;  %v1202_v47 = vpop.xlane.xlu1 %1201  ;;  %6653 = vmatprep.subr.mxu1 %v7796_v4 }
 0x564   :  { %v7533_v48 = vpop.eup %7532  ;;  %v1255_v49 = vsub.f32 %v8330_v7, %v1211_v50  ;;  %v1252_v63 = vsub.f32 %v8318_v56, %v1202_v47  ;;  %6628 = vmatprep.mubr.msk.f32.mxu1 %vm7795_vm0, %v7796_v4  ;;  %7218 = vmatprep.subr.bf16.mxu0 %v7794_v0  ;;  %7542 = vpow2.f32 %v1290_v43  ;;  %v7421_v56 = vunpack.i.h.bf16 %v8376_v54 }
 0x565   :  { %v7535_v53 = vpop.eup %7534  ;;  %6614 = vmatmul.mubr.msk.f32.gmra.mrb[36].mxu0 %vm1168_vm8, %v7533_v48  ;;  %v2119_v5 = vsel %vm1168_vm8, %v7533_v48, 0.0  ;;  %v7431_v47 = vunpack.i.h.bf16 %v8388_v9 }
 0x566   :  { %v1292_v55 = vmul.f32 1.442695, %v1255_v49  ;;  %v1286_v61 = vmul.f32 1.442695, %v1252_v63  ;;  %6654 = vmatpush3.msk.msra.mxu1 %vm1331_vm7, %v8348_v11  ;;  %2120 = vadd.xlane.f32.xlu0 %v2119_v5  ;;  %v2122_v7 = vsel %vm1175_vm9, %v7535_v53, 0.0  ;;  %v7219_v58 = vpack.c.bf16 %v7421_v56, %v7420_v2 }
 0x567   :  { %2123 = vadd.xlane.f32.xlu1 %v2122_v7  ;;  %v1205_v1 = vpop.xlane.xlu1 %1204  ;;  %v1217_v10 = vpop.xlane.xlu0 %1216  ;;  %6616 = vmatprep.mubr.msk.f32.mxu0 %vm7795_vm0, %v7796_v4 }
 0x568   :  { %v7537_v12 = vpop.eup %7536  ;;  %v1253_v14 = vsub.f32 %v8328_v3, %v1205_v1  ;;  %v1257_v16 = vsub.f32 %v8338_v60, %v1217_v10  ;;  %7221 = vmatprep.subr.bf16.mxu1 %v7794_v0  ;;  %7544 = vpow2.f32 %v1286_v61  ;;  %v7426_v3 = vunpack.i.h.bf16 %v8386_v6 }
 0x569   :  { %6617 = vmatmul.mubr.msk.f32.gmra.mrb[38].mxu0 %vm1168_vm8, %v7535_v53  ;;  %6629 = vmatmul.mubr.msk.f32.gmra.mrb[42].mxu1 %vm1168_vm8, %v7537_v12  ;;  %v2128_v11 = vsel %vm1168_vm8, %v7537_v12, 0.0  ;;  %v7539_v54 = vpop.eup %7538  ;;  %7546 = vpow2.f32 %v1292_v55 }
 0x56a   :  { %v1288_v35 = vmul.f32 1.442695, %v1253_v14  ;;  %2129 = vadd.xlane.f32.xlu0 %v2128_v11  ;;  %6631 = vmatprep.mubr.msk.f32.mxu1 %vm7795_vm0, %v7796_v4  ;;  %v1296_v60 = vmul.f32 1.442695, %v1257_v16  ;;  %v2134_v24 = vsel %vm1168_vm8, %v7539_v54, 0.0 }
 0x56b   :  { %v1214_v15 = vpop.xlane.xlu1 %1213  ;;  %v1220_v40 = vpop.xlane.xlu0 %1219  ;;  %6640 = vmatprep.mubr.msk.f32.mxu0 %vm7795_vm0, %v7796_v4 }
 0x56c   :  { %v7541_v22 = vpop.eup %7540  ;;  %7548 = vpow2.f32 %v1288_v35  ;;  %v1256_v21 = vsub.f32 %v8340_v8, %v1214_v15  ;;  %v1258_v39 = vsub.f32 %v8346_v57, %v1220_v40  ;;  %v7222_v57 = vpack.c.bf16 %v7426_v3, %v7425_v19 }
 0x56d   :  { %6632 = vmatmul.mubr.msk.f32.gmra.mrb[44].mxu1 %vm1168_vm8, %v7541_v22  ;;  %6641 = vmatmul.mubr.msk.f32.vlgmr.msra.gmra.mrb[40].mxu0 %vm1168_vm8, %v7539_v54  ;;  %v2131_v44 = vsel %vm1175_vm9, %v7541_v22, 0.0  ;;  %7550 = vpow2.f32 %v1296_v60 }
 0x56e   :  { %v1294_v27 = vmul.f32 1.442695, %v1256_v21  ;;  %v1298_v62 = vmul.f32 1.442695, %v1258_v39  ;;  %7220 = vmatpush3.bf16.msra.mxu0 %v7219_v58  ;;  %2135 = vadd.xlane.f32.xlu0 %v2134_v24  ;;  %v8472_v8 = vpop.eup %7542 }
 0x56f   :  { %2132 = vadd.xlane.f32.xlu1 %v2131_v44  ;;  %v1226_v6 = vpop.xlane.xlu1 %1225  ;;  %v1223_v34 = vpop.xlane.xlu0 %1222  ;;  %6655 = vmatprep.mubr.msk.f32.mxu1 %vm7795_vm0, %v7796_v4 }
 0x570   :  { %7552 = vpow2.f32 %v1294_v27  ;;  %v1260_v45 = vsub.f32 %v8350_v13, %v1226_v6  ;;  %6668 = vmatprep.subr.mxu0 %v7796_v4  ;;  %6643 = vmatprep.mubr.msk.f32.mxu0 %vm7795_vm0, %v7796_v4  ;;  %v1259_v51 = vsub.f32 %v8356_v26, %v1223_v34  ;;  %v2110_v6 = vsel %vm1168_vm8, %v8404_v32, 0.0 }
 0x571   :  { %7554 = vpow2.f32 %v1298_v62  ;;  %6656 = vmatmul.mubr.msk.f32.vlgmr.msra.gmra.mrb[46].mxu1 %vm1168_vm8, %v8472_v8  ;;  %v2107_v62 = vsel %vm1168_vm8, %v8397_v17, 0.0  ;;  %v2143_v34 = vsel %vm1168_vm8, %v8472_v8, 0.0 }
 0x572   :  { %v1302_v36 = vmul.f32 1.442695, %v1260_v45  ;;  %6669 = vmatpush3.msk.msra.mxu0 %vm1331_vm7, %v8364_v41  ;;  %7223 = vmatpush3.bf16.msra.mxu1 %v7222_v57  ;;  %v7545_v25 = vpop.eup %7544  ;;  %v1300_v41 = vmul.f32 1.442695, %v1259_v51  ;;  %v2113_v57 = vsel %vm1175_vm9, %v8412_v20, 0.0 }
 0x573   :  { %v1229_v29 = vpop.xlane.xlu1 %1228  ;;  %v1232_v37 = vpop.xlane.xlu0 %1231  ;;  %6658 = vmatprep.mubr.msk.f32.mxu1 %vm7795_vm0, %v7796_v4  ;;  %7224 = vmatprep.subr.bf16.mxu0 %v7794_v0  ;;  %v2137_v43 = vsel %vm1168_vm8, %v7545_v25, 0.0 }
 0x574   :  { %v8486_v13 = vpop.eup %7546  ;;  %7556 = vpow2.f32 %v1302_v36  ;;  %6644 = vmatmul.mubr.msk.f32.gmra.mrb[42].mxu0 %vm1168_vm8, %v7545_v25  ;;  %v1261_v26 = vsub.f32 %v8358_v31, %v1229_v29  ;;  %6683 = vmatprep.subr.mxu1 %v7796_v4  ;;  %v7430_v31 = vunpack.i.l.bf16 %v8388_v9  ;;  %v1262_v49 = vsub.f32 %v8368_v46, %v1232_v37 }
 0x575   :  { %2138 = vadd.xlane.f32.xlu0 %v2137_v43  ;;  %6659 = vmatmul.mubr.msk.f32.gmra.mrb[48].mxu1 %vm1168_vm8, %v8486_v13  ;;  %7558 = vpow2.f32 %v1300_v41  ;;  %v2146_v45 = vsel %vm1168_vm8, %v8486_v13, 0.0 }
 0x576   :  { %v7549_v50 = vpop.eup %7548  ;;  %6646 = vmatprep.mubr.msk.f32.mxu0 %vm7795_vm0, %v7796_v4  ;;  %6661 = vmatprep.mubr.msk.f32.mxu1 %vm7795_vm0, %v7796_v4  ;;  %v1304_v48 = vmul.f32 1.442695, %v1261_v26  ;;  %v7225_v2 = vpack.c.bf16 %v7431_v47, %v7430_v31  ;;  %v1306_v46 = vmul.f32 1.442695, %v1262_v49  ;;  %v2354_v47 = vld [vmem:[%s9697_s4 + $0x8] sm:$0xff] }
 0x577   :  { %v1235_v63 = vpop.xlane.xlu0 %1234  ;;  %v2140_v53 = vsel %vm1175_vm9, %v7549_v50, 0.0  ;;  %v7551_v55 = vpop.eup %7550 }
 0x578   :  { %6647 = vmatmul.mubr.msk.f32.gmra.mrb[44].mxu0 %vm1168_vm8, %v7549_v50  ;;  %v1263_v5 = vsub.f32 %v8366_v42, %v1235_v63  ;;  %7560 = vpow2.f32 %v1304_v48  ;;  %v2152_v10 = vsel %vm1168_vm8, %v7551_v55, 0.0  ;;  %v2353_v50 = vld [vmem:[%s9697_s4] sm:$0xff] }
 0x579   :  { %2141 = vadd.xlane.f32.xlu0 %v2140_v53  ;;  %v1241_v61 = vpop.xlane.xlu1 %1240  ;;  %6670 = vmatprep.mubr.msk.f32.mxu0 %vm7795_vm0, %v7796_v4  ;;  %v7228_v49 = vpack.c.bf16 %v2354_v47, %v2353_v50 }
 0x57a   :  { %v8506_v7 = vpop.eup %7552  ;;  %v1308_v9 = vmul.f32 1.442695, %v1263_v5  ;;  %v1265_v14 = vsub.f32 %v8380_v59, %v1241_v61  ;;  %v2356_v61 = vld [vmem:[%s9697_s4 + $0x18] sm:$0xff] }
 0x57b   :  { %v7555_v56 = vpop.eup %7554  ;;  %6662 = vmatmul.mubr.msk.f32.gmra.mrb[50].mxu1 %vm1168_vm8, %v8506_v7  ;;  %v1238_v1 = vpop.xlane.xlu0 %1237  ;;  %v2149_v17 = vsel %vm1175_vm9, %v8506_v7, 0.0 }
 0x57c   :  { %7562 = vpow2.f32 %v1308_v9  ;;  %6671 = vmatmul.mubr.msk.f32.vlgmr.msra.gmra.mrb[46].mxu0 %vm1168_vm8, %v7551_v55  ;;  %v1264_v42 = vsub.f32 %v8374_v52, %v1238_v1  ;;  %v2155_v12 = vsel %vm1168_vm8, %v7555_v56, 0.0  ;;  %6685 = vmatprep.mubr.msk.f32.mxu1 %vm7795_vm0, %v7796_v4  ;;  %v1312_v59 = vmul.f32 1.442695, %v1265_v14  ;;  %v2355_v55 = vld [vmem:[%s9697_s4 + $0x10] sm:$0xff] }
 0x57d   :  { %7226 = vmatpush3.bf16.msra.mxu0 %v7225_v2  ;;  %2153 = vadd.xlane.f32.xlu0 %v2152_v10  ;;  %v2013_v54 = vpop.permute.xlu1 %2012  ;;  %7564 = vpow2.f32 %v1306_v46  ;;  %v7231_v7 = vpack.c.bf16 %v2356_v61, %v2355_v55 }
 0x57e   :  { %v7557_v16 = vpop.eup %7556  ;;  %v1310_v11 = vmul.f32 1.442695, %v1264_v42  ;;  %2156 = vadd.xlane.f32.xlu1 %v2155_v12  ;;  %6673 = vmatprep.mubr.msk.f32.mxu0 %vm7795_vm0, %v7796_v4 }
 0x57f   :  { %6698 = vmatprep.subr.mxu0 %v7796_v4  ;;  %v1914_v52 = vpop.permute.xlu0 %1913  ;;  %v2161_v35 = vsel %vm1168_vm8, %v7557_v16, 0.0  ;;  %v7559_v58 = vpop.eup %7558 }
 0x580   :  { %7566 = vpow2.f32 %v1310_v11  ;;  %6674 = vmatmul.mubr.msk.f32.gmra.mrb[48].mxu0 %vm1168_vm8, %v7555_v56  ;;  %6684 = vmatpush3.msk.msra.mxu1 %vm1331_vm7, %v1914_v52  ;;  %v2158_v24 = vsel %vm1175_vm9, %v7559_v58, 0.0 }
 0x581   :  { %6699 = vmatpush3.msk.msra.mxu0 %vm1331_vm7, %v2013_v54  ;;  %2162 = vadd.xlane.f32.xlu0 %v2161_v35  ;;  %7568 = vpow2.f32 %v1312_v59 }
 0x582   :  { %6686 = vmatmul.mubr.msk.f32.vlgmr.msra.gmra.mrb[52].mxu1 %vm1168_vm8, %v7557_v16  ;;  %6676 = vmatprep.mubr.msk.f32.mxu0 %vm7795_vm0, %v7796_v4  ;;  %v7561_v3 = vpop.eup %7560 }
 0x583   :  { %6688 = vmatprep.mubr.msk.f32.mxu1 %vm7795_vm0, %v7796_v4  ;;  %7227 = vmatprep.subr.bf16.mxu1 %v7794_v0  ;;  %v2164_v19 = vsel %vm1168_vm8, %v7561_v3, 0.0 }
 0x584   :  { %6677 = vmatmul.mubr.msk.f32.gmra.mrb[50].mxu0 %vm1168_vm8, %v7559_v58  ;;  %7233 = vmatprep.subr.bf16.mxu0 %v7794_v0 }
 0x585   :  { %6700 = vmatprep.mubr.msk.f32.mxu0 %vm7795_vm0, %v7796_v4  ;;  %7229 = vmatpush3.bf16.msra.mxu1 %v7228_v49 }
 0x586   :  { %v7563_v60 = vpop.eup %7562  ;;  %6689 = vmatmul.mubr.msk.f32.gmra.mrb[54].mxu1 %vm1168_vm8, %v7561_v3  ;;  %7230 = vmatprep.subr.bf16.mxu1 %v7794_v0 }
 0x587   :  { %v2170_v15 = vsel %vm1168_vm8, %v7563_v60, 0.0  ;;  %6691 = vmatprep.mubr.msk.f32.mxu1 %vm7795_vm0, %v7796_v4  ;;  %v7565_v40 = vpop.eup %7564 }
 0x588   :  { %6701 = vmatmul.mubr.msk.f32.vlgmr.msra.gmra.mrb[52].mxu0 %vm1168_vm8, %v7563_v60  ;;  %2171 = vadd.xlane.f32.xlu0 %v2170_v15  ;;  %v2167_v44 = vsel %vm1175_vm9, %v7565_v40, 0.0 }
 0x589   :  { %6703 = vmatprep.mubr.msk.f32.mxu0 %vm7795_vm0, %v7796_v4  ;;  %7232 = vmatpush3.bf16.msra.mxu1 %v7231_v7 }
 0x58a   :  { %v7567_v22 = vpop.eup %7566  ;;  %6692 = vmatmul.mubr.msk.f32.gmra.mrb[56].mxu1 %vm1168_vm8, %v7565_v40  ;;  %7337 = vmatprep.subr.bf16.mxu1 %v7794_v0 }
 0x58b   :  { %v2173_v21 = vsel %vm1168_vm8, %v7567_v22, 0.0  ;;  %6717 = vmatprep.mubr.msk.f32.mxu1 %vm7795_vm0, %v7796_v4  ;;  %v7569_v39 = vpop.eup %7568 }
 0x58c   :  { %6704 = vmatmul.mubr.msk.f32.gmra.mrb[54].mxu0 %vm1168_vm8, %v7567_v22  ;;  %2165 = vadd.xlane.f32.xlu0 %v2164_v19  ;;  %v2176_v27 = vsel %vm1175_vm9, %v7569_v39, 0.0 }
 0x58d   :  { %2174 = vadd.xlane.f32.xlu1 %v2173_v21  ;;  %6706 = vmatprep.mubr.msk.f32.mxu0 %vm7795_vm0, %v7796_v4 }
 0x590   :  { %6707 = vmatmul.mubr.msk.f32.gmra.mrb[56].mxu0 %vm1168_vm8, %v7569_v39  ;;  %2159 = vadd.xlane.f32.xlu0 %v2158_v24 }
 0x591   :  { %2168 = vadd.xlane.f32.xlu1 %v2167_v44  ;;  %6740 = vmatprep.mubr.msk.f32.mxu0 %vm7795_vm0, %v7796_v4 }
 0x594   :  { %2177 = vadd.xlane.f32.xlu0 %v2176_v27 }
 0x595   :  { %2108 = vadd.xlane.f32.xlu1 %v2107_v62 }
 0x598   :  { %2111 = vadd.xlane.f32.xlu0 %v2110_v6 }
 0x599   :  { %2144 = vadd.xlane.f32.xlu1 %v2143_v34 }
 0x59c   :  { %2114 = vadd.xlane.f32.xlu0 %v2113_v57 }
 0x59d   :  { %2147 = vadd.xlane.f32.xlu1 %v2146_v45 }
 0x5a0   :  { %2150 = vadd.xlane.f32.xlu0 %v2149_v17 }
 0x5db   :  { %v8567_v51 = vpop.f32.mrb[34].mxu1 }
 0x5dc   :  { %v6597_v32 = vpop.f32.mrb[35].mxu1 }
 0x5df   :  { %v8569_v36 = vpop.f32.mrb[36].mxu1 }
 0x5e0   :  { %v6600_v8 = vpop.f32.mrb[37].mxu1 }
 0x5e3   :  { %v8571_v25 = vpop.f32.mrb[38].mxu1 }
 0x5e4   :  { %v6603_v29 = vpop.f32.mrb[39].mxu1 }
 0x5eb   :  { %v2118_v37 = vpop.xlane.xlu0 %2117 }
 0x5ec   :  { %7570 = vrcp.f32 %v2118_v37 }
 0x5f0   :  { %v2127_v13 = vpop.xlane.xlu1 %2126 }
 0x5f1   :  { %7572 = vrcp.f32 %v2127_v13 }
 0x5f3   :  { %v2121_v20 = vpop.xlane.xlu0 %2120 }
 0x5f4   :  { %7574 = vrcp.f32 %v2121_v20  ;;  %v2124_v5 = vpop.xlane.xlu1 %2123 }
 0x5f6   :  { %v7571_v31 = vpop.eup %7570 }
 0x5f7   :  { %v2130_v26 = vpop.xlane.xlu0 %2129 }
 0x5f8   :  { %7576 = vrcp.f32 %v2130_v26 }
 0x5f9   :  { %7578 = vrcp.f32 %v2124_v5 }
 0x5fb   :  { %v2136_v43 = vpop.xlane.xlu0 %2135  ;;  %v7573_v9 = vpop.eup %7572 }
 0x5fc   :  { %7580 = vrcp.f32 %v2136_v43  ;;  %v2133_v42 = vpop.xlane.xlu1 %2132 }
 0x5fd   :  { %7582 = vrcp.f32 %v2133_v42 }
 0x5fe   :  { %v7575_v10 = vpop.eup %7574 }
 0x602   :  { %v2139_v41 = vpop.xlane.xlu0 %2138  ;;  %v7577_v54 = vpop.eup %7576 }
 0x603   :  { %7584 = vrcp.f32 %v2139_v41  ;;  %v7579_v60 = vpop.eup %7578 }
 0x606   :  { %v2142_v2 = vpop.xlane.xlu0 %2141  ;;  %v7581_v15 = vpop.eup %7580 }
 0x607   :  { %7586 = vrcp.f32 %v2142_v2  ;;  %v7583_v27 = vpop.eup %7582 }
 0x60a   :  { %v2154_v11 = vpop.xlane.xlu0 %2153 }
 0x60b   :  { %7588 = vrcp.f32 %v2154_v11  ;;  %v2157_v57 = vpop.xlane.xlu1 %2156 }
 0x60c   :  { %7590 = vrcp.f32 %v2157_v57 }
 0x60d   :  { %v7585_v45 = vpop.eup %7584 }
 0x60e   :  { %v2163_v44 = vpop.xlane.xlu0 %2162 }
 0x60f   :  { %7592 = vrcp.f32 %v2163_v44 }
 0x611   :  { %v7587_v26 = vpop.eup %7586 }
 0x615   :  { %v2172_v17 = vpop.xlane.xlu0 %2171 }
 0x616   :  { %7594 = vrcp.f32 %v2172_v17 }
 0x619   :  { %v2166_v50 = vpop.xlane.xlu0 %2165 }
 0x61a   :  { %7596 = vrcp.f32 %v2166_v50 }
 0x61d   :  { %v2160_v7 = vpop.xlane.xlu0 %2159 }
 0x621   :  { %v2178_v11 = vpop.xlane.xlu0 %2177 }
 0x630   :  { %v1499_v48 = vpop.f32.mrb[34].mxu0 }
 0x631   :  { %v2230_v63 = vmul.f32 %v7571_v31, %v1499_v48  ;;  %v6612_v53 = vpop.f32.mrb[35].mxu0  ;;  %v7589_v31 = vpop.eup %7588 }
 0x632   :  { %v7591_v55 = vpop.eup %7590 }
 0x633   :  { %2254 = vrot.lane.b32.xlu1 %v2230_v63, %s7802_s17  ;;  %v2175_v63 = vpop.xlane.xlu1 %2174  ;;  %v7593_v2 = vpop.eup %7592 }
 0x634   :  { %v1598_v56 = vpop.f32.mrb[40].mxu1  ;;  %7598 = vrcp.f32 %v2175_v63 }
 0x635   :  { %v2233_v46 = vmul.f32 %v7573_v9, %v1598_v56  ;;  %v6627_v1 = vpop.f32.mrb[41].mxu1  ;;  %7600 = vrcp.f32 %v2160_v7 }
 0x637   :  { %2266 = vrot.lane.b32.xlu0 %v2233_v46, %s7803_s2  ;;  %v2169_v1 = vpop.xlane.xlu1 %2168 }
 0x638   :  { %v1504_v12 = vpop.f32.mrb[36].mxu0  ;;  %7602 = vrcp.f32 %v2169_v1 }
 0x639   :  { %v2231_v14 = vmul.f32 %v7575_v10, %v1504_v12  ;;  %v6615_v16 = vpop.f32.mrb[37].mxu0  ;;  %7604 = vrcp.f32 %v2178_v11 }
 0x63b   :  { %2256 = vrot.lane.b32.xlu1 %v2231_v14, %s7802_s17 }
 0x63c   :  { %v1509_v52 = vpop.f32.mrb[38].mxu0  ;;  %v1603_v35 = vpop.f32.mrb[42].mxu1 }
 0x63d   :  { %v2234_v59 = vmul.f32 %v7577_v54, %v1603_v35  ;;  %v6618_v58 = vpop.f32.mrb[39].mxu0  ;;  %v6630_v3 = vpop.f32.mrb[43].mxu1  ;;  %v2232_v19 = vmul.f32 %v7579_v60, %v1509_v52 }
 0x63e   :  { %v7595_v52 = vpop.eup %7594 }
 0x63f   :  { %2268 = vrot.lane.b32.xlu0 %v2234_v59, %s7803_s2  ;;  %v7597_v60 = vpop.eup %7596 }
 0x640   :  { %v1608_v40 = vpop.f32.mrb[44].mxu1  ;;  %v1697_v22 = vpop.f32.mrb[40].mxu0 }
 0x641   :  { %v2236_v21 = vmul.f32 %v7581_v15, %v1697_v22  ;;  %v6633_v39 = vpop.f32.mrb[45].mxu1  ;;  %v6642_v24 = vpop.f32.mrb[41].mxu0  ;;  %v2235_v6 = vmul.f32 %v7583_v27, %v1608_v40 }
 0x642   :  { %v7599_v40 = vpop.eup %7598 }
 0x643   :  { %2258 = vrot.lane.b32.xlu0 %v2232_v19, %s7802_s17  ;;  %2278 = vrot.lane.b32.xlu1 %v2236_v21, %s7804_s18  ;;  %v7601_v24 = vpop.eup %7600 }
 0x644   :  { %v8593_v62 = vpop.f32.mrb[46].mxu1  ;;  %v7603_v44 = vpop.eup %7602 }
 0x645   :  { %v6657_v34 = vpop.f32.mrb[47].mxu1 }
 0x647   :  { %v1702_v32 = vpop.f32.mrb[42].mxu0  ;;  %2270 = vrot.lane.b32.xlu0 %v2235_v6, %s7803_s2 }
 0x648   :  { %v2237_v8 = vmul.f32 %v7585_v45, %v1702_v32  ;;  %v6645_v29 = vpop.f32.mrb[43].mxu0  ;;  %v8596_v37 = vpop.f32.mrb[48].mxu1 }
 0x649   :  { %v6660_v20 = vpop.f32.mrb[49].mxu1  ;;  %v7605_v45 = vpop.eup %7604 }
 0x64a   :  { %2280 = vrot.lane.b32.xlu1 %v2237_v8, %s7804_s18  ;;  %v2109_v32 = vpop.xlane.xlu1 %2108  ;;  %v2112_v8 = vpop.xlane.xlu0 %2111 }
 0x64b   :  { %v1707_v13 = vpop.f32.mrb[44].mxu0  ;;  %7606 = vrcp.f32 %v2109_v32 }
 0x64c   :  { %v2238_v43 = vmul.f32 %v7587_v26, %v1707_v13  ;;  %v6648_v41 = vpop.f32.mrb[45].mxu0  ;;  %7608 = vrcp.f32 %v2112_v8 }
 0x64e   :  { %2282 = vrot.lane.b32.xlu1 %v2238_v43, %s7804_s18  ;;  %v8600_v47 = vpop.f32.mrb[50].mxu1  ;;  %v2145_v29 = vpop.xlane.xlu1 %2144 }
 0x64f   :  { %v1895_v48 = vpop.f32.mrb[46].mxu0  ;;  %v6663_v49 = vpop.f32.mrb[51].mxu1  ;;  %7610 = vrcp.f32 %v2145_v29 }
 0x650   :  { %v2242_v53 = vmul.f32 %v7589_v31, %v1895_v48  ;;  %v6672_v5 = vpop.f32.mrb[47].mxu0  ;;  %v2115_v20 = vpop.xlane.xlu0 %2114 }
 0x651   :  { %7612 = vrcp.f32 %v2115_v20 }
 0x652   :  { %2301 = vrot.lane.b32.xlu0 %v2242_v53, %s7802_s17  ;;  %v2148_v26 = vpop.xlane.xlu1 %2147 }
 0x653   :  { %v1900_v61 = vpop.f32.mrb[48].mxu0  ;;  %7614 = vrcp.f32 %v2148_v26 }
 0x654   :  { %v2243_v9 = vmul.f32 %v7591_v55, %v1900_v61  ;;  %v6675_v56 = vpop.f32.mrb[49].mxu0  ;;  %v2151_v43 = vpop.xlane.xlu0 %2150 }
 0x655   :  { %v1994_v46 = vpop.f32.mrb[52].mxu1  ;;  %v7607_v41 = vpop.eup %7606  ;;  %7616 = vrcp.f32 %v2151_v43 }
 0x656   :  { %v2245_v42 = vmul.f32 %v7593_v2, %v1994_v46  ;;  %v6687_v10 = vpop.f32.mrb[53].mxu1  ;;  %2303 = vrot.lane.b32.xlu0 %v2243_v9, %s7802_s17  ;;  %v2227_v31 = vmul.f32 %v7607_v41, %v8567_v51  ;;  %v7609_v5 = vpop.eup %7608 }
 0x657   :  { %v1905_v12 = vpop.f32.mrb[50].mxu0  ;;  %v2228_v61 = vmul.f32 %v7609_v5, %v8569_v36 }
 0x658   :  { %2313 = vrot.lane.b32.xlu1 %v2245_v42, %s7803_s2  ;;  %v6678_v14 = vpop.f32.mrb[51].mxu0  ;;  %v2244_v6 = vmul.f32 %v7601_v24, %v1905_v12 }
 0x659   :  { %v1999_v16 = vpop.f32.mrb[54].mxu1  ;;  %v7611_v10 = vpop.eup %7610 }
 0x65a   :  { %v6690_v54 = vpop.f32.mrb[55].mxu1  ;;  %v2246_v19 = vmul.f32 %v7597_v60, %v1999_v16  ;;  %v2239_v16 = vmul.f32 %v7611_v10, %v8593_v62 }
 0x65b   :  { %v2093_v35 = vpop.f32.mrb[52].mxu0  ;;  %v7613_v12 = vpop.eup %7612 }
 0x65c   :  { %v2248_v59 = vmul.f32 %v7595_v52, %v2093_v35  ;;  %v6702_v58 = vpop.f32.mrb[53].mxu0  ;;  %v2229_v11 = vmul.f32 %v7613_v12, %v8571_v25 }
 0x65d   :  { %v2004_v3 = vpop.f32.mrb[56].mxu1  ;;  %v7615_v58 = vpop.eup %7614 }
 0x65e   :  { %v6693_v15 = vpop.f32.mrb[57].mxu1  ;;  %2325 = vrot.lane.b32.xlu1 %v2248_v59, %s7804_s18  ;;  %v2247_v34 = vmul.f32 %v7603_v44, %v2004_v3 }
 0x65f   :  { %v2098_v22 = vpop.f32.mrb[54].mxu0  ;;  %v2240_v15 = vmul.f32 %v7615_v58, %v8596_v37  ;;  %v7617_v44 = vpop.eup %7616 }
 0x660   :  { %v2249_v21 = vmul.f32 %v7599_v40, %v2098_v22  ;;  %v6705_v39 = vpop.f32.mrb[55].mxu0  ;;  %v2241_v37 = vmul.f32 %v7617_v44, %v8600_v47 }
 0x662   :  { %2315 = vrot.lane.b32.xlu1 %v2246_v19, %s7803_s2  ;;  %2327 = vrot.lane.b32.xlu0 %v2249_v21, %s7804_s18 }
 0x663   :  { %v2103_v27 = vpop.f32.mrb[56].mxu0 }
 0x664   :  { %v6708_v57 = vpop.f32.mrb[57].mxu0  ;;  %v2250_v17 = vmul.f32 %v7605_v45, %v2103_v27 }
 0x666   :  { %2305 = vrot.lane.b32.xlu1 %v2244_v6, %s7802_s17  ;;  %2317 = vrot.lane.b32.xlu0 %v2247_v34, %s7803_s2 }
 0x66a   :  { %2329 = vrot.lane.b32.xlu1 %v2250_v17, %s7804_s18 }
 0x6a5   :  { %v2255_v13 = vpop.permute.xlu1 %2254 }
 0x6a6   :  { %v2287_v49 = vsel %vm389_vm5, %v2227_v31, %v2255_v13  ;;  %v5985_v13 = vld [vmem:[%s9698_s7] ss:$0 sm:$0xff] }
 0x6a9   :  { %v2267_v48 = vpop.permute.xlu0 %2266 }
 0x6aa   :  { %v2291_v63 = vsel %vm2290_vm10, %v2287_v49, %v2267_v48 }
 0x6ad   :  { %v2257_v50 = vpop.permute.xlu1 %2256 }
 0x6ae   :  { %v2288_v51 = vsel %vm389_vm5, %v2228_v61, %v2257_v50 }
 0x6b1   :  { %v2269_v7 = vpop.permute.xlu0 %2268 }
 0x6b2   :  { %v2292_v9 = vsel %vm2290_vm10, %v2288_v51, %v2269_v7 }
 0x6b5   :  { %v2279_v53 = vpop.permute.xlu1 %2278  ;;  %v2259_v46 = vpop.permute.xlu0 %2258 }
 0x6b6   :  { %v2295_v55 = vsel %vm2294_vm11, %v2291_v63, %v2279_v53  ;;  %v2289_v3 = vsel %vm389_vm5, %v2229_v11, %v2259_v46 }
 0x6b7   :  { %6718 = vmatmul.mubr.msk.f32.vlgmr.msra.gmra.mrb[58].mxu1 %vm154_vm2, %v2295_v55 }
 0x6b8   :  { %6720 = vmatprep.mubr.msk.f32.mxu1 %vm7795_vm0, %v7796_v4 }
 0x6b9   :  { %v2271_v1 = vpop.permute.xlu0 %2270 }
 0x6ba   :  { %v2293_v40 = vsel %vm2290_vm10, %v2289_v3, %v2271_v1 }
 0x6bc   :  { %v2281_v56 = vpop.permute.xlu1 %2280 }
 0x6bd   :  { %v2296_v2 = vsel %vm2294_vm11, %v2292_v9, %v2281_v56 }
 0x6be   :  { %6721 = vmatmul.mubr.msk.f32.gmra.mrb[60].mxu1 %vm154_vm2, %v2296_v2 }
 0x6bf   :  { %6723 = vmatprep.mubr.msk.f32.mxu1 %vm7795_vm0, %v7796_v4 }
 0x6c0   :  { %v2283_v42 = vpop.permute.xlu1 %2282 }
 0x6c1   :  { %v2297_v62 = vsel %vm2294_vm11, %v2293_v40, %v2283_v42 }
 0x6c4   :  { %v2302_v36 = vpop.permute.xlu0 %2301 }
 0x6c5   :  { %v2334_v54 = vsel %vm389_vm5, %v2239_v16, %v2302_v36 }
 0x6c8   :  { %v2304_v52 = vpop.permute.xlu0 %2303 }
 0x6c9   :  { %v2335_v25 = vsel %vm389_vm5, %v2240_v15, %v2304_v52  ;;  %v2541_v15 = vld [vmem:[%s9699_s5 + $0x8] sm:$0xff] }
 0x6ca   :  { %v2314_v14 = vpop.permute.xlu1 %2313 }
 0x6cb   :  { %v2337_v35 = vsel %vm2290_vm10, %v2334_v54, %v2314_v14 }
 0x6d0   :  { %v2326_v59 = vpop.permute.xlu1 %2325 }
 0x6d1   :  { %v2340_v60 = vsel %vm2294_vm11, %v2337_v35, %v2326_v59 }
 0x6d2   :  { %v2346_v22 = vrot.slane %v2340_v60, 7  ;;  %v2540_v60 = vld [vmem:[%s9699_s5] sm:$0xff] }
 0x6d3   :  { %v7234_v40 = vpack.c.bf16 %v2541_v15, %v2540_v60 }
 0x6d4   :  { %v2316_v19 = vpop.permute.xlu1 %2315  ;;  %v2328_v21 = vpop.permute.xlu0 %2327  ;;  %v2352_v39 = vsel %vm1331_vm7, %v2297_v62, %v2346_v22 }
 0x6d5   :  { %v2338_v24 = vsel %vm2290_vm10, %v2335_v25, %v2316_v19  ;;  %6724 = vmatmul.mubr.msk.f32.gmra.mrb[62].mxu1 %vm154_vm2, %v2352_v39  ;;  %7235 = vmatpush3.bf16.msra.mxu0 %v7234_v40  ;;  %v2542_v19 = vld [vmem:[%s9699_s5 + $0x10] sm:$0xff] }
 0x6d6   :  { %v2341_v27 = vsel %vm2294_vm11, %v2338_v24, %v2328_v21  ;;  %6726 = vmatprep.mubr.msk.f32.mxu1 %vm7795_vm0, %v7796_v4  ;;  %7236 = vmatprep.subr.bf16.mxu0 %v7794_v0  ;;  %v2543_v21 = vld [vmem:[%s9699_s5 + $0x18] sm:$0xff] }
 0x6d7   :  { %v2347_v6 = vrot.slane %v2341_v27, 7  ;;  %v7237_v24 = vpack.c.bf16 %v2543_v21, %v2542_v19 }
 0x6d8   :  { %v2306_v34 = vpop.permute.xlu1 %2305  ;;  %v2318_v45 = vpop.permute.xlu0 %2317 }
 0x6d9   :  { %v2336_v57 = vsel %vm389_vm5, %v2241_v37, %v2306_v34  ;;  %v2348_v17 = vsel %vm1331_vm7, %v2346_v22, %v2347_v6  ;;  %7238 = vmatpush3.bf16.msra.mxu0 %v7237_v24 }
 0x6da   :  { %6727 = vmatmul.mubr.msk.f32.gmra.mrb[64].mxu1 %vm154_vm2, %v2348_v17  ;;  %v2339_v32 = vsel %vm2290_vm10, %v2336_v57, %v2318_v45  ;;  %7239 = vmatprep.subr.bf16.mxu0 %v7794_v0 }
 0x6db   :  { %6729 = vmatprep.mubr.msk.f32.mxu1 %vm7795_vm0, %v7796_v4 }
 0x6dc   :  { %v2330_v8 = vpop.permute.xlu1 %2329 }
 0x6dd   :  { %v2342_v29 = vsel %vm2294_vm11, %v2339_v32, %v2330_v8 }
 0x6de   :  { %v2349_v20 = vrot.slane %v2342_v29, 7 }
 0x6e0   :  { %v2350_v47 = vsel %vm1331_vm7, %v2347_v6, %v2349_v20 }
 0x6e1   :  { %6730 = vmatmul.mubr.msk.f32.gmra.mrb[66].mxu1 %vm154_vm2, %v2350_v47 }
 0x6e2   :  { %6769 = vmatprep.mubr.msk.f32.mxu1 %vm7795_vm0, %v7796_v4 }
 0x78a   :  { %v2436_v26 = vpop.f32.mrb[58].mxu1 }
 0x78b   :  { %v2460_v43 = vadd.f32 %v2436_v26, %v7910_v18  ;;  %v6719_v41 = vpop.f32.mrb[59].mxu1 }
 0x78d   :  { %v8657_v50 = vadd.f32 %v5985_v13, %v2460_v43 }
 0x78f   :  { %v2475_v31 = vsel %vm154_vm2, %v8657_v50, 0.0 }
 0x790   :  { %2476 = vadd.xlane.f32.xlu0 %v2475_v31 }
 0x791   :  { %v2441_v48 = vpop.f32.mrb[60].mxu1 }
 0x792   :  { %v2461_v49 = vadd.f32 %v2441_v48, %v7917_v23  ;;  %v6722_v63 = vpop.f32.mrb[61].mxu1 }
 0x794   :  { %v8662_v53 = vadd.f32 %v5985_v13, %v2461_v49 }
 0x796   :  { %v2478_v5 = vsel %vm154_vm2, %v8662_v53, 0.0 }
 0x797   :  { %2479 = vadd.xlane.f32.xlu1 %v2478_v5 }
 0x7a8   :  { %v2446_v55 = vpop.f32.mrb[62].mxu1 }
 0x7a9   :  { %v2462_v18 = vadd.f32 %v2446_v55, %v7924_v28  ;;  %v6725_v61 = vpop.f32.mrb[63].mxu1 }
 0x7ab   :  { %v8667_v7 = vadd.f32 %v5985_v13, %v2462_v18 }
 0x7ad   :  { %v2451_v51 = vpop.f32.mrb[64].mxu1  ;;  %v2481_v9 = vsel %vm154_vm2, %v8667_v7, 0.0 }
 0x7ae   :  { %v2463_v56 = vadd.f32 %v2451_v51, %v7931_v33  ;;  %2482 = vadd.xlane.f32.xlu0 %v2481_v9  ;;  %v6728_v23 = vpop.f32.mrb[65].mxu1 }
 0x7b0   :  { %v8672_v2 = vadd.f32 %v5985_v13, %v2463_v56 }
 0x7b2   :  { %v2484_v46 = vsel %vm154_vm2, %v8672_v2, 0.0 }
 0x7b3   :  { %2485 = vadd.xlane.f32.xlu0 %v2484_v46 }
 0x7b4   :  { %v2456_v1 = vpop.f32.mrb[66].mxu1 }
 0x7b5   :  { %v2464_v28 = vadd.f32 %v2456_v1, %v7938_v38  ;;  %v6731_v42 = vpop.f32.mrb[67].mxu1 }
 0x7b7   :  { %v8677_v36 = vadd.f32 %v5985_v13, %v2464_v28 }
 0x7b9   :  { %v2487_v10 = vsel %vm167_vm3, %v8677_v36, 0.0 }
 0x7ba   :  { %2488 = vadd.xlane.f32.xlu1 %v2487_v10 }
 0x81d   :  { %v2477_v12 = vpop.xlane.xlu0 %2476 }
 0x81e   :  { %v2490_v33 = vmul.f32 0.03125, %v2477_v12  ;;  %v2699_v12 = vld [vmem:[%s9699_s5 + $0x20] sm:$0xff] }
 0x820   :  { %v2495_v14 = vsub.f32 %v8657_v50, %v2490_v33  ;;  %v2700_v33 = vld [vmem:[%s9699_s5 + $0x28] sm:$0xff] }
 0x822   :  { %v2500_v16 = vmul.f32 %v2495_v14, %v2495_v14 }
 0x824   :  { %v2480_v11 = vpop.xlane.xlu1 %2479  ;;  %v2505_v54 = vsel %vm154_vm2, %v2500_v16, 0.0  ;;  %v2701_v16 = vld [vmem:[%s9699_s5 + $0x30] sm:$0xff] }
 0x825   :  { %v2491_v52 = vmul.f32 0.03125, %v2480_v11  ;;  %2506 = vadd.xlane.f32.xlu0 %v2505_v54  ;;  %v2702_v11 = vld [vmem:[%s9699_s5 + $0x38] sm:$0xff] }
 0x826   :  { %v7243_v54 = vpack.c.bf16 %v2702_v11, %v2701_v16 }
 0x827   :  { %v2496_v35 = vsub.f32 %v8662_v53, %v2491_v52  ;;  %v5986_v52 = vld [vmem:[%s9696_s6 + $0x1] ss:$0 sm:$0xff] }
 0x829   :  { %v2501_v38 = vmul.f32 %v2496_v35, %v2496_v35 }
 0x82b   :  { %v2508_v59 = vsel %vm154_vm2, %v2501_v38, 0.0 }
 0x82c   :  { %2509 = vadd.xlane.f32.xlu1 %v2508_v59 }
 0x83b   :  { %v2483_v58 = vpop.xlane.xlu0 %2482 }
 0x83c   :  { %v2492_v3 = vmul.f32 0.03125, %v2483_v58 }
 0x83e   :  { %v2497_v22 = vsub.f32 %v8667_v7, %v2492_v3 }
 0x840   :  { %v2486_v62 = vpop.xlane.xlu0 %2485  ;;  %v2502_v25 = vmul.f32 %v2497_v22, %v2497_v22 }
 0x841   :  { %v2493_v39 = vmul.f32 0.03125, %v2486_v62 }
 0x842   :  { %v2511_v44 = vsel %vm154_vm2, %v2502_v25, 0.0 }
 0x843   :  { %v2498_v27 = vsub.f32 %v8672_v2, %v2493_v39  ;;  %2512 = vadd.xlane.f32.xlu0 %v2511_v44 }
 0x845   :  { %v2503_v37 = vmul.f32 %v2498_v27, %v2498_v27 }
 0x847   :  { %v2489_v6 = vpop.xlane.xlu1 %2488  ;;  %v2514_v34 = vsel %vm154_vm2, %v2503_v37, 0.0 }
 0x848   :  { %v2494_v57 = vmul.f32 0.03125, %v2489_v6  ;;  %2515 = vadd.xlane.f32.xlu1 %v2514_v34 }
 0x84a   :  { %v2499_v45 = vsub.f32 %v8677_v36, %v2494_v57 }
 0x84c   :  { %v2504_v17 = vmul.f32 %v2499_v45, %v2499_v45 }
 0x84e   :  { %v2517_v32 = vsel %vm167_vm3, %v2504_v17, 0.0 }
 0x84f   :  { %2518 = vadd.xlane.f32.xlu0 %v2517_v32 }
 0x8b2   :  { %v2507_v8 = vpop.xlane.xlu0 %2506 }
 0x8b3   :  { %v2520_v29 = vmul.f32 0.03125, %v2507_v8 }
 0x8b5   :  { %v2525_v20 = vadd.f32 1e-06, %v2520_v29 }
 0x8b7   :  { %7618 = vrsqrt.f32 %v2525_v20 }
 0x8b9   :  { %v2510_v47 = vpop.xlane.xlu1 %2509 }
 0x8ba   :  { %v2521_v26 = vmul.f32 0.03125, %v2510_v47 }
 0x8bc   :  { %v2526_v13 = vadd.f32 1e-06, %v2521_v26 }
 0x8be   :  { %7620 = vrsqrt.f32 %v2526_v13 }
 0x8c1   :  { %v7619_v43 = vpop.eup %7618 }
 0x8c2   :  { %v2535_v41 = vmul.f32 %v7619_v43, %v2495_v14  ;;  %v7240_v14 = vpack.c.bf16 %v2700_v33, %v2699_v12 }
 0x8c4   :  { %6741 = vmatmul.mubr.msk.f32.vlgmr.msra.gmra.mrb[58].mxu0 %vm154_vm2, %v2535_v41  ;;  %7339 = vmatpush3.bf16.xpose.msra.mxu1 %v7240_v14 }
 0x8c5   :  { %6743 = vmatprep.mubr.msk.f32.mxu0 %vm7795_vm0, %v7796_v4  ;;  %7241 = vmatpush3.bf16.xpose.msra.mxu0 %v7240_v14 }
 0x8c6   :  { %7242 = vmatprep.subr.bf16.mxu0 %v7794_v0  ;;  %7338 = vmatprep.subr.bf16.mxu1 %v7794_v0 }
 0x8c8   :  { %v7621_v31 = vpop.eup %7620 }
 0x8c9   :  { %v2536_v48 = vmul.f32 %v7621_v31, %v2496_v35 }
 0x8cb   :  { %6744 = vmatmul.mubr.msk.f32.gmra.mrb[60].mxu0 %vm154_vm2, %v2536_v48 }
 0x8cc   :  { %6746 = vmatprep.mubr.msk.f32.mxu0 %vm7795_vm0, %v7796_v4  ;;  %7340 = vmatpush3.bf16.xpose.msra.mxu1 %v7243_v54 }
 0x8cd   :  { %7244 = vmatpush3.bf16.xpose.msra.mxu0 %v7243_v54  ;;  %7251 = vmatprep.subr.bf16.mxu1 %v7794_v0 }
 0x8ce   :  { %7245 = vmatprep.subr.bf16.mxu0 %v7794_v0 }
 0x8d0   :  { %v2513_v49 = vpop.xlane.xlu0 %2512 }
 0x8d1   :  { %v2522_v63 = vmul.f32 0.03125, %v2513_v49 }
 0x8d3   :  { %v2527_v5 = vadd.f32 1e-06, %v2522_v63 }
 0x8d5   :  { %7622 = vrsqrt.f32 %v2527_v5  ;;  %v2516_v55 = vpop.xlane.xlu1 %2515 }
 0x8d6   :  { %v2523_v18 = vmul.f32 0.03125, %v2516_v55 }
 0x8d8   :  { %v2528_v61 = vadd.f32 1e-06, %v2523_v18 }
 0x8da   :  { %7624 = vrsqrt.f32 %v2528_v61 }
 0x8dc   :  { %v2519_v51 = vpop.xlane.xlu0 %2518 }
 0x8dd   :  { %v2524_v9 = vmul.f32 0.03125, %v2519_v51 }
 0x8df   :  { %v7623_v56 = vpop.eup %7622  ;;  %v2529_v23 = vadd.f32 1e-06, %v2524_v9 }
 0x8e0   :  { %v2537_v46 = vmul.f32 %v7623_v56, %v2497_v22 }
 0x8e1   :  { %7626 = vrsqrt.f32 %v2529_v23 }
 0x8e2   :  { %6747 = vmatmul.mubr.msk.f32.gmra.mrb[62].mxu0 %vm154_vm2, %v2537_v46 }
 0x8e3   :  { %6749 = vmatprep.mubr.msk.f32.mxu0 %vm7795_vm0, %v7796_v4 }
 0x8e4   :  { %v7625_v1 = vpop.eup %7624 }
 0x8e5   :  { %v2538_v28 = vmul.f32 %v7625_v1, %v2498_v27 }
 0x8e7   :  { %6750 = vmatmul.mubr.msk.f32.gmra.mrb[64].mxu0 %vm154_vm2, %v2538_v28 }
 0x8e8   :  { %6752 = vmatprep.mubr.msk.f32.mxu0 %vm7795_vm0, %v7796_v4 }
 0x8eb   :  { %v7627_v42 = vpop.eup %7626 }
 0x8ec   :  { %v2539_v10 = vmul.f32 %v7627_v42, %v2499_v45 }
 0x8ee   :  { %6753 = vmatmul.mubr.msk.f32.gmra.mrb[66].mxu0 %vm154_vm2, %v2539_v10 }
 0x8ef   :  { %6763 = vmatprep.mubr.msk.f32.mxu0 %vm7795_vm0, %v7796_v4 }
 0x997   :  { %v2630_v35 = vpop.f32.mrb[58].mxu0 }
 0x998   :  { %v2631_v38 = vadd.f32 %v5986_v52, %v2630_v35  ;;  %v6742_v59 = vpop.f32.mrb[59].mxu0 }
 0x99a   :  { %v2659_v58 = vmul.f32 0.044715, %v2631_v38  ;;  %v2654_v37 = vmul.f32 0.5, %v2631_v38 }
 0x99c   :  { %v2664_v3 = vmul.f32 %v2659_v58, %v2631_v38 }
 0x99e   :  { %v2669_v60 = vmul.f32 %v2664_v3, %v2631_v38  ;;  %v2635_v15 = vpop.f32.mrb[60].mxu0 }
 0x99f   :  { %v2636_v40 = vadd.f32 %v5986_v52, %v2635_v15  ;;  %v6745_v22 = vpop.f32.mrb[61].mxu0 }
 0x9a0   :  { %v2674_v62 = vadd.f32 %v2669_v60, %v2631_v38  ;;  %v5992_v60 = vld [vmem:[%s9698_s7 + $0x1] ss:$0 sm:$0xff] }
 0x9a1   :  { %v2660_v25 = vmul.f32 0.044715, %v2636_v40  ;;  %v2655_v8 = vmul.f32 0.5, %v2636_v40 }
 0x9a2   :  { %v2679_v19 = vmul.f32 0.7978846, %v2674_v62 }
 0x9a3   :  { %v2665_v21 = vmul.f32 %v2660_v25, %v2636_v40 }
 0x9a4   :  { %7628 = vtanh.f32 %v2679_v19 }
 0x9a5   :  { %v2670_v39 = vmul.f32 %v2665_v21, %v2636_v40 }
 0x9a7   :  { %v2675_v24 = vadd.f32 %v2670_v39, %v2636_v40 }
 0x9a9   :  { %v2680_v44 = vmul.f32 0.7978846, %v2675_v24 }
 0x9ab   :  { %7630 = vtanh.f32 %v2680_v44 }
 0x9ae   :  { %v7629_v27 = vpop.eup %7628 }
 0x9af   :  { %v2689_v6 = vadd.f32 1.0, %v7629_v27 }
 0x9b1   :  { %v2694_v34 = vmul.f32 %v2689_v6, %v2654_v37 }
 0x9b3   :  { %6764 = vmatmul.mubr.f32.vlgmr.msra.gmra.mrb[68].mxu0 %v2694_v34 }
 0x9b4   :  { %6766 = vmatprep.mubr.msk.f32.mxu0 %vm7795_vm0, %v7796_v4 }
 0x9b5   :  { %v7631_v57 = vpop.eup %7630  ;;  %v2640_v45 = vpop.f32.mrb[62].mxu0 }
 0x9b6   :  { %v2641_v17 = vadd.f32 %v5986_v52, %v2640_v45  ;;  %v6748_v32 = vpop.f32.mrb[63].mxu0  ;;  %v2690_v29 = vadd.f32 1.0, %v7631_v57 }
 0x9b8   :  { %v2661_v20 = vmul.f32 0.044715, %v2641_v17  ;;  %v2695_v47 = vmul.f32 %v2690_v29, %v2655_v8  ;;  %v2656_v12 = vmul.f32 0.5, %v2641_v17 }
 0x9ba   :  { %v2666_v26 = vmul.f32 %v2661_v20, %v2641_v17  ;;  %v2645_v13 = vpop.f32.mrb[64].mxu0  ;;  %6767 = vmatmul.mubr.f32.gmra.mrb[70].mxu0 %v2695_v47 }
 0x9bb   :  { %v2646_v43 = vadd.f32 %v5986_v52, %v2645_v13  ;;  %v6751_v41 = vpop.f32.mrb[65].mxu0  ;;  %6786 = vmatprep.mubr.msk.f32.mxu0 %vm7795_vm0, %v7796_v4 }
 0x9bc   :  { %v2671_v31 = vmul.f32 %v2666_v26, %v2641_v17 }
 0x9bd   :  { %v2662_v48 = vmul.f32 0.044715, %v2646_v43  ;;  %v2657_v11 = vmul.f32 0.5, %v2646_v43 }
 0x9be   :  { %v2676_v49 = vadd.f32 %v2671_v31, %v2641_v17 }
 0x9bf   :  { %v2667_v63 = vmul.f32 %v2662_v48, %v2646_v43 }
 0x9c0   :  { %v2681_v5 = vmul.f32 0.7978846, %v2676_v49 }
 0x9c1   :  { %v2650_v55 = vpop.f32.mrb[66].mxu0  ;;  %v2672_v18 = vmul.f32 %v2667_v63, %v2646_v43 }
 0x9c2   :  { %7632 = vtanh.f32 %v2681_v5  ;;  %v2651_v61 = vadd.f32 %v5986_v52, %v2650_v55  ;;  %v6754_v51 = vpop.f32.mrb[67].mxu0  ;;  %v5993_v55 = vld [vmem:[%s9695_s3 + $0x20] sm:$0xff] }
 0x9c3   :  { %v2677_v9 = vadd.f32 %v2672_v18, %v2646_v43  ;;  %v5994_v18 = vld [vmem:[%s9695_s3 + $0x28] sm:$0xff] }
 0x9c4   :  { %v2663_v56 = vmul.f32 0.044715, %v2651_v61  ;;  %v2658_v38 = vmul.f32 0.5, %v2651_v61 }
 0x9c5   :  { %v2682_v23 = vmul.f32 0.7978846, %v2677_v9 }
 0x9c6   :  { %v2668_v46 = vmul.f32 %v2663_v56, %v2651_v61 }
 0x9c7   :  { %7634 = vtanh.f32 %v2682_v23  ;;  %v5995_v23 = vld [vmem:[%s9695_s3 + $0x30] sm:$0xff] }
 0x9c8   :  { %v2673_v1 = vmul.f32 %v2668_v46, %v2651_v61  ;;  %v5996_v46 = vld [vmem:[%s9695_s3 + $0x38] sm:$0xff] }
 0x9ca   :  { %v2678_v28 = vadd.f32 %v2673_v1, %v2651_v61  ;;  %v7246_v61 = vpack.c.bf16 %v5994_v18, %v5993_v55 }
 0x9cc   :  { %v7633_v42 = vpop.eup %7632  ;;  %v2683_v10 = vmul.f32 0.7978846, %v2678_v28  ;;  %7247 = vmatpush3.bf16.msra.mxu0 %v7246_v61  ;;  %v7249_v28 = vpack.c.bf16 %v5996_v46, %v5995_v23 }
 0x9cd   :  { %v2691_v33 = vadd.f32 1.0, %v7633_v42  ;;  %7248 = vmatprep.subr.bf16.mxu0 %v7794_v0 }
 0x9ce   :  { %7636 = vtanh.f32 %v2683_v10 }
 0x9cf   :  { %v2696_v14 = vmul.f32 %v2691_v33, %v2656_v12 }
 0x9d0   :  { %7250 = vmatpush3.bf16.msra.mxu0 %v7249_v28 }
 0x9d1   :  { %v7635_v16 = vpop.eup %7634  ;;  %6770 = vmatmul.mubr.f32.vlgmr.msra.gmra.mrb[68].mxu1 %v2696_v14  ;;  %7255 = vmatprep.subr.bf16.mxu0 %v7794_v0 }
 0x9d2   :  { %6772 = vmatprep.mubr.msk.f32.mxu1 %vm7795_vm0, %v7796_v4  ;;  %v2692_v54 = vadd.f32 1.0, %v7635_v16 }
 0x9d4   :  { %v2697_v52 = vmul.f32 %v2692_v54, %v2657_v11 }
 0x9d6   :  { %6773 = vmatmul.mubr.f32.gmra.mrb[70].mxu1 %v2697_v52 }
 0x9d7   :  { %6775 = vmatprep.mubr.msk.f32.mxu1 %vm7795_vm0, %v7796_v4 }
 0x9d8   :  { %v7637_v35 = vpop.eup %7636 }
 0x9d9   :  { %v2693_v59 = vadd.f32 1.0, %v7637_v35 }
 0x9db   :  { %v2698_v58 = vmul.f32 %v2693_v59, %v2658_v38 }
 0x9dd   :  { %6776 = vmatmul.mubr.f32.gmra.mrb[72].mxu1 %v2698_v58 }
 0x9de   :  { %6807 = vmatprep.mubr.msk.f32.mxu1 %vm7795_vm0, %v7796_v4 }
 0xa86   :  { %v2769_v3 = vpop.f32.mrb[68].mxu0 }
 0xa87   :  { %v2793_v15 = vadd.f32 %v2769_v3, %v8657_v50  ;;  %v6765_v40 = vpop.f32.mrb[69].mxu0 }
 0xa89   :  { %v8753_v22 = vadd.f32 %v5992_v60, %v2793_v15 }
 0xa8b   :  { %v2808_v62 = vsel %vm154_vm2, %v8753_v22, 0.0 }
 0xa8c   :  { %2809 = vadd.xlane.f32.xlu1 %v2808_v62 }
 0xa8d   :  { %v2774_v25 = vpop.f32.mrb[70].mxu0 }
 0xa8e   :  { %v2794_v19 = vadd.f32 %v2774_v25, %v8662_v53  ;;  %v6768_v21 = vpop.f32.mrb[71].mxu0 }
 0xa90   :  { %v8758_v39 = vadd.f32 %v5992_v60, %v2794_v19 }
 0xa92   :  { %v2811_v24 = vsel %vm154_vm2, %v8758_v39, 0.0 }
 0xa93   :  { %2812 = vadd.xlane.f32.xlu0 %v2811_v24 }
 0xaa4   :  { %v2779_v44 = vpop.f32.mrb[68].mxu1 }
 0xaa5   :  { %v2795_v50 = vadd.f32 %v2779_v44, %v8667_v7  ;;  %v6771_v27 = vpop.f32.mrb[69].mxu1 }
 0xaa7   :  { %v8763_v37 = vadd.f32 %v5992_v60, %v2795_v50 }
 0xaa9   :  { %v2784_v6 = vpop.f32.mrb[70].mxu1  ;;  %v2814_v34 = vsel %vm154_vm2, %v8763_v37, 0.0 }
 0xaaa   :  { %v2796_v57 = vadd.f32 %v2784_v6, %v8672_v2  ;;  %v6774_v53 = vpop.f32.mrb[71].mxu1  ;;  %2815 = vadd.xlane.f32.xlu1 %v2814_v34 }
 0xaac   :  { %v8768_v45 = vadd.f32 %v5992_v60, %v2796_v57 }
 0xaae   :  { %v2817_v17 = vsel %vm154_vm2, %v8768_v45, 0.0 }
 0xaaf   :  { %2818 = vadd.xlane.f32.xlu0 %v2817_v17 }
 0xab0   :  { %v2789_v32 = vpop.f32.mrb[72].mxu1 }
 0xab1   :  { %v2797_v7 = vadd.f32 %v2789_v32, %v8677_v36  ;;  %v6777_v8 = vpop.f32.mrb[73].mxu1 }
 0xab3   :  { %v8773_v29 = vadd.f32 %v5992_v60, %v2797_v7 }
 0xab5   :  { %v2820_v20 = vsel %vm167_vm3, %v8773_v29, 0.0 }
 0xab6   :  { %2821 = vadd.xlane.f32.xlu1 %v2820_v20 }
 0xb19   :  { %v2810_v47 = vpop.xlane.xlu1 %2809 }
 0xb1a   :  { %v2823_v2 = vmul.f32 0.03125, %v2810_v47  ;;  %v5998_v47 = vld [vmem:[%s9696_s6 + $0x2] ss:$0 sm:$0xff] }
 0xb1c   :  { %v2828_v26 = vsub.f32 %v8753_v22, %v2823_v2 }
 0xb1e   :  { %v2833_v13 = vmul.f32 %v2828_v26, %v2828_v26 }
 0xb20   :  { %v2813_v43 = vpop.xlane.xlu0 %2812  ;;  %v2838_v41 = vsel %vm154_vm2, %v2833_v13, 0.0 }
 0xb21   :  { %v2824_v31 = vmul.f32 0.03125, %v2813_v43  ;;  %2839 = vadd.xlane.f32.xlu0 %v2838_v41 }
 0xb23   :  { %v2829_v48 = vsub.f32 %v8758_v39, %v2824_v31 }
 0xb25   :  { %v2834_v36 = vmul.f32 %v2829_v48, %v2829_v48 }
 0xb27   :  { %v2841_v49 = vsel %vm154_vm2, %v2834_v36, 0.0 }
 0xb28   :  { %2842 = vadd.xlane.f32.xlu1 %v2841_v49 }
 0xb37   :  { %v2816_v63 = vpop.xlane.xlu1 %2815 }
 0xb38   :  { %v2825_v5 = vmul.f32 0.03125, %v2816_v63 }
 0xb3a   :  { %v2830_v51 = vsub.f32 %v8763_v37, %v2825_v5 }
 0xb3c   :  { %v2819_v9 = vpop.xlane.xlu0 %2818  ;;  %v2835_v56 = vmul.f32 %v2830_v51, %v2830_v51 }
 0xb3d   :  { %v2826_v1 = vmul.f32 0.03125, %v2819_v9 }
 0xb3e   :  { %v2844_v42 = vsel %vm154_vm2, %v2835_v56, 0.0 }
 0xb3f   :  { %v2831_v10 = vsub.f32 %v8768_v45, %v2826_v1  ;;  %2845 = vadd.xlane.f32.xlu0 %v2844_v42 }
 0xb41   :  { %v2836_v12 = vmul.f32 %v2831_v10, %v2831_v10 }
 0xb43   :  { %v2822_v33 = vpop.xlane.xlu1 %2821  ;;  %v2847_v14 = vsel %vm154_vm2, %v2836_v12, 0.0 }
 0xb44   :  { %v2827_v16 = vmul.f32 0.03125, %v2822_v33  ;;  %2848 = vadd.xlane.f32.xlu1 %v2847_v14 }
 0xb46   :  { %v2832_v11 = vsub.f32 %v8773_v29, %v2827_v16 }
 0xb48   :  { %v2837_v54 = vmul.f32 %v2832_v11, %v2832_v11 }
 0xb4a   :  { %v2850_v52 = vsel %vm167_vm3, %v2837_v54, 0.0 }
 0xb4b   :  { %2851 = vadd.xlane.f32.xlu0 %v2850_v52 }
 0xbae   :  { %v2840_v35 = vpop.xlane.xlu0 %2839 }
 0xbaf   :  { %v2853_v38 = vmul.f32 0.03125, %v2840_v35 }
 0xbb1   :  { %v2858_v59 = vadd.f32 1e-06, %v2853_v38 }
 0xbb3   :  { %7638 = vrsqrt.f32 %v2858_v59 }
 0xbb5   :  { %v2843_v58 = vpop.xlane.xlu1 %2842 }
 0xbb6   :  { %v2854_v3 = vmul.f32 0.03125, %v2843_v58 }
 0xbb8   :  { %v2859_v60 = vadd.f32 1e-06, %v2854_v3 }
 0xbba   :  { %7640 = vrsqrt.f32 %v2859_v60 }
 0xbbd   :  { %v7639_v15 = vpop.eup %7638 }
 0xbbe   :  { %v2868_v40 = vmul.f32 %v7639_v15, %v2828_v26 }
 0xbc0   :  { %6787 = vmatmul.mubr.msk.f32.vlgmr.msra.gmra.mrb[72].mxu0 %vm154_vm2, %v2868_v40 }
 0xbc1   :  { %6789 = vmatprep.mubr.msk.f32.mxu0 %vm7795_vm0, %v7796_v4 }
 0xbc4   :  { %v7641_v62 = vpop.eup %7640 }
 0xbc5   :  { %v2869_v25 = vmul.f32 %v7641_v62, %v2829_v48 }
 0xbc7   :  { %6790 = vmatmul.mubr.msk.f32.gmra.mrb[74].mxu0 %vm154_vm2, %v2869_v25 }
 0xbc8   :  { %6792 = vmatprep.mubr.msk.f32.mxu0 %vm7795_vm0, %v7796_v4 }
 0xbcc   :  { %v2846_v19 = vpop.xlane.xlu0 %2845 }
 0xbcd   :  { %v2855_v21 = vmul.f32 0.03125, %v2846_v19 }
 0xbcf   :  { %v2860_v24 = vadd.f32 1e-06, %v2855_v21 }
 0xbd1   :  { %7642 = vrsqrt.f32 %v2860_v24  ;;  %v2849_v44 = vpop.xlane.xlu1 %2848 }
 0xbd2   :  { %v2856_v50 = vmul.f32 0.03125, %v2849_v44 }
 0xbd4   :  { %v2861_v27 = vadd.f32 1e-06, %v2856_v50 }
 0xbd6   :  { %7644 = vrsqrt.f32 %v2861_v27 }
 0xbd8   :  { %v2852_v6 = vpop.xlane.xlu0 %2851 }
 0xbd9   :  { %v2857_v34 = vmul.f32 0.03125, %v2852_v6 }
 0xbdb   :  { %v7643_v57 = vpop.eup %7642  ;;  %v2862_v53 = vadd.f32 1e-06, %v2857_v34 }
 0xbdc   :  { %v2870_v17 = vmul.f32 %v7643_v57, %v2830_v51 }
 0xbdd   :  { %7646 = vrsqrt.f32 %v2862_v53 }
 0xbde   :  { %6793 = vmatmul.mubr.msk.f32.gmra.mrb[76].mxu0 %vm154_vm2, %v2870_v17 }
 0xbdf   :  { %6795 = vmatprep.mubr.msk.f32.mxu0 %vm7795_vm0, %v7796_v4 }
 0xbe0   :  { %v7645_v32 = vpop.eup %7644 }
 0xbe1   :  { %v2871_v7 = vmul.f32 %v7645_v32, %v2831_v10 }
 0xbe3   :  { %6796 = vmatmul.mubr.msk.f32.gmra.mrb[78].mxu0 %vm154_vm2, %v2871_v7 }
 0xbe4   :  { %6798 = vmatprep.mubr.msk.f32.mxu0 %vm7795_vm0, %v7796_v4 }
 0xbe7   :  { %v7647_v8 = vpop.eup %7646 }
 0xbe8   :  { %v2872_v20 = vmul.f32 %v7647_v8, %v2832_v11 }
 0xbea   :  { %6799 = vmatmul.mubr.msk.f32.gmra.mrb[80].mxu0 %vm154_vm2, %v2872_v20 }
 0xbeb   :  { %6822 = vmatprep.mubr.msk.f32.mxu0 %vm7795_vm0, %v7796_v4 }
 0xc93   :  { %v2965_v2 = vpop.f32.mrb[72].mxu0 }
 0xc94   :  { %v8819_v26 = vadd.f32 %v5998_v47, %v2965_v2  ;;  %v6788_v13 = vpop.f32.mrb[73].mxu0 }
 0xc96   :  { %2992 = vrot.lane.b32.xlu1 %v8819_v26, %s7797_s26 }
 0xc9a   :  { %v2970_v43 = vpop.f32.mrb[74].mxu0  ;;  %2998 = vrot.lane.b32.xlu1 %v8819_v26, %s7798_s27 }
 0xc9b   :  { %v8825_v41 = vadd.f32 %v5998_v47, %v2970_v43  ;;  %v6791_v31 = vpop.f32.mrb[75].mxu0 }
 0xc9d   :  { %2994 = vrot.lane.b32.xlu0 %v8825_v41, %s7797_s26  ;;  %v7432_v28 = vpack.i.bf16 %v8825_v41, %v8819_v26 }
 0xca1   :  { %3000 = vrot.lane.b32.xlu0 %v8825_v41, %s7798_s27 }
 0xca5   :  { %3006 = vrot.lane.b32.xlu0 %v8825_v41, %s7799_s28 }
 0xcb1   :  { %v2975_v48 = vpop.f32.mrb[76].mxu0 }
 0xcb2   :  { %v8833_v36 = vadd.f32 %v5998_v47, %v2975_v48  ;;  %v6794_v49 = vpop.f32.mrb[77].mxu0 }
 0xcb4   :  { %3008 = vrot.lane.b32.xlu0 %v8833_v36, %s7799_s28  ;;  %2996 = vrot.lane.b32.xlu1 %v8833_v36, %s7797_s26  ;;  %v3012_v61 = vrot.slane %v8833_v36, 1 }
 0xcb6   :  { %v2980_v63 = vpop.f32.mrb[78].mxu0 }
 0xcb7   :  { %v2981_v5 = vadd.f32 %v5998_v47, %v2980_v63  ;;  %v6797_v55 = vpop.f32.mrb[79].mxu0 }
 0xcb8   :  { %3004 = vrot.lane.b32.xlu1 %v8819_v26, %s7799_s28 }
 0xcb9   :  { %v3013_v18 = vrot.slane %v2981_v5, 1 }
 0xcbb   :  { %v8845_v23 = vsel %vm359_vm4, %v3012_v61, %v3013_v18 }
 0xcbc   :  { %3002 = vrot.lane.b32.xlu1 %v8833_v36, %s7798_s27 }
 0xcbd   :  { %v2985_v51 = vpop.f32.mrb[80].mxu0 }
 0xcbe   :  { %v2986_v9 = vadd.f32 %v5998_v47, %v2985_v51  ;;  %v6800_v56 = vpop.f32.mrb[81].mxu0 }
 0xcc0   :  { %v8847_v46 = vrot.slane %v2986_v9, 1  ;;  %3017 = vrot.lane.b32.xlu1 %v8845_v23, %s7797_s26 }
 0xcc2   :  { %v8853_v1 = vsel %vm359_vm4, %v3013_v18, %v8847_v46 }
 0xcc3   :  { %3019 = vrot.lane.b32.xlu0 %v8853_v1, %s7797_s26  ;;  %v7452_v58 = vpack.i.bf16 %v8853_v1, %v8845_v23 }
 0xcc4   :  { %3021 = vrot.lane.b32.xlu1 %v8847_v46, %s7797_s26 }
 0xcc7   :  { %3023 = vrot.lane.b32.xlu0 %v8845_v23, %s7798_s27 }
 0xcc8   :  { %3025 = vrot.lane.b32.xlu1 %v8853_v1, %s7798_s27 }
 0xccb   :  { %3029 = vrot.lane.b32.xlu0 %v8845_v23, %s7799_s28 }
 0xccc   :  { %3031 = vrot.lane.b32.xlu1 %v8853_v1, %s7799_s28 }
 0xccf   :  { %3027 = vrot.lane.b32.xlu0 %v8847_v46, %s7798_s27 }
 0xcd0   :  { %3033 = vrot.lane.b32.xlu1 %v8847_v46, %s7799_s28 }
 0xcd3   :  { %7433 = vrot.lane.b32.xlu0 %v7432_v28, %s7800_s29 }
 0xcd7   :  { %3039 = vrot.lane.b32.xlu0 %v8833_v36, %s7800_s29 }
 0xd08   :  { %v8876_v42 = vpop.permute.xlu1 %2992 }
 0xd0c   :  { %v8883_v33 = vpop.permute.xlu1 %2998 }
 0xd0f   :  { %v8878_v10 = vpop.permute.xlu0 %2994 }
 0xd10   :  { %v7437_v12 = vpack.i.bf16 %v8878_v10, %v8876_v42 }
 0xd12   :  { %7438 = vrot.lane.b32.xlu1 %v7437_v12, %s7800_s29 }
 0xd13   :  { %v8885_v14 = vpop.permute.xlu0 %3000 }
 0xd14   :  { %v7442_v16 = vpack.i.bf16 %v8885_v14, %v8883_v33 }
 0xd16   :  { %7443 = vrot.lane.b32.xlu0 %v7442_v16, %s7800_s29 }
 0xd17   :  { %v8894_v54 = vpop.permute.xlu0 %3006 }
 0xd26   :  { %v8890_v11 = vpop.permute.xlu1 %2996  ;;  %v8905_v59 = vpop.permute.xlu0 %3008 }
 0xd27   :  { %3137 = vrot.lane.b32.xlu1 %v8890_v11, %s7800_s29 }
 0xd2a   :  { %v8896_v52 = vpop.permute.xlu1 %3004 }
 0xd2b   :  { %v7447_v35 = vpack.i.bf16 %v8894_v54, %v8896_v52 }
 0xd2d   :  { %7448 = vrot.lane.b32.xlu1 %v7447_v35, %s7800_s29 }
 0xd2e   :  { %v8901_v38 = vpop.permute.xlu1 %3002 }
 0xd2f   :  { %3235 = vrot.lane.b32.xlu0 %v8901_v38, %s7800_s29 }
 0xd31   :  { %3333 = vrot.lane.b32.xlu1 %v8905_v59, %s7800_s29 }
 0xd32   :  { %v8911_v3 = vpop.permute.xlu1 %3017 }
 0xd33   :  { %7453 = vrot.lane.b32.xlu0 %v7452_v58, %s7800_s29 }
 0xd35   :  { %v8914_v60 = vpop.permute.xlu0 %3019 }
 0xd36   :  { %v7457_v15 = vpack.i.bf16 %v8914_v60, %v8911_v3  ;;  %v8918_v40 = vpop.permute.xlu1 %3021 }
 0xd37   :  { %3431 = vrot.lane.b32.xlu0 %v8847_v46, %s7800_s29 }
 0xd38   :  { %7458 = vrot.lane.b32.xlu1 %v7457_v15, %s7800_s29 }
 0xd39   :  { %v8923_v62 = vpop.permute.xlu0 %3023 }
 0xd3a   :  { %v8925_v25 = vpop.permute.xlu1 %3025 }
 0xd3b   :  { %v7462_v19 = vpack.i.bf16 %v8925_v25, %v8923_v62 }
 0xd3c   :  { %3529 = vrot.lane.b32.xlu1 %v8918_v40, %s7800_s29 }
 0xd3d   :  { %7463 = vrot.lane.b32.xlu0 %v7462_v19, %s7800_s29  ;;  %v8932_v21 = vpop.permute.xlu0 %3029 }
 0xd3e   :  { %v8934_v24 = vpop.permute.xlu1 %3031 }
 0xd3f   :  { %v7467_v44 = vpack.i.bf16 %v8934_v24, %v8932_v21 }
 0xd41   :  { %7468 = vrot.lane.b32.xlu1 %v7467_v44, %s7800_s29  ;;  %v8939_v50 = vpop.permute.xlu0 %3027 }
 0xd42   :  { %3627 = vrot.lane.b32.xlu0 %v8939_v50, %s7800_s29  ;;  %v8943_v27 = vpop.permute.xlu1 %3033 }
 0xd45   :  { %3725 = vrot.lane.b32.xlu1 %v8943_v27, %s7800_s29  ;;  %v7434_v6 = vpop.permute.xlu0 %7433 }
 0xd46   :  { %v7436_v34 = vunpack.i.h.bf16 %v7434_v6  ;;  %v7435_v57 = vunpack.i.l.bf16 %v7434_v6  ;;  %7478 = vrot.lane.b32.xlu0 %v7437_v12, %s7801_s30 }
 0xd48   :  { %v7252_v53 = vpack.c.bf16 %v7436_v34, %v7435_v57 }
 0xd49   :  { %7473 = vrot.lane.b32.xlu1 %v7432_v28, %s7801_s30  ;;  %v3040_v17 = vpop.permute.xlu0 %3039 }
 0xd4a   :  { %3967 = vrot.lane.b32.xlu0 %v8833_v36, %s7801_s30  ;;  %7254 = vmatpush3.bf16.xpose.msk.msra.mxu1 %vm8107_vm6, %v7252_v53 }
 0xd4b   :  { %6805 = vmatprep.subr.mxu1 %v7796_v4 }
 0xd4d   :  { %4066 = vrot.lane.b32.xlu1 %v8890_v11, %s7801_s30 }
 0xd4e   :  { %7483 = vrot.lane.b32.xlu0 %v7442_v16, %s7801_s30 }
 0xd51   :  { %7488 = vrot.lane.b32.xlu1 %v7447_v35, %s7801_s30 }
 0xd52   :  { %4165 = vrot.lane.b32.xlu0 %v8901_v38, %s7801_s30  ;;  %6806 = vmatpush3.xpose.msk.msra.mxu1 %vm389_vm5, %v3040_v17 }
 0xd53   :  { %7259 = vmatprep.subr.bf16.mxu1 %v7794_v0 }
 0xd55   :  { %4264 = vrot.lane.b32.xlu1 %v8905_v59, %s7801_s30  ;;  %6808 = vmatmul.mubr.msk.f32.vlgmr.msra.gmra.mrb[74].mxu1 %vm389_vm5, %v8819_v26 }
 0xd56   :  { %7493 = vrot.lane.b32.xlu0 %v7452_v58, %s7801_s30  ;;  %6810 = vmatprep.mubr.msk.f32.mxu1 %vm7795_vm0, %v7796_v4 }
 0xd59   :  { %4462 = vrot.lane.b32.xlu1 %v8918_v40, %s7801_s30  ;;  %6811 = vmatmul.mubr.msk.f32.gmra.mrb[76].mxu1 %vm389_vm5, %v8825_v41 }
 0xd5a   :  { %4363 = vrot.lane.b32.xlu0 %v8847_v46, %s7801_s30  ;;  %6813 = vmatprep.mubr.msk.f32.mxu1 %vm7795_vm0, %v7796_v4 }
 0xd5d   :  { %7498 = vrot.lane.b32.xlu1 %v7457_v15, %s7801_s30  ;;  %6814 = vmatmul.mubr.msk.f32.gmra.mrb[78].mxu1 %vm389_vm5, %v8833_v36 }
 0xd5e   :  { %7503 = vrot.lane.b32.xlu0 %v7462_v19, %s7801_s30  ;;  %6837 = vmatprep.mubr.msk.f32.mxu1 %vm7795_vm0, %v7796_v4 }
 0xd61   :  { %7508 = vrot.lane.b32.xlu1 %v7467_v44, %s7801_s30 }
 0xd84   :  { %v7439_v32 = vpop.permute.xlu1 %7438 }
 0xd85   :  { %v7441_v7 = vunpack.i.h.bf16 %v7439_v32  ;;  %v7440_v8 = vunpack.i.l.bf16 %v7439_v32 }
 0xd87   :  { %v7256_v20 = vpack.c.bf16 %v7441_v7, %v7440_v8 }
 0xd88   :  { %v7444_v47 = vpop.permute.xlu0 %7443 }
 0xd89   :  { %v7446_v2 = vunpack.i.h.bf16 %v7444_v47  ;;  %v7445_v26 = vunpack.i.l.bf16 %v7444_v47  ;;  %7258 = vmatpush3.bf16.xpose.msk.msra.mxu0 %vm8107_vm6, %v7256_v20 }
 0xd8a   :  { %6820 = vmatprep.subr.mxu0 %v7796_v4 }
 0xd8b   :  { %v7260_v13 = vpack.c.bf16 %v7446_v2, %v7445_v26 }
 0xd8d   :  { %7262 = vmatpush3.bf16.xpose.msk.msra.mxu1 %vm8107_vm6, %v7260_v13 }
 0xd8e   :  { %6835 = vmatprep.subr.mxu1 %v7796_v4 }
 0xd99   :  { %v3138_v43 = vpop.permute.xlu1 %3137 }
 0xd9a   :  { %6821 = vmatpush3.xpose.msk.msra.mxu0 %vm389_vm5, %v3138_v43 }
 0xd9b   :  { %7263 = vmatprep.subr.bf16.mxu0 %v7794_v0 }
 0xd9d   :  { %6823 = vmatmul.mubr.msk.f32.vlgmr.msra.gmra.mrb[82].mxu0 %vm389_vm5, %v8876_v42 }
 0xd9e   :  { %6825 = vmatprep.mubr.msk.f32.mxu0 %vm7795_vm0, %v7796_v4 }
 0xd9f   :  { %v7449_v41 = vpop.permute.xlu1 %7448 }
 0xda0   :  { %v7451_v31 = vunpack.i.h.bf16 %v7449_v41  ;;  %v7450_v48 = vunpack.i.l.bf16 %v7449_v41 }
 0xda1   :  { %6826 = vmatmul.mubr.msk.f32.gmra.mrb[84].mxu0 %vm389_vm5, %v8878_v10  ;;  %v3236_v36 = vpop.permute.xlu0 %3235 }
 0xda2   :  { %v7264_v49 = vpack.c.bf16 %v7451_v31, %v7450_v48  ;;  %6836 = vmatpush3.xpose.msk.msra.mxu1 %vm389_vm5, %v3236_v36  ;;  %6828 = vmatprep.mubr.msk.f32.mxu0 %vm7795_vm0, %v7796_v4 }
 0xda3   :  { %7267 = vmatprep.subr.bf16.mxu1 %v7794_v0  ;;  %v3334_v5 = vpop.permute.xlu1 %3333 }
 0xda4   :  { %7266 = vmatpush3.bf16.xpose.msk.msra.mxu0 %vm8107_vm6, %v7264_v49 }
 0xda5   :  { %6829 = vmatmul.mubr.msk.f32.gmra.mrb[86].mxu0 %vm389_vm5, %v8890_v11  ;;  %v7454_v63 = vpop.permute.xlu0 %7453  ;;  %6838 = vmatmul.mubr.msk.f32.vlgmr.msra.gmra.mrb[80].mxu1 %vm389_vm5, %v8883_v33 }
 0xda6   :  { %v7456_v55 = vunpack.i.h.bf16 %v7454_v63  ;;  %v7455_v18 = vunpack.i.l.bf16 %v7454_v63  ;;  %6840 = vmatprep.mubr.msk.f32.mxu1 %vm7795_vm0, %v7796_v4  ;;  %6850 = vmatprep.subr.mxu0 %v7796_v4 }
 0xda7   :  { %6852 = vmatprep.mubr.msk.f32.mxu0 %vm7795_vm0, %v7796_v4 }
 0xda8   :  { %v7268_v61 = vpack.c.bf16 %v7456_v55, %v7455_v18 }
 0xda9   :  { %6841 = vmatmul.mubr.msk.f32.gmra.mrb[82].mxu1 %vm389_vm5, %v8885_v14  ;;  %v3432_v9 = vpop.permute.xlu0 %3431 }
 0xdaa   :  { %v7459_v51 = vpop.permute.xlu1 %7458  ;;  %7270 = vmatpush3.bf16.xpose.msk.msra.mxu1 %vm8107_vm6, %v7268_v61  ;;  %6843 = vmatprep.mubr.msk.f32.mxu1 %vm7795_vm0, %v7796_v4 }
 0xdab   :  { %v7461_v56 = vunpack.i.h.bf16 %v7459_v51  ;;  %v7460_v28 = vunpack.i.l.bf16 %v7459_v51  ;;  %6865 = vmatprep.subr.mxu1 %v7796_v4 }
 0xdac   :  { %6851 = vmatpush3.xpose.msk.msra.mxu0 %vm389_vm5, %v3334_v5 }
 0xdad   :  { %v7272_v42 = vpack.c.bf16 %v7461_v56, %v7460_v28  ;;  %6844 = vmatmul.mubr.msk.f32.gmra.mrb[84].mxu1 %vm389_vm5, %v8901_v38  ;;  %7271 = vmatprep.subr.bf16.mxu0 %v7794_v0 }
 0xdae   :  { %v3530_v10 = vpop.permute.xlu1 %3529  ;;  %6867 = vmatprep.mubr.msk.f32.mxu1 %vm7795_vm0, %v7796_v4 }
 0xdaf   :  { %6853 = vmatmul.mubr.msk.f32.vlgmr.msra.gmra.mrb[88].mxu0 %vm389_vm5, %v8896_v52  ;;  %v7464_v12 = vpop.permute.xlu0 %7463 }
 0xdb0   :  { %v7466_v33 = vunpack.i.h.bf16 %v7464_v12  ;;  %v7465_v14 = vunpack.i.l.bf16 %v7464_v12  ;;  %7274 = vmatpush3.bf16.xpose.msk.msra.mxu0 %vm8107_vm6, %v7272_v42  ;;  %6855 = vmatprep.mubr.msk.f32.mxu0 %vm7795_vm0, %v7796_v4 }
 0xdb1   :  { %6880 = vmatprep.subr.mxu0 %v7796_v4 }
 0xdb2   :  { %6866 = vmatpush3.xpose.msk.msra.mxu1 %vm389_vm5, %v3432_v9  ;;  %v7276_v11 = vpack.c.bf16 %v7466_v33, %v7465_v14 }
 0xdb3   :  { %6856 = vmatmul.mubr.msk.f32.gmra.mrb[90].mxu0 %vm389_vm5, %v8894_v54  ;;  %v7469_v16 = vpop.permute.xlu1 %7468  ;;  %7275 = vmatprep.subr.bf16.mxu1 %v7794_v0 }
 0xdb4   :  { %6858 = vmatprep.mubr.msk.f32.mxu0 %vm7795_vm0, %v7796_v4  ;;  %v7471_v52 = vunpack.i.h.bf16 %v7469_v16  ;;  %v7470_v35 = vunpack.i.l.bf16 %v7469_v16 }
 0xdb5   :  { %6868 = vmatmul.mubr.msk.f32.vlgmr.msra.gmra.mrb[86].mxu1 %vm389_vm5, %v8845_v23  ;;  %v3628_v23 = vpop.permute.xlu0 %3627 }
 0xdb6   :  { %7278 = vmatpush3.bf16.xpose.msk.msra.mxu1 %vm8107_vm6, %v7276_v11  ;;  %6870 = vmatprep.mubr.msk.f32.mxu1 %vm7795_vm0, %v7796_v4  ;;  %v7280_v38 = vpack.c.bf16 %v7471_v52, %v7470_v35 }
 0xdb7   :  { %6859 = vmatmul.mubr.msk.f32.gmra.mrb[92].mxu0 %vm389_vm5, %v8905_v59  ;;  %v3726_v54 = vpop.permute.xlu1 %3725  ;;  %6895 = vmatprep.subr.mxu1 %v7796_v4 }
 0xdb8   :  { %6881 = vmatpush3.xpose.msk.msra.mxu0 %vm389_vm5, %v3530_v10  ;;  %6882 = vmatprep.mubr.msk.f32.mxu0 %vm7795_vm0, %v7796_v4 }
 0xdb9   :  { %6871 = vmatmul.mubr.msk.f32.gmra.mrb[88].mxu1 %vm389_vm5, %v8853_v1  ;;  %7279 = vmatprep.subr.bf16.mxu0 %v7794_v0  ;;  %v7479_v1 = vpop.permute.xlu0 %7478 }
 0xdba   :  { %6873 = vmatprep.mubr.msk.f32.mxu1 %vm7795_vm0, %v7796_v4 }
 0xdbb   :  { %6883 = vmatmul.mubr.msk.f32.vlgmr.msra.gmra.mrb[94].mxu0 %vm389_vm5, %v8911_v3  ;;  %v7474_v59 = vpop.permute.xlu1 %7473  ;;  %v7480_v3 = vunpack.i.l.bf16 %v7479_v1 }
 0xdbc   :  { %v7476_v58 = vunpack.i.h.bf16 %v7474_v59  ;;  %v7475_v15 = vunpack.i.l.bf16 %v7474_v59  ;;  %7282 = vmatpush3.bf16.xpose.msk.msra.mxu0 %vm8107_vm6, %v7280_v38  ;;  %6885 = vmatprep.mubr.msk.f32.mxu0 %vm7795_vm0, %v7796_v4 }
 0xdbd   :  { %6874 = vmatmul.mubr.msk.f32.gmra.mrb[90].mxu1 %vm389_vm5, %v8847_v46  ;;  %6910 = vmatprep.subr.mxu0 %v7796_v4  ;;  %v7481_v46 = vunpack.i.h.bf16 %v7479_v1 }
 0xdbe   :  { %6896 = vmatpush3.xpose.msk.msra.mxu1 %vm389_vm5, %v3628_v23  ;;  %6897 = vmatprep.mubr.msk.f32.mxu1 %vm7795_vm0, %v7796_v4  ;;  %v7284_v30 = vpack.c.bf16 %v7476_v58, %v7475_v15 }
 0xdbf   :  { %6886 = vmatmul.mubr.msk.f32.gmra.mrb[96].mxu0 %vm389_vm5, %v8914_v60  ;;  %7283 = vmatprep.subr.bf16.mxu1 %v7794_v0  ;;  %v3968_v60 = vpop.permute.xlu0 %3967 }
 0xdc0   :  { %6888 = vmatprep.mubr.msk.f32.mxu0 %vm7795_vm0, %v7796_v4 }
 0xdc1   :  { %6898 = vmatmul.mubr.msk.f32.vlgmr.msra.gmra.mrb[92].mxu1 %vm389_vm5, %v8923_v62  ;;  %v7287_v62 = vpack.c.bf16 %v7481_v46, %v7480_v3 }
 0xdc2   :  { %7285 = vmatpush3.bf16.msra.mxu1 %v7284_v30  ;;  %6900 = vmatprep.mubr.msk.f32.mxu1 %vm7795_vm0, %v7796_v4 }
 0xdc3   :  { %6889 = vmatmul.mubr.msk.f32.gmra.mrb[98].mxu0 %vm389_vm5, %v8918_v40  ;;  %6925 = vmatprep.subr.mxu1 %v7796_v4  ;;  %v4067_v40 = vpop.permute.xlu1 %4066 }
 0xdc4   :  { %6911 = vmatpush3.xpose.msk.msra.mxu0 %vm389_vm5, %v3726_v54  ;;  %6912 = vmatprep.mubr.msk.f32.mxu0 %vm7795_vm0, %v7796_v4 }
 0xdc5   :  { %6901 = vmatmul.mubr.msk.f32.gmra.mrb[94].mxu1 %vm389_vm5, %v8925_v25  ;;  %7286 = vmatprep.subr.bf16.mxu0 %v7794_v0 }
 0xdc6   :  { %6926 = vmatpush3.msk.msra.mxu1 %vm1331_vm7, %v3968_v60  ;;  %6903 = vmatprep.mubr.msk.f32.mxu1 %vm7795_vm0, %v7796_v4 }
 0xdc7   :  { %6913 = vmatmul.mubr.msk.f32.vlgmr.msra.gmra.mrb[100].mxu0 %vm389_vm5, %v8932_v21  ;;  %7289 = vmatprep.subr.bf16.mxu1 %v7794_v0 }
 0xdc8   :  { %7288 = vmatpush3.bf16.msra.mxu0 %v7287_v62  ;;  %6915 = vmatprep.mubr.msk.f32.mxu0 %vm7795_vm0, %v7796_v4 }
 0xdc9   :  { %6904 = vmatmul.mubr.msk.f32.gmra.mrb[96].mxu1 %vm389_vm5, %v8939_v50  ;;  %6940 = vmatprep.subr.mxu0 %v7796_v4 }
 0xdca   :  { %6927 = vmatprep.mubr.msk.f32.mxu1 %vm7795_vm0, %v7796_v4 }
 0xdcb   :  { %6916 = vmatmul.mubr.msk.f32.gmra.mrb[102].mxu0 %vm389_vm5, %v8934_v24 }
 0xdcc   :  { %6941 = vmatpush3.msk.msra.mxu0 %vm1331_vm7, %v4067_v40  ;;  %6918 = vmatprep.mubr.msk.f32.mxu0 %vm7795_vm0, %v7796_v4 }
 0xdcd   :  { %7292 = vmatprep.subr.bf16.mxu0 %v7794_v0 }
 0xdcf   :  { %6919 = vmatmul.mubr.msk.f32.gmra.mrb[104].mxu0 %vm389_vm5, %v8943_v27 }
 0xdd0   :  { %6942 = vmatprep.mubr.msk.f32.mxu0 %vm7795_vm0, %v7796_v4 }
 0xe28   :  { %v9109_v25 = vpop.f32.mrb[74].mxu1 }
 0xe29   :  { %v6809_v19 = vpop.f32.mrb[75].mxu1  ;;  %v3819_v21 = vsel %vm1168_vm8, %v9109_v25, -inf }
 0xe2a   :  { %3820 = vmax.xlane.f32.xlu0 %v3819_v21 }
 0xe2c   :  { %v9113_v24 = vpop.f32.mrb[76].mxu1 }
 0xe2d   :  { %v6812_v44 = vpop.f32.mrb[77].mxu1  ;;  %v3822_v6 = vsel %vm1168_vm8, %v9113_v24, -inf }
 0xe2e   :  { %3823 = vmax.xlane.f32.xlu0 %v3822_v6 }
 0xe30   :  { %v9117_v34 = vpop.f32.mrb[78].mxu1 }
 0xe31   :  { %v6815_v57 = vpop.f32.mrb[79].mxu1  ;;  %v3825_v53 = vsel %vm1175_vm9, %v9117_v34, -inf }
 0xe32   :  { %3826 = vmax.xlane.f32.xlu1 %v3825_v53  ;;  %v7484_v53 = vpop.permute.xlu0 %7483 }
 0xe70   :  { %v9121_v17 = vpop.f32.mrb[82].mxu0 }
 0xe71   :  { %v6824_v32 = vpop.f32.mrb[83].mxu0  ;;  %v3828_v7 = vsel %vm1168_vm8, %v9121_v17, -inf }
 0xe72   :  { %3829 = vmax.xlane.f32.xlu1 %v3828_v7 }
 0xe74   :  { %v9125_v8 = vpop.f32.mrb[84].mxu0 }
 0xe75   :  { %v6827_v20 = vpop.f32.mrb[85].mxu0  ;;  %v3831_v47 = vsel %vm1168_vm8, %v9125_v8, -inf }
 0xe76   :  { %3832 = vmax.xlane.f32.xlu0 %v3831_v47 }
 0xe78   :  { %v9129_v2 = vpop.f32.mrb[86].mxu0  ;;  %v9131_v26 = vpop.f32.mrb[80].mxu1 }
 0xe79   :  { %v6830_v13 = vpop.f32.mrb[87].mxu0  ;;  %v6839_v43 = vpop.f32.mrb[81].mxu1  ;;  %v3837_v41 = vsel %vm1168_vm8, %v9131_v26, -inf  ;;  %v3834_v31 = vsel %vm1175_vm9, %v9129_v2, -inf }
 0xe7a   :  { %3838 = vmax.xlane.f32.xlu1 %v3837_v41  ;;  %3835 = vmax.xlane.f32.xlu0 %v3834_v31 }
 0xe7c   :  { %v9137_v48 = vpop.f32.mrb[82].mxu1 }
 0xe7d   :  { %v6842_v36 = vpop.f32.mrb[83].mxu1  ;;  %v3840_v49 = vsel %vm1168_vm8, %v9137_v48, -inf }
 0xe7e   :  { %3841 = vmax.xlane.f32.xlu1 %v3840_v49  ;;  %v4166_v36 = vpop.permute.xlu0 %4165 }
 0xe80   :  { %v9141_v63 = vpop.f32.mrb[84].mxu1 }
 0xe81   :  { %v6845_v5 = vpop.f32.mrb[85].mxu1  ;;  %v3843_v55 = vsel %vm1175_vm9, %v9141_v63, -inf }
 0xe82   :  { %3844 = vmax.xlane.f32.xlu1 %v3843_v55  ;;  %v9145_v18 = vpop.f32.mrb[88].mxu0  ;;  %v9203_v55 = vpop.permute.xlu1 %7488 }
 0xe83   :  { %v6854_v61 = vpop.f32.mrb[89].mxu0  ;;  %v3846_v51 = vsel %vm1168_vm8, %v9145_v18, -inf }
 0xe84   :  { %3847 = vmax.xlane.f32.xlu0 %v3846_v51 }
 0xe86   :  { %v9149_v9 = vpop.f32.mrb[90].mxu0 }
 0xe87   :  { %v6857_v56 = vpop.f32.mrb[91].mxu0  ;;  %v3849_v28 = vsel %vm1168_vm8, %v9149_v9, -inf }
 0xe88   :  { %v9153_v42 = vpop.f32.mrb[86].mxu1  ;;  %3850 = vmax.xlane.f32.xlu0 %v3849_v28  ;;  %v9207_v56 = vpop.permute.xlu0 %7493 }
 0xe89   :  { %v6869_v10 = vpop.f32.mrb[87].mxu1  ;;  %v3855_v12 = vsel %vm1168_vm8, %v9153_v42, -inf  ;;  %v9209_v28 = vpop.permute.xlu1 %4264 }
 0xe8a   :  { %3856 = vmax.xlane.f32.xlu1 %v3855_v12  ;;  %v9157_v33 = vpop.f32.mrb[92].mxu0 }
 0xe8b   :  { %v6860_v14 = vpop.f32.mrb[93].mxu0  ;;  %v3852_v16 = vsel %vm1175_vm9, %v9157_v33, -inf }
 0xe8c   :  { %v9161_v11 = vpop.f32.mrb[88].mxu1  ;;  %3853 = vmax.xlane.f32.xlu0 %v3852_v16  ;;  %v9211_v10 = vpop.permute.xlu0 %4363 }
 0xe8d   :  { %v6872_v52 = vpop.f32.mrb[89].mxu1  ;;  %v3858_v35 = vsel %vm1168_vm8, %v9161_v11, -inf  ;;  %v9213_v12 = vpop.permute.xlu1 %4462 }
 0xe8e   :  { %3859 = vmax.xlane.f32.xlu1 %v3858_v35  ;;  %v9165_v54 = vpop.f32.mrb[94].mxu0 }
 0xe8f   :  { %v6884_v23 = vpop.f32.mrb[95].mxu0  ;;  %v3864_v60 = vsel %vm1168_vm8, %v9165_v54, -inf }
 0xe90   :  { %v9167_v38 = vpop.f32.mrb[90].mxu1  ;;  %v9215_v14 = vpop.permute.xlu0 %7503 }
 0xe91   :  { %v6875_v59 = vpop.f32.mrb[91].mxu1  ;;  %v3861_v58 = vsel %vm1175_vm9, %v9167_v38, -inf  ;;  %v9217_v16 = vpop.permute.xlu1 %7498 }
 0xe92   :  { %3862 = vmax.xlane.f32.xlu0 %v3861_v58  ;;  %v9171_v15 = vpop.f32.mrb[96].mxu0 }
 0xe93   :  { %v6887_v1 = vpop.f32.mrb[97].mxu0  ;;  %v3867_v30 = vsel %vm1168_vm8, %v9171_v15, -inf }
 0xe94   :  { %v9175_v46 = vpop.f32.mrb[92].mxu1  ;;  %3868 = vmax.xlane.f32.xlu1 %v3867_v30 }
 0xe95   :  { %v6899_v3 = vpop.f32.mrb[93].mxu1  ;;  %v3873_v6 = vsel %vm1168_vm8, %v9175_v46, -inf  ;;  %v9224_v59 = vpop.permute.xlu1 %7508 }
 0xe96   :  { %3865 = vmax.xlane.f32.xlu0 %v3864_v60  ;;  %v9179_v62 = vpop.f32.mrb[98].mxu0 }
 0xe97   :  { %v6890_v40 = vpop.f32.mrb[99].mxu0  ;;  %v3870_v19 = vsel %vm1175_vm9, %v9179_v62, -inf }
 0xe98   :  { %v9183_v21 = vpop.f32.mrb[94].mxu1  ;;  %3871 = vmax.xlane.f32.xlu1 %v3870_v19  ;;  %v7486_v40 = vunpack.i.h.bf16 %v7484_v53 }
 0xe99   :  { %v6902_v44 = vpop.f32.mrb[95].mxu1  ;;  %v3876_v13 = vsel %vm1168_vm8, %v9183_v21, -inf }
 0xe9a   :  { %3874 = vmax.xlane.f32.xlu0 %v3873_v6  ;;  %v9187_v57 = vpop.f32.mrb[100].mxu0 }
 0xe9b   :  { %v6914_v32 = vpop.f32.mrb[101].mxu0  ;;  %v3882_v7 = vsel %vm1168_vm8, %v9187_v57, -inf }
 0xe9c   :  { %v9191_v20 = vpop.f32.mrb[96].mxu1  ;;  %3883 = vmax.xlane.f32.xlu1 %v3882_v7 }
 0xe9d   :  { %v6905_v47 = vpop.f32.mrb[97].mxu1  ;;  %v3879_v49 = vsel %vm1175_vm9, %v9191_v20, -inf }
 0xe9e   :  { %3877 = vmax.xlane.f32.xlu0 %v3876_v13  ;;  %v9195_v43 = vpop.f32.mrb[102].mxu0 }
 0xe9f   :  { %v6917_v41 = vpop.f32.mrb[103].mxu0  ;;  %v3885_v31 = vsel %vm1168_vm8, %v9195_v43, -inf }
 0xea0   :  { %3886 = vmax.xlane.f32.xlu1 %v3885_v31 }
 0xea2   :  { %3880 = vmax.xlane.f32.xlu0 %v3879_v49  ;;  %v9201_v5 = vpop.f32.mrb[104].mxu0  ;;  %v7491_v49 = vunpack.i.h.bf16 %v9203_v55 }
 0xea3   :  { %v6920_v61 = vpop.f32.mrb[105].mxu0  ;;  %v3888_v51 = vsel %vm1175_vm9, %v9201_v5, -inf }
 0xea4   :  { %3889 = vmax.xlane.f32.xlu1 %v3888_v51  ;;  %v7490_v61 = vunpack.i.l.bf16 %v9203_v55 }
 0xeb5   :  { %4660 = vrot.lane.b32.xlu1 %v8943_v27, %s7801_s30  ;;  %v7485_v27 = vunpack.i.l.bf16 %v7484_v53 }
 0xeb7   :  { %v3821_v52 = vpop.xlane.xlu0 %3820  ;;  %v7290_v44 = vpack.c.bf16 %v7486_v40, %v7485_v27 }
 0xeb8   :  { %v3891_v35 = vsub.f32 %v9109_v25, %v3821_v52  ;;  %4561 = vrot.lane.b32.xlu0 %v8939_v50, %s7801_s30 }
 0xeba   :  { %v3915_v23 = vmul.f32 1.442695, %v3891_v35 }
 0xebb   :  { %v3824_v58 = vpop.xlane.xlu0 %3823 }
 0xebc   :  { %7648 = vpow2.f32 %v3915_v23  ;;  %v3892_v1 = vsub.f32 %v9113_v24, %v3824_v58  ;;  %v7293_v23 = vpack.c.bf16 %v7491_v49, %v7490_v61 }
 0xebe   :  { %v3917_v30 = vmul.f32 1.442695, %v3892_v1 }
 0xebf   :  { %v3827_v3 = vpop.xlane.xlu1 %3826 }
 0xec0   :  { %7650 = vpow2.f32 %v3917_v30  ;;  %v3893_v60 = vsub.f32 %v9117_v34, %v3827_v3  ;;  %v7496_v30 = vunpack.i.h.bf16 %v9207_v56  ;;  %v7495_v3 = vunpack.i.l.bf16 %v9207_v56 }
 0xec2   :  { %v3919_v19 = vmul.f32 1.442695, %v3893_v60 }
 0xec4   :  { %7652 = vpow2.f32 %v3919_v19 }
 0xec6   :  { %v9228_v25 = vpop.eup %7648 }
 0xec7   :  { %6928 = vmatmul.mubr.msk.f32.vlgmr.msra.gmra.mrb[98].mxu1 %vm1168_vm8, %v9228_v25 }
 0xec8   :  { %7291 = vmatpush3.bf16.msra.mxu1 %v7290_v44  ;;  %6930 = vmatprep.mubr.msk.f32.mxu1 %vm7795_vm0, %v7796_v4  ;;  %v7296_v44 = vpack.c.bf16 %v7496_v30, %v7495_v3 }
 0xec9   :  { %6955 = vmatprep.subr.mxu1 %v7796_v4 }
 0xeca   :  { %v9235_v50 = vpop.eup %7650 }
 0xecb   :  { %6931 = vmatmul.mubr.msk.f32.gmra.mrb[100].mxu1 %vm1168_vm8, %v9235_v50 }
 0xecc   :  { %6956 = vmatpush3.msk.msra.mxu1 %vm1331_vm7, %v4166_v36  ;;  %6933 = vmatprep.mubr.msk.f32.mxu1 %vm7795_vm0, %v7796_v4 }
 0xecd   :  { %7295 = vmatprep.subr.bf16.mxu1 %v7794_v0 }
 0xece   :  { %v9243_v24 = vpop.eup %7652 }
 0xecf   :  { %6934 = vmatmul.mubr.msk.f32.gmra.mrb[102].mxu1 %vm1168_vm8, %v9243_v24 }
 0xed0   :  { %6957 = vmatprep.mubr.msk.f32.mxu1 %vm7795_vm0, %v7796_v4 }
 0xeff   :  { %v3830_v34 = vpop.xlane.xlu1 %3829 }
 0xf00   :  { %v3894_v6 = vsub.f32 %v9121_v17, %v3830_v34 }
 0xf02   :  { %v3921_v53 = vmul.f32 1.442695, %v3894_v6 }
 0xf03   :  { %v3833_v32 = vpop.xlane.xlu0 %3832 }
 0xf04   :  { %7654 = vpow2.f32 %v3921_v53  ;;  %v3895_v7 = vsub.f32 %v9125_v8, %v3833_v32 }
 0xf06   :  { %v3923_v47 = vmul.f32 1.442695, %v3895_v7 }
 0xf07   :  { %v3839_v13 = vpop.xlane.xlu1 %3838  ;;  %v3836_v41 = vpop.xlane.xlu0 %3835 }
 0xf08   :  { %7656 = vpow2.f32 %v3923_v47  ;;  %v3897_v31 = vsub.f32 %v9131_v26, %v3839_v13  ;;  %v3896_v36 = vsub.f32 %v9129_v2, %v3836_v41  ;;  %v7501_v41 = vunpack.i.h.bf16 %v9217_v16 }
 0xf0a   :  { %v3927_v51 = vmul.f32 1.442695, %v3897_v31  ;;  %v3925_v52 = vmul.f32 1.442695, %v3896_v36  ;;  %v7500_v36 = vunpack.i.l.bf16 %v9217_v16 }
 0xf0b   :  { %v3842_v17 = vpop.xlane.xlu1 %3841 }
 0xf0c   :  { %7658 = vpow2.f32 %v3927_v51  ;;  %v3898_v35 = vsub.f32 %v9137_v48, %v3842_v17  ;;  %v7299_v17 = vpack.c.bf16 %v7501_v41, %v7500_v36 }
 0xf0d   :  { %7660 = vpow2.f32 %v3925_v52 }
 0xf0e   :  { %v7655_v8 = vpop.eup %7654  ;;  %v3929_v58 = vmul.f32 1.442695, %v3898_v35 }
 0xf0f   :  { %6943 = vmatmul.mubr.msk.f32.vlgmr.msra.gmra.mrb[106].mxu0 %vm1168_vm8, %v7655_v8  ;;  %v3845_v1 = vpop.xlane.xlu1 %3844  ;;  %v4764_v26 = vsel %vm1168_vm8, %v7655_v8, 0.0 }
 0xf10   :  { %7662 = vpow2.f32 %v3929_v58  ;;  %7294 = vmatpush3.bf16.msra.mxu0 %v7293_v23  ;;  %v3899_v2 = vsub.f32 %v9141_v63, %v3845_v1  ;;  %4765 = vadd.xlane.f32.xlu0 %v4764_v26  ;;  %v7506_v23 = vunpack.i.h.bf16 %v9215_v14  ;;  %v7505_v58 = vunpack.i.l.bf16 %v9215_v14 }
 0xf11   :  { %v3848_v55 = vpop.xlane.xlu0 %3847  ;;  %6945 = vmatprep.mubr.msk.f32.mxu0 %vm7795_vm0, %v7796_v4  ;;  %6970 = vmatprep.subr.mxu0 %v7796_v4 }
 0xf12   :  { %v7657_v48 = vpop.eup %7656  ;;  %v3931_v60 = vmul.f32 1.442695, %v3899_v2  ;;  %v3900_v40 = vsub.f32 %v9145_v18, %v3848_v55 }
 0xf13   :  { %6946 = vmatmul.mubr.msk.f32.gmra.mrb[108].mxu0 %vm1168_vm8, %v7657_v48  ;;  %v4767_v27 = vsel %vm1168_vm8, %v7657_v48, 0.0 }
 0xf14   :  { %7664 = vpow2.f32 %v3931_v60  ;;  %v3933_v63 = vmul.f32 1.442695, %v3900_v40  ;;  %6971 = vmatpush3.msk.msra.mxu0 %vm1331_vm7, %v9209_v28  ;;  %4768 = vadd.xlane.f32.xlu0 %v4767_v27 }
 0xf15   :  { %v3851_v19 = vpop.xlane.xlu0 %3850  ;;  %6948 = vmatprep.mubr.msk.f32.mxu0 %vm7795_vm0, %v7796_v4  ;;  %7298 = vmatprep.subr.bf16.mxu0 %v7794_v0 }
 0xf16   :  { %v7659_v56 = vpop.eup %7658  ;;  %7666 = vpow2.f32 %v3933_v63  ;;  %v3901_v18 = vsub.f32 %v9149_v9, %v3851_v19 }
 0xf17   :  { %v7661_v34 = vpop.eup %7660  ;;  %6958 = vmatmul.mubr.msk.f32.vlgmr.msra.gmra.mrb[104].mxu1 %vm1168_vm8, %v7659_v56  ;;  %v3857_v6 = vpop.xlane.xlu1 %3856  ;;  %v4773_v53 = vsel %vm1168_vm8, %v7659_v56, 0.0 }
 0xf18   :  { %v3935_v32 = vmul.f32 1.442695, %v3901_v18  ;;  %7297 = vmatpush3.bf16.msra.mxu1 %v7296_v44  ;;  %v3903_v28 = vsub.f32 %v9153_v42, %v3857_v6  ;;  %6949 = vmatmul.mubr.msk.f32.gmra.mrb[110].mxu0 %vm1168_vm8, %v7661_v34 }
 0xf19   :  { %4774 = vadd.xlane.f32.xlu1 %v4773_v53  ;;  %v3854_v7 = vpop.xlane.xlu0 %3853  ;;  %6960 = vmatprep.mubr.msk.f32.mxu1 %vm7795_vm0, %v7796_v4 }
 0xf1a   :  { %v7663_v47 = vpop.eup %7662  ;;  %7668 = vpow2.f32 %v3935_v32  ;;  %v3939_v9 = vmul.f32 1.442695, %v3903_v28  ;;  %v3902_v13 = vsub.f32 %v9157_v33, %v3854_v7  ;;  %6985 = vmatprep.subr.mxu1 %v7796_v4  ;;  %6972 = vmatprep.mubr.msk.f32.mxu0 %vm7795_vm0, %v7796_v4  ;;  %v7511_v28 = vunpack.i.h.bf16 %v9224_v59 }
 0xf1b   :  { %6961 = vmatmul.mubr.msk.f32.gmra.mrb[106].mxu1 %vm1168_vm8, %v7663_v47  ;;  %v3860_v42 = vpop.xlane.xlu1 %3859  ;;  %v4776_v31 = vsel %vm1168_vm8, %v7663_v47, 0.0  ;;  %v7510_v7 = vunpack.i.l.bf16 %v9224_v59 }
 0xf1c   :  { %7670 = vpow2.f32 %v3939_v9  ;;  %v3937_v49 = vmul.f32 1.442695, %v3902_v13  ;;  %6986 = vmatpush3.msk.msra.mxu1 %vm1331_vm7, %v9211_v10  ;;  %v3904_v33 = vsub.f32 %v9161_v11, %v3860_v42  ;;  %6963 = vmatprep.mubr.msk.f32.mxu1 %vm7795_vm0, %v7796_v4  ;;  %v4770_v10 = vsel %vm1175_vm9, %v7661_v34, 0.0 }
 0xf1d   :  { %4777 = vadd.xlane.f32.xlu1 %v4776_v31  ;;  %7301 = vmatprep.subr.bf16.mxu1 %v7794_v0 }
 0xf1e   :  { %v7665_v61 = vpop.eup %7664  ;;  %7672 = vpow2.f32 %v3937_v49  ;;  %v3941_v51 = vmul.f32 1.442695, %v3904_v33  ;;  %v7305_v49 = vpack.c.bf16 %v7511_v28, %v7510_v7 }
 0xf1f   :  { %6964 = vmatmul.mubr.msk.f32.gmra.mrb[108].mxu1 %vm1168_vm8, %v7665_v61  ;;  %v3863_v52 = vpop.xlane.xlu0 %3862  ;;  %v4779_v30 = vsel %vm1175_vm9, %v7665_v61, 0.0 }
 0xf20   :  { %v7667_v16 = vpop.eup %7666  ;;  %7674 = vpow2.f32 %v3941_v51  ;;  %v3905_v35 = vsub.f32 %v9167_v38, %v3863_v52  ;;  %6987 = vmatprep.mubr.msk.f32.mxu1 %vm7795_vm0, %v7796_v4 }
 0xf21   :  { %4771 = vadd.xlane.f32.xlu1 %v4770_v10  ;;  %6973 = vmatmul.mubr.msk.f32.vlgmr.msra.gmra.mrb[112].mxu0 %vm1168_vm8, %v7667_v16  ;;  %v3869_v11 = vpop.xlane.xlu1 %3868  ;;  %v4782_v8 = vsel %vm1168_vm8, %v7667_v16, 0.0 }
 0xf22   :  { %v3943_v1 = vmul.f32 1.442695, %v3905_v35  ;;  %7300 = vmatpush3.bf16.msra.mxu0 %v7299_v17  ;;  %v3907_v26 = vsub.f32 %v9171_v15, %v3869_v11  ;;  %4783 = vadd.xlane.f32.xlu0 %v4782_v8  ;;  %v7302_v15 = vpack.c.bf16 %v7506_v23, %v7505_v58 }
 0xf23   :  { %v3866_v38 = vpop.xlane.xlu0 %3865  ;;  %6975 = vmatprep.mubr.msk.f32.mxu0 %vm7795_vm0, %v7796_v4  ;;  %7000 = vmatprep.subr.mxu0 %v7796_v4 }
 0xf24   :  { %v7669_v2 = vpop.eup %7668  ;;  %7676 = vpow2.f32 %v3943_v1  ;;  %v3947_v55 = vmul.f32 1.442695, %v3907_v26  ;;  %v3906_v48 = vsub.f32 %v9165_v54, %v3866_v38 }
 0xf25   :  { %4780 = vadd.xlane.f32.xlu1 %v4779_v30  ;;  %6976 = vmatmul.mubr.msk.f32.gmra.mrb[114].mxu0 %vm1168_vm8, %v7669_v2  ;;  %v3872_v14 = vpop.xlane.xlu1 %3871  ;;  %v4785_v19 = vsel %vm1168_vm8, %v7669_v2, 0.0 }
 0xf26   :  { %v9309_v3 = vpop.eup %7670  ;;  %7678 = vpow2.f32 %v3947_v55  ;;  %v3945_v60 = vmul.f32 1.442695, %v3906_v48  ;;  %7001 = vmatpush3.msk.msra.mxu0 %vm1331_vm7, %v9213_v12  ;;  %6978 = vmatprep.mubr.msk.f32.mxu0 %vm7795_vm0, %v7796_v4  ;;  %v3908_v40 = vsub.f32 %v9179_v62, %v3872_v14  ;;  %v4755_v55 = vsel %vm1168_vm8, %v9228_v25, 0.0 }
 0xf27   :  { %6988 = vmatmul.mubr.msk.f32.vlgmr.msra.gmra.mrb[110].mxu1 %vm1168_vm8, %v9309_v3  ;;  %v3875_v54 = vpop.xlane.xlu0 %3874  ;;  %7304 = vmatprep.subr.bf16.mxu0 %v7794_v0  ;;  %v4791_v30 = vsel %vm1168_vm8, %v9309_v3, 0.0  ;;  %v4758_v14 = vsel %vm1168_vm8, %v9235_v50, 0.0 }
 0xf28   :  { %v7673_v27 = vpop.eup %7672  ;;  %7680 = vpow2.f32 %v3945_v60  ;;  %7303 = vmatpush3.bf16.msra.mxu1 %v7302_v15  ;;  %v3909_v63 = vsub.f32 %v9175_v46, %v3875_v54  ;;  %6990 = vmatprep.mubr.msk.f32.mxu1 %vm7795_vm0, %v7796_v4  ;;  %v3949_v46 = vmul.f32 1.442695, %v3908_v40  ;;  %v4761_v15 = vsel %vm1175_vm9, %v9243_v24, 0.0 }
 0xf29   :  { %4786 = vadd.xlane.f32.xlu1 %v4785_v19  ;;  %6979 = vmatmul.mubr.msk.f32.gmra.mrb[116].mxu0 %vm1168_vm8, %v7673_v27  ;;  %v3884_v62 = vpop.xlane.xlu1 %3883  ;;  %v4788_v12 = vsel %vm1175_vm9, %v7673_v27, 0.0 }
 0xf2a   :  { %v9325_v56 = vpop.eup %7674  ;;  %v3951_v44 = vmul.f32 1.442695, %v3909_v63  ;;  %v3912_v18 = vsub.f32 %v9187_v57, %v3884_v62  ;;  %4789 = vadd.xlane.f32.xlu0 %v4788_v12  ;;  %7002 = vmatprep.mubr.msk.f32.mxu0 %vm7795_vm0, %v7796_v4 }
 0xf2b   :  { %6991 = vmatmul.mubr.msk.f32.gmra.mrb[112].mxu1 %vm1168_vm8, %v9325_v56  ;;  %v3878_v34 = vpop.xlane.xlu0 %3877  ;;  %7015 = vmatprep.subr.mxu1 %v7796_v4  ;;  %v4794_v25 = vsel %vm1168_vm8, %v9325_v56, 0.0 }
 0xf2c   :  { %7682 = vpow2.f32 %v3951_v44  ;;  %v3910_v6 = vsub.f32 %v9183_v21, %v3878_v34  ;;  %6993 = vmatprep.mubr.msk.f32.mxu1 %vm7795_vm0, %v7796_v4  ;;  %v3957_v53 = vmul.f32 1.442695, %v3912_v18  ;;  %v6085_v34 = vld [vmem:[%s9697_s4 + $0x28] sm:$0xff] }
 0xf2d   :  { %v3887_v32 = vpop.xlane.xlu1 %3886  ;;  %7684 = vpow2.f32 %v3949_v46  ;;  %v6084_v46 = vld [vmem:[%s9697_s4 + $0x20] sm:$0xff] }
 0xf2e   :  { %v9336_v57 = vpop.eup %7676  ;;  %v3953_v47 = vmul.f32 1.442695, %v3910_v6  ;;  %v3913_v9 = vsub.f32 %v9195_v43, %v3887_v32  ;;  %v7308_v32 = vpack.c.bf16 %v6085_v34, %v6084_v46 }
 0xf2f   :  { %6994 = vmatmul.mubr.msk.f32.gmra.mrb[114].mxu1 %vm1168_vm8, %v9336_v57  ;;  %v3881_v13 = vpop.xlane.xlu0 %3880  ;;  %v4797_v60 = vsel %vm1175_vm9, %v9336_v57, 0.0 }
 0xf30   :  { %v7679_v21 = vpop.eup %7678  ;;  %7686 = vpow2.f32 %v3953_v47  ;;  %v3959_v41 = vmul.f32 1.442695, %v3913_v9  ;;  %v3911_v42 = vsub.f32 %v9191_v20, %v3881_v13  ;;  %7017 = vmatprep.mubr.msk.f32.mxu1 %vm7795_vm0, %v7796_v4  ;;  %v6086_v47 = vld [vmem:[%s9697_s4 + $0x30] sm:$0xff]  ;;  %v6087_v9 = vld [vmem:[%s9697_s4 + $0x38] sm:$0xff] }
 0xf31   :  { %7688 = vpow2.f32 %v3957_v53  ;;  %v3890_v31 = vpop.xlane.xlu1 %3889  ;;  %v4803_v59 = vsel %vm1168_vm8, %v7679_v21, 0.0 }
 0xf32   :  { %v7681_v36 = vpop.eup %7680  ;;  %7690 = vpow2.f32 %v3959_v41  ;;  %v3955_v43 = vmul.f32 1.442695, %v3911_v42  ;;  %v3914_v33 = vsub.f32 %v9201_v5, %v3890_v31  ;;  %4804 = vadd.xlane.f32.xlu1 %v4803_v59  ;;  %v7311_v42 = vpack.c.bf16 %v6087_v9, %v6086_v47 }
 0xf33   :  { %7003 = vmatmul.mubr.msk.f32.vlgmr.msra.gmra.mrb[118].mxu0 %vm1168_vm8, %v7681_v36  ;;  %v4562_v61 = vpop.permute.xlu0 %4561  ;;  %v4800_v51 = vsel %vm1168_vm8, %v7681_v36, 0.0 }
 0xf34   :  { %7692 = vpow2.f32 %v3955_v43  ;;  %7306 = vmatpush3.bf16.msra.mxu0 %v7305_v49  ;;  %4801 = vadd.xlane.f32.xlu0 %v4800_v51  ;;  %v3961_v16 = vmul.f32 1.442695, %v3914_v33 }
 0xf35   :  { %7016 = vmatpush3.msk.msra.mxu1 %vm1331_vm7, %v4562_v61  ;;  %v4661_v20 = vpop.permute.xlu1 %4660  ;;  %7005 = vmatprep.mubr.msk.f32.mxu0 %vm7795_vm0, %v7796_v4 }
 0xf36   :  { %v7683_v52 = vpop.eup %7682  ;;  %7030 = vmatprep.subr.mxu0 %v7796_v4  ;;  %7307 = vmatprep.subr.bf16.mxu1 %v7794_v0  ;;  %7694 = vpow2.f32 %v3961_v16 }
 0xf37   :  { %7006 = vmatmul.mubr.msk.f32.gmra.mrb[120].mxu0 %vm1168_vm8, %v7679_v21  ;;  %7018 = vmatmul.mubr.msk.f32.vlgmr.msra.gmra.mrb[116].mxu1 %vm1168_vm8, %v7683_v52  ;;  %v4809_v5 = vsel %vm1168_vm8, %v7683_v52, 0.0  ;;  %v7685_v17 = vpop.eup %7684 }
 0xf38   :  { %7031 = vmatpush3.msk.msra.mxu0 %vm1331_vm7, %v4661_v20  ;;  %4810 = vadd.xlane.f32.xlu0 %v4809_v5  ;;  %v4806_v38 = vsel %vm1175_vm9, %v7685_v17, 0.0 }
 0xf39   :  { %7008 = vmatprep.mubr.msk.f32.mxu0 %vm7795_vm0, %v7796_v4  ;;  %7020 = vmatprep.mubr.msk.f32.mxu1 %vm7795_vm0, %v7796_v4 }
 0xf3a   :  { %v7687_v35 = vpop.eup %7686  ;;  %7313 = vmatprep.subr.bf16.mxu0 %v7794_v0  ;;  %7309 = vmatpush3.bf16.msra.mxu1 %v7308_v32 }
 0xf3b   :  { %v7689_v10 = vpop.eup %7688  ;;  %7009 = vmatmul.mubr.msk.f32.gmra.mrb[122].mxu0 %vm1168_vm8, %v7685_v17  ;;  %7021 = vmatmul.mubr.msk.f32.gmra.mrb[118].mxu1 %vm1168_vm8, %v7687_v35  ;;  %v4812_v11 = vsel %vm1168_vm8, %v7687_v35, 0.0 }
 0xf3c   :  { %v7691_v8 = vpop.eup %7690  ;;  %4813 = vadd.xlane.f32.xlu0 %v4812_v11  ;;  %7023 = vmatprep.mubr.msk.f32.mxu1 %vm7795_vm0, %v7796_v4  ;;  %v4818_v1 = vsel %vm1168_vm8, %v7689_v10, 0.0 }
 0xf3d   :  { %7032 = vmatprep.mubr.msk.f32.mxu0 %vm7795_vm0, %v7796_v4  ;;  %v4821_v23 = vsel %vm1168_vm8, %v7691_v8, 0.0  ;;  %7310 = vmatprep.subr.bf16.mxu1 %v7794_v0 }
 0xf3e   :  { %v7693_v58 = vpop.eup %7692  ;;  %4822 = vadd.xlane.f32.xlu1 %v4821_v23  ;;  %7312 = vmatpush3.bf16.msra.mxu1 %v7311_v42 }
 0xf3f   :  { %7024 = vmatmul.mubr.msk.f32.gmra.mrb[120].mxu1 %vm1168_vm8, %v7693_v58  ;;  %7033 = vmatmul.mubr.msk.f32.vlgmr.msra.gmra.mrb[124].mxu0 %vm1168_vm8, %v7689_v10  ;;  %v4815_v26 = vsel %vm1175_vm9, %v7693_v58, 0.0 }
 0xf40   :  { %4819 = vadd.xlane.f32.xlu0 %v4818_v1  ;;  %7035 = vmatprep.mubr.msk.f32.mxu0 %vm7795_vm0, %v7796_v4  ;;  %v7695_v2 = vpop.eup %7694 }
 0xf41   :  { %7049 = vmatprep.mubr.msk.f32.mxu1 %vm7795_vm0, %v7796_v4  ;;  %v4824_v48 = vsel %vm1175_vm9, %v7695_v2, 0.0  ;;  %7319 = vmatprep.subr.bf16.mxu1 %v7794_v0 }
 0xf42   :  { %4816 = vadd.xlane.f32.xlu1 %v4815_v26 }
 0xf43   :  { %7036 = vmatmul.mubr.msk.f32.gmra.mrb[126].mxu0 %vm1168_vm8, %v7691_v8 }
 0xf44   :  { %4807 = vadd.xlane.f32.xlu0 %v4806_v38  ;;  %7038 = vmatprep.mubr.msk.f32.mxu0 %vm7795_vm0, %v7796_v4 }
 0xf46   :  { %4756 = vadd.xlane.f32.xlu1 %v4755_v55 }
 0xf47   :  { %7039 = vmatmul.mubr.msk.f32.gmra.mrb[128].mxu0 %vm1168_vm8, %v7695_v2 }
 0xf48   :  { %4825 = vadd.xlane.f32.xlu0 %v4824_v48  ;;  %7072 = vmatprep.mubr.msk.f32.mxu0 %vm7795_vm0, %v7796_v4 }
 0xf4a   :  { %4792 = vadd.xlane.f32.xlu1 %v4791_v30 }
 0xf4c   :  { %4759 = vadd.xlane.f32.xlu0 %v4758_v14 }
 0xf4e   :  { %4795 = vadd.xlane.f32.xlu1 %v4794_v25 }
 0xf50   :  { %4762 = vadd.xlane.f32.xlu0 %v4761_v15 }
 0xf54   :  { %4798 = vadd.xlane.f32.xlu0 %v4797_v60 }
 0xf9a   :  { %v9400_v40 = vpop.f32.mrb[98].mxu1 }
 0xf9b   :  { %v6929_v3 = vpop.f32.mrb[99].mxu1 }
 0xf9d   :  { %v4766_v19 = vpop.xlane.xlu0 %4765 }
 0xf9e   :  { %v9402_v54 = vpop.f32.mrb[100].mxu1  ;;  %7696 = vrcp.f32 %v4766_v19 }
 0xf9f   :  { %v6932_v27 = vpop.f32.mrb[101].mxu1 }
 0xfa1   :  { %v4769_v12 = vpop.xlane.xlu0 %4768 }
 0xfa2   :  { %v9404_v50 = vpop.f32.mrb[102].mxu1  ;;  %7698 = vrcp.f32 %v4769_v12 }
 0xfa3   :  { %v6935_v63 = vpop.f32.mrb[103].mxu1 }
 0xfa6   :  { %v4775_v62 = vpop.xlane.xlu1 %4774 }
 0xfa7   :  { %7700 = vrcp.f32 %v4775_v62 }
 0xfa8   :  { %v7697_v44 = vpop.eup %7696 }
 0xfaa   :  { %v4778_v56 = vpop.xlane.xlu1 %4777 }
 0xfab   :  { %7702 = vrcp.f32 %v4778_v56 }
 0xfac   :  { %v7699_v57 = vpop.eup %7698 }
 0xfae   :  { %v4772_v24 = vpop.xlane.xlu1 %4771 }
 0xfaf   :  { %v4784_v28 = vpop.xlane.xlu0 %4783  ;;  %7704 = vrcp.f32 %v4772_v24 }
 0xfb0   :  { %7706 = vrcp.f32 %v4784_v28 }
 0xfb1   :  { %v7701_v31 = vpop.eup %7700 }
 0xfb2   :  { %v4781_v13 = vpop.xlane.xlu1 %4780 }
 0xfb3   :  { %7708 = vrcp.f32 %v4781_v13 }
 0xfb5   :  { %v7703_v20 = vpop.eup %7702 }
 0xfb6   :  { %v4787_v51 = vpop.xlane.xlu1 %4786 }
 0xfb7   :  { %v4790_v59 = vpop.xlane.xlu0 %4789  ;;  %7710 = vrcp.f32 %v4787_v51 }
 0xfb8   :  { %7712 = vrcp.f32 %v4790_v59 }
 0xfb9   :  { %v7705_v35 = vpop.eup %7704 }
 0xfba   :  { %v7707_v23 = vpop.eup %7706 }
 0xfbd   :  { %v7709_v2 = vpop.eup %7708 }
 0xfbf   :  { %v4805_v63 = vpop.xlane.xlu1 %4804 }
 0xfc1   :  { %v4802_v16 = vpop.xlane.xlu0 %4801  ;;  %v7711_v14 = vpop.eup %7710 }
 0xfc2   :  { %v7713_v27 = vpop.eup %7712  ;;  %7714 = vrcp.f32 %v4802_v16 }
 0xfc3   :  { %7716 = vrcp.f32 %v4805_v63 }
 0xfc5   :  { %v4811_v1 = vpop.xlane.xlu0 %4810 }
 0xfc6   :  { %7718 = vrcp.f32 %v4811_v1 }
 0xfc9   :  { %v4814_v15 = vpop.xlane.xlu0 %4813 }
 0xfca   :  { %7720 = vrcp.f32 %v4814_v15 }
 0xfcc   :  { %v7715_v34 = vpop.eup %7714 }
 0xfe2   :  { %v4147_v18 = vpop.f32.mrb[106].mxu0 }
 0xfe3   :  { %v4878_v6 = vmul.f32 %v7697_v44, %v4147_v18  ;;  %v6944_v53 = vpop.f32.mrb[107].mxu0  ;;  %v4820_v44 = vpop.xlane.xlu0 %4819 }
 0xfe4   :  { %7722 = vrcp.f32 %v4820_v44 }
 0xfe5   :  { %4902 = vrot.lane.b32.xlu1 %v4878_v6, %s7802_s17  ;;  %v4823_v6 = vpop.xlane.xlu1 %4822 }
 0xfe6   :  { %v4152_v7 = vpop.f32.mrb[108].mxu0  ;;  %7724 = vrcp.f32 %v4823_v6 }
 0xfe7   :  { %v4879_v21 = vmul.f32 %v7699_v57, %v4152_v7  ;;  %v6947_v41 = vpop.f32.mrb[109].mxu0  ;;  %v4808_v32 = vpop.xlane.xlu0 %4807 }
 0xfe8   :  { %v7717_v7 = vpop.eup %7716  ;;  %7726 = vrcp.f32 %v4808_v32 }
 0xfe9   :  { %4904 = vrot.lane.b32.xlu1 %v4879_v21, %s7802_s17  ;;  %v7719_v47 = vpop.eup %7718  ;;  %v4817_v59 = vpop.xlane.xlu1 %4816 }
 0xfea   :  { %v4246_v36 = vpop.f32.mrb[104].mxu1  ;;  %7728 = vrcp.f32 %v4817_v59 }
 0xfeb   :  { %v4157_v49 = vpop.f32.mrb[110].mxu0  ;;  %v4881_v43 = vmul.f32 %v7701_v31, %v4246_v36  ;;  %v6959_v33 = vpop.f32.mrb[105].mxu1 }
 0xfec   :  { %v6950_v61 = vpop.f32.mrb[111].mxu0  ;;  %v4880_v11 = vmul.f32 %v7705_v35, %v4157_v49  ;;  %v4826_v36 = vpop.xlane.xlu0 %4825 }
 0xfed   :  { %4914 = vrot.lane.b32.xlu0 %v4881_v43, %s7803_s2  ;;  %v7721_v49 = vpop.eup %7720  ;;  %7730 = vrcp.f32 %v4826_v36  ;;  %v4757_v15 = vpop.xlane.xlu1 %4756 }
 0xfee   :  { %v4251_v52 = vpop.f32.mrb[106].mxu1  ;;  %7732 = vrcp.f32 %v4757_v15 }
 0xfef   :  { %v4882_v5 = vmul.f32 %v7703_v20, %v4251_v52  ;;  %v6962_v17 = vpop.f32.mrb[107].mxu1  ;;  %v7723_v52 = vpop.eup %7722 }
 0xff1   :  { %4916 = vrot.lane.b32.xlu0 %v4882_v5, %s7803_s2 }
 0xff2   :  { %v4256_v10 = vpop.f32.mrb[108].mxu1 }
 0xff3   :  { %v6965_v8 = vpop.f32.mrb[109].mxu1  ;;  %v4883_v55 = vmul.f32 %v7709_v2, %v4256_v10 }
 0xff4   :  { %v4345_v58 = vpop.f32.mrb[112].mxu0 }
 0xff5   :  { %v4884_v26 = vmul.f32 %v7707_v23, %v4345_v58  ;;  %4906 = vrot.lane.b32.xlu0 %v4880_v11, %s7802_s17  ;;  %v6974_v38 = vpop.f32.mrb[113].mxu0  ;;  %v7725_v11 = vpop.eup %7724 }
 0xff6   :  { %v7727_v8 = vpop.eup %7726 }
 0xff7   :  { %4926 = vrot.lane.b32.xlu1 %v4884_v26, %s7804_s18  ;;  %v7729_v38 = vpop.eup %7728 }
 0xff8   :  { %v4350_v48 = vpop.f32.mrb[114].mxu0  ;;  %v7731_v2 = vpop.eup %7730 }
 0xff9   :  { %4918 = vrot.lane.b32.xlu0 %v4883_v55, %s7803_s2  ;;  %v6977_v30 = vpop.f32.mrb[115].mxu0  ;;  %v4885_v60 = vmul.f32 %v7711_v14, %v4350_v48 }
 0xffa   :  { %v9427_v25 = vpop.f32.mrb[110].mxu1 }
 0xffb   :  { %v6989_v3 = vpop.f32.mrb[111].mxu1 }
 0xffc   :  { %v4355_v19 = vpop.f32.mrb[116].mxu0  ;;  %v4793_v3 = vpop.xlane.xlu1 %4792 }
 0xffd   :  { %v4886_v62 = vmul.f32 %v7713_v27, %v4355_v19  ;;  %4928 = vrot.lane.b32.xlu0 %v4885_v60, %s7804_s18  ;;  %v6980_v12 = vpop.f32.mrb[117].mxu0  ;;  %v4760_v60 = vpop.xlane.xlu0 %4759 }
 0xffe   :  { %v9430_v56 = vpop.f32.mrb[112].mxu1  ;;  %7734 = vrcp.f32 %v4760_v60 }
 0xfff   :  { %v6992_v24 = vpop.f32.mrb[113].mxu1  ;;  %4930 = vrot.lane.b32.xlu1 %v4886_v62, %s7804_s18  ;;  %7736 = vrcp.f32 %v4793_v3 }
0x1000   :  { %v4796_v63 = vpop.xlane.xlu1 %4795  ;;  %v7733_v24 = vpop.eup %7732 }
0x1001   :  { %v4763_v27 = vpop.xlane.xlu0 %4762 }
0x1002   :  { %v9433_v18 = vpop.f32.mrb[114].mxu1  ;;  %7738 = vrcp.f32 %v4763_v27 }
0x1003   :  { %v6995_v46 = vpop.f32.mrb[115].mxu1  ;;  %7740 = vrcp.f32 %v4796_v63  ;;  %v6094_v63 = vld [vmem:[%s9698_s7 + $0x2] ss:$0 sm:$0xff] }
0x1005   :  { %v4799_v19 = vpop.xlane.xlu0 %4798 }
0x1006   :  { %v4543_v53 = vpop.f32.mrb[118].mxu0  ;;  %7742 = vrcp.f32 %v4799_v19 }
0x1007   :  { %v4890_v57 = vmul.f32 %v7715_v34, %v4543_v53  ;;  %v7004_v28 = vpop.f32.mrb[119].mxu0  ;;  %v4875_v34 = vmul.f32 %v7733_v24, %v9400_v40 }
0x1008   :  { %v7735_v32 = vpop.eup %7734 }
0x1009   :  { %4947 = vrot.lane.b32.xlu1 %v4890_v57, %s7802_s17  ;;  %v7737_v59 = vpop.eup %7736 }
0x100a   :  { %v4548_v9 = vpop.f32.mrb[120].mxu0  ;;  %v4642_v13 = vpop.f32.mrb[116].mxu1 }
0x100b   :  { %v4891_v21 = vmul.f32 %v7717_v7, %v4548_v9  ;;  %v4893_v41 = vmul.f32 %v7719_v47, %v4642_v13  ;;  %v7007_v42 = vpop.f32.mrb[121].mxu0  ;;  %v7019_v31 = vpop.f32.mrb[117].mxu1  ;;  %v4876_v9 = vmul.f32 %v7735_v32, %v9402_v54 }
0x100c   :  { %v7739_v36 = vpop.eup %7738 }
0x100d   :  { %4959 = vrot.lane.b32.xlu1 %v4893_v41, %s7803_s2  ;;  %4949 = vrot.lane.b32.xlu0 %v4891_v21, %s7802_s17 }
0x100e   :  { %v4553_v43 = vpop.f32.mrb[122].mxu0  ;;  %v4647_v33 = vpop.f32.mrb[118].mxu1 }
0x100f   :  { %v4894_v61 = vmul.f32 %v7721_v49, %v4647_v33  ;;  %v7010_v51 = vpop.f32.mrb[123].mxu0  ;;  %v7022_v20 = vpop.f32.mrb[119].mxu1  ;;  %v4892_v58 = vmul.f32 %v7727_v8, %v4553_v43  ;;  %v4887_v43 = vmul.f32 %v7737_v59, %v9427_v25  ;;  %v4877_v33 = vmul.f32 %v7739_v36, %v9404_v50 }
0x1010   :  { %v7741_v51 = vpop.eup %7740 }
0x1011   :  { %4961 = vrot.lane.b32.xlu1 %v4894_v61, %s7803_s2 }
0x1012   :  { %v4652_v16 = vpop.f32.mrb[120].mxu1  ;;  %v4741_v5 = vpop.f32.mrb[124].mxu0 }
0x1013   :  { %v4896_v17 = vmul.f32 %v7723_v52, %v4741_v5  ;;  %v7025_v35 = vpop.f32.mrb[121].mxu1  ;;  %v7034_v10 = vpop.f32.mrb[125].mxu0  ;;  %v4895_v48 = vmul.f32 %v7729_v38, %v4652_v16  ;;  %v4888_v5 = vmul.f32 %v7741_v51, %v9430_v56 }
0x1015   :  { %4971 = vrot.lane.b32.xlu1 %v4896_v17, %s7804_s18 }
0x1016   :  { %v4746_v23 = vpop.f32.mrb[126].mxu0 }
0x1017   :  { %v4897_v1 = vmul.f32 %v7725_v11, %v4746_v23  ;;  %v7037_v26 = vpop.f32.mrb[127].mxu0 }
0x1018   :  { %v7743_v26 = vpop.eup %7742 }
0x1019   :  { %4951 = vrot.lane.b32.xlu1 %v4892_v58, %s7802_s17  ;;  %4973 = vrot.lane.b32.xlu0 %v4897_v1, %s7804_s18  ;;  %v4889_v38 = vmul.f32 %v7743_v26, %v9433_v18 }
0x101a   :  { %v4751_v55 = vpop.f32.mrb[128].mxu0 }
0x101b   :  { %v4898_v30 = vmul.f32 %v7731_v2, %v4751_v55  ;;  %v7040_v14 = vpop.f32.mrb[129].mxu0 }
0x101d   :  { %4963 = vrot.lane.b32.xlu0 %v4895_v48, %s7803_s2  ;;  %4975 = vrot.lane.b32.xlu1 %v4898_v30, %s7804_s18 }
0x1057   :  { %v4903_v62 = vpop.permute.xlu1 %4902 }
0x1058   :  { %v4935_v53 = vsel %vm389_vm5, %v4875_v34, %v4903_v62 }
0x105b   :  { %v4905_v46 = vpop.permute.xlu1 %4904 }
0x105c   :  { %v4936_v13 = vsel %vm389_vm5, %v4876_v9, %v4905_v46 }
0x105f   :  { %v4915_v12 = vpop.permute.xlu0 %4914 }
0x1060   :  { %v4938_v57 = vsel %vm2290_vm10, %v4935_v53, %v4915_v12 }
0x1063   :  { %v4917_v44 = vpop.permute.xlu0 %4916 }
0x1064   :  { %v4939_v40 = vsel %vm2290_vm10, %v4936_v13, %v4917_v44 }
0x1067   :  { %v4907_v6 = vpop.permute.xlu0 %4906 }
0x1068   :  { %v4937_v17 = vsel %vm389_vm5, %v4877_v33, %v4907_v6 }
0x1069   :  { %v4927_v28 = vpop.permute.xlu1 %4926 }
0x106a   :  { %v4941_v7 = vsel %vm2294_vm11, %v4938_v57, %v4927_v28 }
0x106b   :  { %v4919_v47 = vpop.permute.xlu0 %4918  ;;  %7050 = vmatmul.mubr.msk.f32.vlgmr.msra.gmra.mrb[122].mxu1 %vm154_vm2, %v4941_v7 }
0x106c   :  { %7052 = vmatprep.mubr.msk.f32.mxu1 %vm7795_vm0, %v7796_v4  ;;  %v4940_v10 = vsel %vm2290_vm10, %v4937_v17, %v4919_v47 }
0x106f   :  { %v4929_v21 = vpop.permute.xlu0 %4928 }
0x1070   :  { %v4942_v41 = vsel %vm2294_vm11, %v4939_v40, %v4929_v21 }
0x1071   :  { %7053 = vmatmul.mubr.msk.f32.gmra.mrb[124].mxu1 %vm154_vm2, %v4942_v41  ;;  %v4931_v42 = vpop.permute.xlu1 %4930 }
0x1072   :  { %7055 = vmatprep.mubr.msk.f32.mxu1 %vm7795_vm0, %v7796_v4  ;;  %v4943_v25 = vsel %vm2294_vm11, %v4940_v10, %v4931_v42  ;;  %v6098_v10 = vld [vmem:[%s9699_s5 + $0x58] sm:$0xff] }
0x107b   :  { %v4948_v31 = vpop.permute.xlu1 %4947 }
0x107c   :  { %v4980_v61 = vsel %vm389_vm5, %v4887_v43, %v4948_v31 }
0x107f   :  { %v4960_v54 = vpop.permute.xlu1 %4959  ;;  %v4950_v52 = vpop.permute.xlu0 %4949 }
0x1080   :  { %v4983_v20 = vsel %vm2290_vm10, %v4980_v61, %v4960_v54  ;;  %v4981_v50 = vsel %vm389_vm5, %v4888_v5, %v4950_v52  ;;  %v6096_v52 = vld [vmem:[%s9699_s5 + $0x48] sm:$0xff] }
0x1083   :  { %v4962_v49 = vpop.permute.xlu1 %4961 }
0x1084   :  { %v4984_v8 = vsel %vm2290_vm10, %v4981_v50, %v4962_v49 }
0x1087   :  { %v4972_v16 = vpop.permute.xlu1 %4971 }
0x1088   :  { %v4986_v35 = vsel %vm2294_vm11, %v4983_v20, %v4972_v16  ;;  %v6095_v20 = vld [vmem:[%s9699_s5 + $0x40] sm:$0xff] }
0x1089   :  { %v4992_v11 = vrot.slane %v4986_v35, 7  ;;  %v7314_v16 = vpack.c.bf16 %v6096_v52, %v6095_v20  ;;  %v6097_v35 = vld [vmem:[%s9699_s5 + $0x50] sm:$0xff] }
0x108b   :  { %v4952_v23 = vpop.permute.xlu1 %4951  ;;  %v4974_v58 = vpop.permute.xlu0 %4973  ;;  %v4998_v1 = vsel %vm1331_vm7, %v4943_v25, %v4992_v11  ;;  %7315 = vmatpush3.bf16.msra.mxu0 %v7314_v16 }
0x108c   :  { %v4987_v56 = vsel %vm2294_vm11, %v4984_v8, %v4974_v58  ;;  %7056 = vmatmul.mubr.msk.f32.gmra.mrb[126].mxu1 %vm154_vm2, %v4998_v1  ;;  %v4982_v55 = vsel %vm389_vm5, %v4889_v38, %v4952_v23  ;;  %7316 = vmatprep.subr.bf16.mxu0 %v7794_v0 }
0x108d   :  { %v4993_v2 = vrot.slane %v4987_v56, 7  ;;  %7058 = vmatprep.mubr.msk.f32.mxu1 %vm7795_vm0, %v7796_v4 }
0x108f   :  { %v4964_v48 = vpop.permute.xlu0 %4963  ;;  %v4976_v30 = vpop.permute.xlu1 %4975  ;;  %v4994_v14 = vsel %vm1331_vm7, %v4992_v11, %v4993_v2  ;;  %v7317_v11 = vpack.c.bf16 %v6098_v10, %v6097_v35 }
0x1090   :  { %v4985_v15 = vsel %vm2290_vm10, %v4982_v55, %v4964_v48  ;;  %7059 = vmatmul.mubr.msk.f32.gmra.mrb[128].mxu1 %vm154_vm2, %v4994_v14 }
0x1091   :  { %v4988_v60 = vsel %vm2294_vm11, %v4985_v15, %v4976_v30  ;;  %7061 = vmatprep.mubr.msk.f32.mxu1 %vm7795_vm0, %v7796_v4  ;;  %7318 = vmatpush3.bf16.msra.mxu0 %v7317_v11 }
0x1092   :  { %v4995_v18 = vrot.slane %v4988_v60, 7  ;;  %7325 = vmatprep.subr.bf16.mxu0 %v7794_v0 }
0x1094   :  { %v4996_v3 = vsel %vm1331_vm7, %v4993_v2, %v4995_v18 }
0x1095   :  { %7062 = vmatmul.mubr.msk.f32.gmra.mrb[130].mxu1 %vm154_vm2, %v4996_v3 }
0x1096   :  { %7095 = vmatprep.mubr.msk.f32.mxu1 %vm7795_vm0, %v7796_v4 }
0x113e   :  { %v5083_v27 = vpop.f32.mrb[122].mxu1 }
0x113f   :  { %v5107_v19 = vadd.f32 %v5083_v27, %v8753_v22  ;;  %v7051_v62 = vpop.f32.mrb[123].mxu1 }
0x1141   :  { %v9490_v12 = vadd.f32 %v6094_v63, %v5107_v19 }
0x1143   :  { %v5123_v24 = vsel %vm154_vm2, %v9490_v12, 0.0 }
0x1144   :  { %v5088_v44 = vpop.f32.mrb[124].mxu1  ;;  %5124 = vadd.xlane.f32.xlu0 %v5123_v24 }
0x1145   :  { %v5108_v46 = vadd.f32 %v5088_v44, %v8758_v39  ;;  %v7054_v34 = vpop.f32.mrb[125].mxu1 }
0x1147   :  { %v9495_v6 = vadd.f32 %v6094_v63, %v5108_v46 }
0x1149   :  { %v5126_v53 = vsel %vm154_vm2, %v9495_v6, 0.0 }
0x114a   :  { %5127 = vadd.xlane.f32.xlu1 %v5126_v53 }
0x115f   :  { %v5093_v32 = vpop.f32.mrb[126].mxu1 }
0x1160   :  { %v5109_v22 = vadd.f32 %v5093_v32, %v8763_v37  ;;  %v7057_v57 = vpop.f32.mrb[127].mxu1 }
0x1162   :  { %v9500_v28 = vadd.f32 %v6094_v63, %v5109_v22 }
0x1163   :  { %v5098_v7 = vpop.f32.mrb[128].mxu1 }
0x1164   :  { %v5110_v47 = vadd.f32 %v5098_v7, %v8768_v45  ;;  %v7060_v9 = vpop.f32.mrb[129].mxu1  ;;  %v5129_v39 = vsel %vm154_vm2, %v9500_v28, 0.0 }
0x1165   :  { %5130 = vadd.xlane.f32.xlu0 %v5129_v39 }
0x1166   :  { %v9505_v13 = vadd.f32 %v6094_v63, %v5110_v47 }
0x1168   :  { %v5103_v40 = vpop.f32.mrb[130].mxu1  ;;  %v5132_v21 = vsel %vm154_vm2, %v9505_v13, 0.0 }
0x1169   :  { %v5111_v41 = vadd.f32 %v5103_v40, %v8773_v29  ;;  %5133 = vadd.xlane.f32.xlu0 %v5132_v21  ;;  %v7063_v37 = vpop.f32.mrb[131].mxu1 }
0x116b   :  { %v9510_v42 = vadd.f32 %v6094_v63, %v5111_v41 }
0x116d   :  { %v5135_v45 = vsel %vm167_vm3, %v9510_v42, 0.0 }
0x116e   :  { %5136 = vadd.xlane.f32.xlu1 %v5135_v45  ;;  %v6106_v45 = vld [vmem:[%s9699_s5 + $0x60] sm:$0xff] }
0x11d1   :  { %v5125_v31 = vpop.xlane.xlu0 %5124 }
0x11d2   :  { %v5138_v54 = vmul.f32 0.03125, %v5125_v31  ;;  %v6107_v31 = vld [vmem:[%s9699_s5 + $0x68] sm:$0xff] }
0x11d4   :  { %v5143_v59 = vsub.f32 %v9490_v12, %v5138_v54  ;;  %v7320_v54 = vpack.c.bf16 %v6107_v31, %v6106_v45 }
0x11d6   :  { %v5148_v36 = vmul.f32 %v5143_v59, %v5143_v59  ;;  %7321 = vmatpush3.bf16.xpose.msra.mxu1 %v7320_v54 }
0x11d7   :  { %v5128_v49 = vpop.xlane.xlu1 %5127  ;;  %7322 = vmatprep.subr.bf16.mxu1 %v7794_v0 }
0x11d8   :  { %v5139_v43 = vmul.f32 0.03125, %v5128_v49  ;;  %v5153_v33 = vsel %vm154_vm2, %v5148_v36, 0.0  ;;  %v6109_v36 = vld [vmem:[%s9699_s5 + $0x78] sm:$0xff] }
0x11d9   :  { %5154 = vadd.xlane.f32.xlu0 %v5153_v33 }
0x11da   :  { %v5144_v29 = vsub.f32 %v9495_v6, %v5139_v43  ;;  %v6100_v43 = vld [vmem:[%s9696_s6 + $0x3] ss:$0 sm:$0xff] }
0x11dc   :  { %v5149_v61 = vmul.f32 %v5144_v29, %v5144_v29 }
0x11de   :  { %v5156_v51 = vsel %vm154_vm2, %v5149_v61, 0.0 }
0x11df   :  { %5157 = vadd.xlane.f32.xlu1 %v5156_v51 }
0x11f2   :  { %v5131_v5 = vpop.xlane.xlu0 %5130 }
0x11f3   :  { %v5140_v17 = vmul.f32 0.03125, %v5131_v5 }
0x11f5   :  { %v5145_v25 = vsub.f32 %v9500_v28, %v5140_v17 }
0x11f6   :  { %v5134_v50 = vpop.xlane.xlu0 %5133 }
0x11f7   :  { %v5141_v8 = vmul.f32 0.03125, %v5134_v50  ;;  %v5150_v23 = vmul.f32 %v5145_v25, %v5145_v25 }
0x11f9   :  { %v5146_v58 = vsub.f32 %v9505_v13, %v5141_v8  ;;  %v5159_v1 = vsel %vm154_vm2, %v5150_v23, 0.0 }
0x11fa   :  { %5160 = vadd.xlane.f32.xlu0 %v5159_v1 }
0x11fb   :  { %v5137_v26 = vpop.xlane.xlu1 %5136  ;;  %v5151_v56 = vmul.f32 %v5146_v58, %v5146_v58 }
0x11fc   :  { %v5142_v38 = vmul.f32 0.03125, %v5137_v26 }
0x11fd   :  { %v5162_v2 = vsel %vm154_vm2, %v5151_v56, 0.0 }
0x11fe   :  { %v5147_v55 = vsub.f32 %v9510_v42, %v5142_v38  ;;  %5163 = vadd.xlane.f32.xlu1 %v5162_v2 }
0x1200   :  { %v5152_v48 = vmul.f32 %v5147_v55, %v5147_v55 }
0x1202   :  { %v5165_v30 = vsel %vm167_vm3, %v5152_v48, 0.0 }
0x1203   :  { %5166 = vadd.xlane.f32.xlu0 %v5165_v30 }
0x1266   :  { %v5155_v14 = vpop.xlane.xlu0 %5154 }
0x1267   :  { %v5168_v15 = vmul.f32 0.03125, %v5155_v14 }
0x1269   :  { %v5173_v60 = vadd.f32 1e-06, %v5168_v15 }
0x126b   :  { %7744 = vrsqrt.f32 %v5173_v60 }
0x126c   :  { %v5158_v18 = vpop.xlane.xlu1 %5157 }
0x126d   :  { %v5169_v3 = vmul.f32 0.03125, %v5158_v18 }
0x126f   :  { %v5174_v27 = vadd.f32 1e-06, %v5169_v3 }
0x1271   :  { %7746 = vrsqrt.f32 %v5174_v27 }
0x1275   :  { %v7745_v63 = vpop.eup %7744 }
0x1276   :  { %v5183_v19 = vmul.f32 %v7745_v63, %v5143_v59  ;;  %v6108_v59 = vld [vmem:[%s9699_s5 + $0x70] sm:$0xff] }
0x1277   :  { %v7323_v49 = vpack.c.bf16 %v6109_v36, %v6108_v59 }
0x1278   :  { %7073 = vmatmul.mubr.msk.f32.vlgmr.msra.gmra.mrb[130].mxu0 %vm154_vm2, %v5183_v19 }
0x1279   :  { %7075 = vmatprep.mubr.msk.f32.mxu0 %vm7795_vm0, %v7796_v4  ;;  %7324 = vmatpush3.bf16.xpose.msra.mxu1 %v7323_v49 }
0x127a   :  { %7331 = vmatprep.subr.bf16.mxu1 %v7794_v0 }
0x127b   :  { %v7747_v62 = vpop.eup %7746 }
0x127c   :  { %v5184_v24 = vmul.f32 %v7747_v62, %v5144_v29 }
0x127e   :  { %7076 = vmatmul.mubr.msk.f32.gmra.mrb[132].mxu0 %vm154_vm2, %v5184_v24 }
0x127f   :  { %7078 = vmatprep.mubr.msk.f32.mxu0 %vm7795_vm0, %v7796_v4 }
0x1287   :  { %v5161_v44 = vpop.xlane.xlu0 %5160 }
0x1288   :  { %v5170_v46 = vmul.f32 0.03125, %v5161_v44 }
0x128a   :  { %v5175_v34 = vadd.f32 1e-06, %v5170_v46 }
0x128b   :  { %v5164_v53 = vpop.xlane.xlu1 %5163 }
0x128c   :  { %7748 = vrsqrt.f32 %v5175_v34  ;;  %v5171_v32 = vmul.f32 0.03125, %v5164_v53 }
0x128e   :  { %v5176_v22 = vadd.f32 1e-06, %v5171_v32 }
0x1290   :  { %7750 = vrsqrt.f32 %v5176_v22  ;;  %v5167_v57 = vpop.xlane.xlu0 %5166 }
0x1291   :  { %v5172_v7 = vmul.f32 0.03125, %v5167_v57 }
0x1293   :  { %v5177_v47 = vadd.f32 1e-06, %v5172_v7 }
0x1295   :  { %7752 = vrsqrt.f32 %v5177_v47 }
0x1296   :  { %v7749_v9 = vpop.eup %7748 }
0x1297   :  { %v5185_v39 = vmul.f32 %v7749_v9, %v5145_v25 }
0x1299   :  { %7079 = vmatmul.mubr.msk.f32.gmra.mrb[134].mxu0 %vm154_vm2, %v5185_v39 }
0x129a   :  { %v7751_v40 = vpop.eup %7750  ;;  %7081 = vmatprep.mubr.msk.f32.mxu0 %vm7795_vm0, %v7796_v4 }
0x129b   :  { %v5186_v21 = vmul.f32 %v7751_v40, %v5146_v58 }
0x129d   :  { %7082 = vmatmul.mubr.msk.f32.gmra.mrb[136].mxu0 %vm154_vm2, %v5186_v21 }
0x129e   :  { %7084 = vmatprep.mubr.msk.f32.mxu0 %vm7795_vm0, %v7796_v4 }
0x129f   :  { %v7753_v41 = vpop.eup %7752 }
0x12a0   :  { %v5187_v37 = vmul.f32 %v7753_v41, %v5147_v55 }
0x12a2   :  { %7085 = vmatmul.mubr.msk.f32.gmra.mrb[138].mxu0 %vm154_vm2, %v5187_v37 }
0x12a3   :  { %7118 = vmatprep.mubr.msk.f32.mxu0 %vm7795_vm0, %v7796_v4 }
0x134b   :  { %v5279_v33 = vpop.f32.mrb[130].mxu0 }
0x134c   :  { %v5280_v29 = vadd.f32 %v6100_v43, %v5279_v33  ;;  %v7074_v61 = vpop.f32.mrb[131].mxu0 }
0x134e   :  { %v5308_v51 = vmul.f32 0.044715, %v5280_v29  ;;  %v5303_v1 = vmul.f32 0.5, %v5280_v29 }
0x1350   :  { %v5313_v20 = vmul.f32 %v5308_v51, %v5280_v29 }
0x1351   :  { %v5284_v52 = vpop.f32.mrb[132].mxu0 }
0x1352   :  { %v5318_v16 = vmul.f32 %v5313_v20, %v5280_v29  ;;  %v5285_v5 = vadd.f32 %v6100_v43, %v5284_v52  ;;  %v7077_v17 = vpop.f32.mrb[133].mxu0  ;;  %v6111_v20 = vld [vmem:[%s9698_s7 + $0x3] ss:$0 sm:$0xff] }
0x1354   :  { %v5323_v35 = vadd.f32 %v5318_v16, %v5280_v29  ;;  %v5309_v10 = vmul.f32 0.044715, %v5285_v5  ;;  %v5304_v2 = vmul.f32 0.5, %v5285_v5 }
0x1356   :  { %v5328_v11 = vmul.f32 0.7978846, %v5323_v35  ;;  %v5314_v25 = vmul.f32 %v5309_v10, %v5285_v5 }
0x1358   :  { %7754 = vtanh.f32 %v5328_v11  ;;  %v5319_v50 = vmul.f32 %v5314_v25, %v5285_v5 }
0x135a   :  { %v5324_v8 = vadd.f32 %v5319_v50, %v5285_v5 }
0x135c   :  { %v5329_v23 = vmul.f32 0.7978846, %v5324_v8 }
0x135e   :  { %7756 = vtanh.f32 %v5329_v23 }
0x1362   :  { %v7755_v58 = vpop.eup %7754 }
0x1363   :  { %v5338_v26 = vadd.f32 1.0, %v7755_v58 }
0x1365   :  { %v5343_v56 = vmul.f32 %v5338_v26, %v5303_v1 }
0x1367   :  { %7096 = vmatmul.mubr.f32.vlgmr.msra.gmra.mrb[132].mxu1 %v5343_v56 }
0x1368   :  { %v7757_v38 = vpop.eup %7756  ;;  %7098 = vmatprep.mubr.msk.f32.mxu1 %vm7795_vm0, %v7796_v4 }
0x1369   :  { %v5339_v55 = vadd.f32 1.0, %v7757_v38 }
0x136b   :  { %v5344_v48 = vmul.f32 %v5339_v55, %v5304_v2 }
0x136c   :  { %v5289_v30 = vpop.f32.mrb[134].mxu0 }
0x136d   :  { %v5290_v14 = vadd.f32 %v6100_v43, %v5289_v30  ;;  %v7080_v15 = vpop.f32.mrb[135].mxu0  ;;  %7099 = vmatmul.mubr.f32.gmra.mrb[134].mxu1 %v5344_v48 }
0x136e   :  { %7101 = vmatprep.mubr.msk.f32.mxu1 %vm7795_vm0, %v7796_v4 }
0x136f   :  { %v5310_v60 = vmul.f32 0.044715, %v5290_v14  ;;  %v5305_v37 = vmul.f32 0.5, %v5290_v14 }
0x1370   :  { %v5294_v18 = vpop.f32.mrb[136].mxu0 }
0x1371   :  { %v5315_v3 = vmul.f32 %v5310_v60, %v5290_v14  ;;  %v5295_v27 = vadd.f32 %v6100_v43, %v5294_v18  ;;  %v7083_v63 = vpop.f32.mrb[137].mxu0 }
0x1373   :  { %v5311_v19 = vmul.f32 0.044715, %v5295_v27  ;;  %v5320_v62 = vmul.f32 %v5315_v3, %v5290_v14  ;;  %v5306_v59 = vmul.f32 0.5, %v5295_v27 }
0x1375   :  { %v5316_v24 = vmul.f32 %v5311_v19, %v5295_v27  ;;  %v5299_v44 = vpop.f32.mrb[138].mxu0  ;;  %v5325_v46 = vadd.f32 %v5320_v62, %v5290_v14 }
0x1376   :  { %v5300_v34 = vadd.f32 %v6100_v43, %v5299_v44  ;;  %v7086_v53 = vpop.f32.mrb[139].mxu0  ;;  %v5523_v44 = vld [vmem:[%s9700_s8 + $0x8] sm:$0xff] }
0x1377   :  { %v5330_v32 = vmul.f32 0.7978846, %v5325_v46  ;;  %v5321_v22 = vmul.f32 %v5316_v24, %v5295_v27 }
0x1378   :  { %v5312_v57 = vmul.f32 0.044715, %v5300_v34  ;;  %v5307_v33 = vmul.f32 0.5, %v5300_v34 }
0x1379   :  { %7758 = vtanh.f32 %v5330_v32  ;;  %v5326_v7 = vadd.f32 %v5321_v22, %v5295_v27  ;;  %v5524_v32 = vld [vmem:[%s9700_s8 + $0x10] sm:$0xff]  ;;  %v5525_v22 = vld [vmem:[%s9700_s8 + $0x18] sm:$0xff] }
0x137a   :  { %v5317_v47 = vmul.f32 %v5312_v57, %v5300_v34  ;;  %v7329_v57 = vpack.c.bf16 %v5525_v22, %v5524_v32 }
0x137b   :  { %v5331_v9 = vmul.f32 0.7978846, %v5326_v7 }
0x137c   :  { %v5322_v39 = vmul.f32 %v5317_v47, %v5300_v34 }
0x137d   :  { %7760 = vtanh.f32 %v5331_v9 }
0x137e   :  { %v5327_v40 = vadd.f32 %v5322_v39, %v5300_v34 }
0x1380   :  { %v5332_v21 = vmul.f32 0.7978846, %v5327_v40 }
0x1382   :  { %7762 = vtanh.f32 %v5332_v21 }
0x1383   :  { %v7759_v41 = vpop.eup %7758 }
0x1384   :  { %v5340_v45 = vadd.f32 1.0, %v7759_v41 }
0x1386   :  { %v5345_v31 = vmul.f32 %v5340_v45, %v5305_v37 }
0x1387   :  { %v7761_v54 = vpop.eup %7760 }
0x1388   :  { %7102 = vmatmul.mubr.f32.gmra.mrb[136].mxu1 %v5345_v31  ;;  %v5341_v36 = vadd.f32 1.0, %v7761_v54 }
0x1389   :  { %7104 = vmatprep.mubr.msk.f32.mxu1 %vm7795_vm0, %v7796_v4 }
0x138a   :  { %v5346_v49 = vmul.f32 %v5341_v36, %v5306_v59 }
0x138c   :  { %v7763_v43 = vpop.eup %7762  ;;  %7105 = vmatmul.mubr.f32.gmra.mrb[138].mxu1 %v5346_v49 }
0x138d   :  { %7107 = vmatprep.mubr.msk.f32.mxu1 %vm7795_vm0, %v7796_v4  ;;  %v5342_v29 = vadd.f32 1.0, %v7763_v43 }
0x138f   :  { %v5347_v61 = vmul.f32 %v5342_v29, %v5307_v33 }
0x1391   :  { %7108 = vmatmul.mubr.f32.gmra.mrb[140].mxu1 %v5347_v61 }
0x1392   :  { %7141 = vmatprep.mubr.msk.f32.mxu1 %vm7795_vm0, %v7796_v4 }
0x143a   :  { %v5418_v51 = vpop.f32.mrb[132].mxu1 }
0x143b   :  { %v5442_v52 = vadd.f32 %v5418_v51, %v9490_v12  ;;  %v7097_v16 = vpop.f32.mrb[133].mxu1 }
0x143d   :  { %v5452_v5 = vadd.f32 %v6111_v20, %v5442_v52 }
0x143f   :  { %v5457_v17 = vsel %vm154_vm2, %v5452_v5, 0.0 }
0x1440   :  { %5458 = vadd.xlane.f32.xlu1 %v5457_v17  ;;  %v5423_v35 = vpop.f32.mrb[134].mxu1 }
0x1441   :  { %v5443_v10 = vadd.f32 %v5423_v35, %v9495_v6  ;;  %v7100_v11 = vpop.f32.mrb[135].mxu1 }
0x1443   :  { %v5453_v25 = vadd.f32 %v6111_v20, %v5443_v10 }
0x1445   :  { %v5460_v50 = vsel %vm154_vm2, %v5453_v25, 0.0 }
0x1446   :  { %5461 = vadd.xlane.f32.xlu0 %v5460_v50 }
0x145b   :  { %v5428_v8 = vpop.f32.mrb[136].mxu1 }
0x145c   :  { %v5444_v23 = vadd.f32 %v5428_v8, %v9500_v28  ;;  %v7103_v58 = vpop.f32.mrb[137].mxu1 }
0x145e   :  { %v5454_v1 = vadd.f32 %v6111_v20, %v5444_v23 }
0x145f   :  { %v5433_v26 = vpop.f32.mrb[138].mxu1 }
0x1460   :  { %v5445_v12 = vadd.f32 %v5433_v26, %v9505_v13  ;;  %v7106_v56 = vpop.f32.mrb[139].mxu1  ;;  %v5463_v38 = vsel %vm154_vm2, %v5454_v1, 0.0 }
0x1461   :  { %5464 = vadd.xlane.f32.xlu1 %v5463_v38 }
0x1462   :  { %v5455_v2 = vadd.f32 %v6111_v20, %v5445_v12 }
0x1464   :  { %v5438_v55 = vpop.f32.mrb[140].mxu1  ;;  %v5466_v6 = vsel %vm154_vm2, %v5455_v2, 0.0 }
0x1465   :  { %v5446_v48 = vadd.f32 %v5438_v55, %v9510_v42  ;;  %5467 = vadd.xlane.f32.xlu0 %v5466_v6  ;;  %v7109_v30 = vpop.f32.mrb[141].mxu1  ;;  %v5522_v42 = vld [vmem:[%s9700_s8] sm:$0xff]  ;;  %v5682_v6 = vld [vmem:[%s9700_s8 + $0x28] sm:$0xff] }
0x1466   :  { %v7326_v46 = vpack.c.bf16 %v5523_v44, %v5522_v42  ;;  %v5681_v55 = vld [vmem:[%s9700_s8 + $0x20] sm:$0xff]  ;;  %v5683_v30 = vld [vmem:[%s9700_s8 + $0x30] sm:$0xff] }
0x1467   :  { %v5456_v14 = vadd.f32 %v6111_v20, %v5446_v48  ;;  %v7332_v48 = vpack.c.bf16 %v5682_v6, %v5681_v55 }
0x1468   :  { %7327 = vmatpush3.bf16.msra.mxu0 %v7326_v46 }
0x1469   :  { %v5469_v28 = vsel %vm167_vm3, %v5456_v14, 0.0  ;;  %7328 = vmatprep.subr.bf16.mxu0 %v7794_v0  ;;  %7333 = vmatpush3.bf16.msra.mxu1 %v7332_v48 }
0x146a   :  { %5470 = vadd.xlane.f32.xlu1 %v5469_v28  ;;  %7334 = vmatprep.subr.bf16.mxu1 %v7794_v0 }
0x146c   :  { %7330 = vmatpush3.bf16.msra.mxu0 %v7329_v57 }
0x14cd   :  { %v5459_v15 = vpop.xlane.xlu1 %5458 }
0x14ce   :  { %v5472_v60 = vmul.f32 0.03125, %v5459_v15  ;;  %v6112_v15 = vld [vmem:[%s9700_s8 + $0x40] ss:$0 sm:$0xff] }
0x14d0   :  { %v5477_v18 = vsub.f32 %v5452_v5, %v5472_v60 }
0x14d2   :  { %v5482_v13 = vmul.f32 %v5477_v18, %v5477_v18 }
0x14d3   :  { %v5462_v3 = vpop.xlane.xlu0 %5461 }
0x14d4   :  { %v5473_v27 = vmul.f32 0.03125, %v5462_v3  ;;  %v5487_v63 = vsel %vm154_vm2, %v5482_v13, 0.0 }
0x14d5   :  { %5488 = vadd.xlane.f32.xlu0 %v5487_v63 }
0x14d6   :  { %v5478_v19 = vsub.f32 %v5453_v25, %v5473_v27 }
0x14d8   :  { %v5483_v62 = vmul.f32 %v5478_v19, %v5478_v19 }
0x14da   :  { %v5490_v24 = vsel %vm154_vm2, %v5483_v62, 0.0 }
0x14db   :  { %5491 = vadd.xlane.f32.xlu1 %v5490_v24 }
0x14ee   :  { %v5465_v34 = vpop.xlane.xlu1 %5464 }
0x14ef   :  { %v5474_v53 = vmul.f32 0.03125, %v5465_v34 }
0x14f1   :  { %v5479_v7 = vsub.f32 %v5454_v1, %v5474_v53 }
0x14f2   :  { %v5468_v47 = vpop.xlane.xlu0 %5467 }
0x14f3   :  { %v5475_v9 = vmul.f32 0.03125, %v5468_v47  ;;  %v5484_v39 = vmul.f32 %v5479_v7, %v5479_v7 }
0x14f5   :  { %v5480_v40 = vsub.f32 %v5455_v2, %v5475_v9  ;;  %v5493_v21 = vsel %vm154_vm2, %v5484_v39, 0.0 }
0x14f6   :  { %5494 = vadd.xlane.f32.xlu0 %v5493_v21 }
0x14f7   :  { %v5471_v41 = vpop.xlane.xlu1 %5470  ;;  %v5485_v37 = vmul.f32 %v5480_v40, %v5480_v40 }
0x14f8   :  { %v5476_v45 = vmul.f32 0.03125, %v5471_v41 }
0x14f9   :  { %v5496_v31 = vsel %vm154_vm2, %v5485_v37, 0.0 }
0x14fa   :  { %v5481_v54 = vsub.f32 %v5456_v14, %v5476_v45  ;;  %5497 = vadd.xlane.f32.xlu1 %v5496_v31  ;;  %v5684_v14 = vld [vmem:[%s9700_s8 + $0x38] sm:$0xff] }
0x14fb   :  { %v7335_v28 = vpack.c.bf16 %v5684_v14, %v5683_v30  ;;  %v6118_v14 = vld [vmem:[%s9700_s8 + $0x41] ss:$0 sm:$0xff] }
0x14fc   :  { %v5486_v59 = vmul.f32 %v5481_v54, %v5481_v54 }
0x14fd   :  { %7336 = vmatpush3.bf16.msra.mxu1 %v7335_v28 }
0x14fe   :  { %v5499_v36 = vsel %vm167_vm3, %v5486_v59, 0.0 }
0x14ff   :  { %5500 = vadd.xlane.f32.xlu0 %v5499_v36 }
0x1562   :  { %v5489_v49 = vpop.xlane.xlu0 %5488 }
0x1563   :  { %v5502_v43 = vmul.f32 0.03125, %v5489_v49 }
0x1565   :  { %v5507_v33 = vadd.f32 1e-06, %v5502_v43 }
0x1567   :  { %7764 = vrsqrt.f32 %v5507_v33 }
0x1568   :  { %v5492_v29 = vpop.xlane.xlu1 %5491 }
0x1569   :  { %v5503_v61 = vmul.f32 0.03125, %v5492_v29 }
0x156b   :  { %v5508_v51 = vadd.f32 1e-06, %v5503_v61 }
0x156d   :  { %7766 = vrsqrt.f32 %v5508_v51 }
0x1571   :  { %v7765_v20 = vpop.eup %7764 }
0x1572   :  { %v5517_v52 = vmul.f32 %v7765_v20, %v5477_v18 }
0x1574   :  { %7119 = vmatmul.mubr.msk.f32.vlgmr.msra.gmra.mrb[140].mxu0 %vm154_vm2, %v5517_v52 }
0x1575   :  { %7121 = vmatprep.mubr.msk.f32.mxu0 %vm7795_vm0, %v7796_v4 }
0x1577   :  { %v7767_v16 = vpop.eup %7766 }
0x1578   :  { %v5518_v5 = vmul.f32 %v7767_v16, %v5478_v19 }
0x157a   :  { %7122 = vmatmul.mubr.msk.f32.gmra.mrb[142].mxu0 %vm154_vm2, %v5518_v5 }
0x157b   :  { %7124 = vmatprep.mubr.msk.f32.mxu0 %vm7795_vm0, %v7796_v4 }
0x1583   :  { %v5495_v17 = vpop.xlane.xlu0 %5494 }
0x1584   :  { %v5504_v35 = vmul.f32 0.03125, %v5495_v17 }
0x1586   :  { %v5509_v10 = vadd.f32 1e-06, %v5504_v35 }
0x1587   :  { %v5498_v11 = vpop.xlane.xlu1 %5497 }
0x1588   :  { %7768 = vrsqrt.f32 %v5509_v10  ;;  %v5505_v25 = vmul.f32 0.03125, %v5498_v11 }
0x158a   :  { %v5510_v50 = vadd.f32 1e-06, %v5505_v25 }
0x158c   :  { %7770 = vrsqrt.f32 %v5510_v50  ;;  %v5501_v8 = vpop.xlane.xlu0 %5500 }
0x158d   :  { %v5506_v23 = vmul.f32 0.03125, %v5501_v8 }
0x158f   :  { %v5511_v58 = vadd.f32 1e-06, %v5506_v23 }
0x1591   :  { %7772 = vrsqrt.f32 %v5511_v58 }
0x1592   :  { %v7769_v1 = vpop.eup %7768 }
0x1593   :  { %v5519_v26 = vmul.f32 %v7769_v1, %v5479_v7 }
0x1595   :  { %7125 = vmatmul.mubr.msk.f32.gmra.mrb[144].mxu0 %vm154_vm2, %v5519_v26 }
0x1596   :  { %v7771_v12 = vpop.eup %7770  ;;  %7127 = vmatprep.mubr.msk.f32.mxu0 %vm7795_vm0, %v7796_v4 }
0x1597   :  { %v5520_v56 = vmul.f32 %v7771_v12, %v5480_v40 }
0x1599   :  { %7128 = vmatmul.mubr.msk.f32.gmra.mrb[146].mxu0 %vm154_vm2, %v5520_v56 }
0x159a   :  { %7130 = vmatprep.mubr.msk.f32.mxu0 %vm7795_vm0, %v7796_v4 }
0x159b   :  { %v7773_v38 = vpop.eup %7772 }
0x159c   :  { %v5521_v2 = vmul.f32 %v7773_v38, %v5481_v54 }
0x159e   :  { %7131 = vmatmul.mubr.msk.f32.gmra.mrb[148].mxu0 %vm154_vm2, %v5521_v2 }
0x1647   :  { %v5612_v60 = vpop.f32.mrb[140].mxu0 }
0x1648   :  { %v5613_v18 = vadd.f32 %v6112_v15, %v5612_v60  ;;  %v7120_v13 = vpop.f32.mrb[141].mxu0 }
0x164a   :  { %v5641_v3 = vmul.f32 0.044715, %v5613_v18  ;;  %v5636_v57 = vmul.f32 0.5, %v5613_v18 }
0x164c   :  { %v5646_v27 = vmul.f32 %v5641_v3, %v5613_v18 }
0x164d   :  { %v5617_v0 = vpop.f32.mrb[142].mxu0 }
0x164e   :  { %v5651_v63 = vmul.f32 %v5646_v27, %v5613_v18  ;;  %v5618_v19 = vadd.f32 %v6112_v15, %v5617_v0  ;;  %v7123_v62 = vpop.f32.mrb[143].mxu0 }
0x1650   :  { %v5656_v24 = vadd.f32 %v5651_v63, %v5613_v18  ;;  %v5642_v42 = vmul.f32 0.044715, %v5618_v19  ;;  %v5637_v39 = vmul.f32 0.5, %v5618_v19 }
0x1652   :  { %v5661_v44 = vmul.f32 0.7978846, %v5656_v24  ;;  %v5647_v46 = vmul.f32 %v5642_v42, %v5618_v19 }
0x1654   :  { %7774 = vtanh.f32 %v5661_v44  ;;  %v5652_v34 = vmul.f32 %v5647_v46, %v5618_v19 }
0x1656   :  { %v5657_v53 = vadd.f32 %v5652_v34, %v5618_v19 }
0x1658   :  { %v5662_v32 = vmul.f32 0.7978846, %v5657_v53 }
0x165a   :  { %7776 = vtanh.f32 %v5662_v32 }
0x165e   :  { %v7775_v22 = vpop.eup %7774 }
0x165f   :  { %v5671_v7 = vadd.f32 1.0, %v7775_v22 }
0x1661   :  { %v5676_v47 = vmul.f32 %v5671_v7, %v5636_v57 }
0x1663   :  { %7142 = vmatmul.mubr.msk.f32.vlgmr.msra.gmra.mrb[142].mxu1 %vm154_vm2, %v5676_v47 }
0x1664   :  { %v7777_v9 = vpop.eup %7776  ;;  %7144 = vmatprep.mubr.msk.f32.mxu1 %vm7795_vm0, %v7796_v4 }
0x1665   :  { %v5672_v40 = vadd.f32 1.0, %v7777_v9 }
0x1667   :  { %v5677_v21 = vmul.f32 %v5672_v40, %v5637_v39 }
0x1668   :  { %v5622_v41 = vpop.f32.mrb[144].mxu0 }
0x1669   :  { %v5623_v37 = vadd.f32 %v6112_v15, %v5622_v41  ;;  %v7126_v45 = vpop.f32.mrb[145].mxu0  ;;  %7145 = vmatmul.mubr.msk.f32.gmra.mrb[144].mxu1 %vm154_vm2, %v5677_v21 }
0x166a   :  { %7147 = vmatprep.mubr.msk.f32.mxu1 %vm7795_vm0, %v7796_v4 }
0x166b   :  { %v5643_v31 = vmul.f32 0.044715, %v5623_v37  ;;  %v5638_v58 = vmul.f32 0.5, %v5623_v37 }
0x166c   :  { %v5627_v54 = vpop.f32.mrb[146].mxu0 }
0x166d   :  { %v5648_v59 = vmul.f32 %v5643_v31, %v5623_v37  ;;  %v5628_v36 = vadd.f32 %v6112_v15, %v5627_v54  ;;  %v7129_v49 = vpop.f32.mrb[147].mxu0 }
0x166f   :  { %v5653_v43 = vmul.f32 %v5648_v59, %v5623_v37  ;;  %v5644_v33 = vmul.f32 0.044715, %v5628_v36  ;;  %v5639_v56 = vmul.f32 0.5, %v5628_v36 }
0x1671   :  { %v5658_v29 = vadd.f32 %v5653_v43, %v5623_v37  ;;  %v5649_v61 = vmul.f32 %v5644_v33, %v5628_v36  ;;  %v5632_v51 = vpop.f32.mrb[148].mxu0 }
0x1672   :  { %v5633_v20 = vadd.f32 %v6112_v15, %v5632_v51  ;;  %v7132_v52 = vpop.f32.mrb[149].mxu0 }
0x1673   :  { %v5654_v16 = vmul.f32 %v5649_v61, %v5628_v36  ;;  %v5663_v5 = vmul.f32 0.7978846, %v5658_v29 }
0x1674   :  { %v5645_v17 = vmul.f32 0.044715, %v5633_v20  ;;  %v5640_v6 = vmul.f32 0.5, %v5633_v20 }
0x1675   :  { %v5659_v35 = vadd.f32 %v5654_v16, %v5628_v36  ;;  %7778 = vtanh.f32 %v5663_v5 }
0x1676   :  { %v5650_v10 = vmul.f32 %v5645_v17, %v5633_v20 }
0x1677   :  { %v5664_v11 = vmul.f32 0.7978846, %v5659_v35 }
0x1678   :  { %v5655_v25 = vmul.f32 %v5650_v10, %v5633_v20 }
0x1679   :  { %7780 = vtanh.f32 %v5664_v11 }
0x167a   :  { %v5660_v50 = vadd.f32 %v5655_v25, %v5633_v20 }
0x167c   :  { %v5665_v8 = vmul.f32 0.7978846, %v5660_v50 }
0x167e   :  { %7782 = vtanh.f32 %v5665_v8 }
0x167f   :  { %v7779_v23 = vpop.eup %7778 }
0x1680   :  { %v5673_v1 = vadd.f32 1.0, %v7779_v23 }
0x1682   :  { %v5678_v26 = vmul.f32 %v5673_v1, %v5638_v58  ;;  %v6124_v58 = vld [vmem:[%s9700_s8 + $0x42] ss:$0 sm:$0xff] }
0x1683   :  { %v7781_v12 = vpop.eup %7780 }
0x1684   :  { %7148 = vmatmul.mubr.msk.f32.gmra.mrb[146].mxu1 %vm154_vm2, %v5678_v26  ;;  %v5674_v38 = vadd.f32 1.0, %v7781_v12  ;;  %v6125_v26 = vld [vmem:[%s9700_s8 + $0x43] ss:$0 sm:$0xff] }
0x1685   :  { %7150 = vmatprep.mubr.msk.f32.mxu1 %vm7795_vm0, %v7796_v4 }
0x1686   :  { %v5679_v2 = vmul.f32 %v5674_v38, %v5639_v56 }
0x1688   :  { %v7783_v55 = vpop.eup %7782  ;;  %7151 = vmatmul.mubr.msk.f32.gmra.mrb[148].mxu1 %vm154_vm2, %v5679_v2 }
0x1689   :  { %7153 = vmatprep.mubr.msk.f32.mxu1 %vm7795_vm0, %v7796_v4  ;;  %v5675_v48 = vadd.f32 1.0, %v7783_v55 }
0x168b   :  { %v5680_v30 = vmul.f32 %v5675_v48, %v5640_v6 }
0x168d   :  { %7154 = vmatmul.mubr.msk.f32.gmra.mrb[150].mxu1 %vm154_vm2, %v5680_v30 }
0x1736   :  { %v5771_v28 = vpop.f32.mrb[142].mxu1 }
0x1737   :  { %v5772_v15 = vadd.f32 %v6118_v14, %v5771_v28  ;;  %v7143_v60 = vpop.f32.mrb[143].mxu1 }
0x1739   :  { %v5797_v18 = vsel %vm154_vm2, %v5772_v15, 0.0 }
0x173a   :  { %5798 = vadd.xlane.f32.xlu1 %v5797_v18 }
0x173c   :  { %v5776_v13 = vpop.f32.mrb[144].mxu1 }
0x173d   :  { %v5777_v3 = vadd.f32 %v6118_v14, %v5776_v13  ;;  %v7146_v27 = vpop.f32.mrb[145].mxu1 }
0x173f   :  { %v5800_v4 = vsel %vm154_vm2, %v5777_v3, 0.0 }
0x1740   :  { %5801 = vadd.xlane.f32.xlu0 %v5800_v4 }
0x1757   :  { %v5781_v0 = vpop.f32.mrb[146].mxu1 }
0x1758   :  { %v5782_v63 = vadd.f32 %v6118_v14, %v5781_v0  ;;  %v7149_v19 = vpop.f32.mrb[147].mxu1 }
0x175a   :  { %v5803_v62 = vsel %vm154_vm2, %v5782_v63, 0.0 }
0x175b   :  { %5804 = vadd.xlane.f32.xlu1 %v5803_v62  ;;  %v5786_v24 = vpop.f32.mrb[148].mxu1 }
0x175c   :  { %v5787_v42 = vadd.f32 %v6118_v14, %v5786_v24  ;;  %v7152_v44 = vpop.f32.mrb[149].mxu1 }
0x175e   :  { %v5806_v46 = vsel %vm154_vm2, %v5787_v42, 0.0 }
0x175f   :  { %5807 = vadd.xlane.f32.xlu0 %v5806_v46 }
0x1760   :  { %v5791_v34 = vpop.f32.mrb[150].mxu1 }
0x1761   :  { %v5792_v53 = vadd.f32 %v6118_v14, %v5791_v34  ;;  %v7155_v32 = vpop.f32.mrb[151].mxu1 }
0x1763   :  { %v5809_v22 = vsel %vm167_vm3, %v5792_v53, 0.0 }
0x1764   :  { %5810 = vadd.xlane.f32.xlu1 %v5809_v22 }
0x17c7   :  { %v5799_v57 = vpop.xlane.xlu1 %5798 }
0x17c8   :  { %v5812_v7 = vmul.f32 0.03125, %v5799_v57 }
0x17ca   :  { %v5817_v47 = vsub.f32 %v5772_v15, %v5812_v7 }
0x17cc   :  { %v5822_v9 = vmul.f32 %v5817_v47, %v5817_v47 }
0x17cd   :  { %v5802_v39 = vpop.xlane.xlu0 %5801 }
0x17ce   :  { %v5813_v40 = vmul.f32 0.03125, %v5802_v39  ;;  %v5827_v21 = vsel %vm154_vm2, %v5822_v9, 0.0 }
0x17cf   :  { %5828 = vadd.xlane.f32.xlu0 %v5827_v21 }
0x17d0   :  { %v5818_v41 = vsub.f32 %v5777_v3, %v5813_v40 }
0x17d2   :  { %v5823_v37 = vmul.f32 %v5818_v41, %v5818_v41 }
0x17d4   :  { %v5830_v45 = vsel %vm154_vm2, %v5823_v37, 0.0 }
0x17d5   :  { %5831 = vadd.xlane.f32.xlu1 %v5830_v45 }
0x17e8   :  { %v5805_v31 = vpop.xlane.xlu1 %5804 }
0x17e9   :  { %v5814_v54 = vmul.f32 0.03125, %v5805_v31 }
0x17eb   :  { %v5819_v59 = vsub.f32 %v5782_v63, %v5814_v54 }
0x17ec   :  { %v5808_v36 = vpop.xlane.xlu0 %5807 }
0x17ed   :  { %v5815_v49 = vmul.f32 0.03125, %v5808_v36  ;;  %v5824_v43 = vmul.f32 %v5819_v59, %v5819_v59 }
0x17ef   :  { %v5820_v33 = vsub.f32 %v5787_v42, %v5815_v49  ;;  %v5833_v29 = vsel %vm154_vm2, %v5824_v43, 0.0 }
0x17f0   :  { %5834 = vadd.xlane.f32.xlu0 %v5833_v29 }
0x17f1   :  { %v5811_v61 = vpop.xlane.xlu1 %5810  ;;  %v5825_v51 = vmul.f32 %v5820_v33, %v5820_v33 }
0x17f2   :  { %v5816_v20 = vmul.f32 0.03125, %v5811_v61 }
0x17f3   :  { %v5836_v52 = vsel %vm154_vm2, %v5825_v51, 0.0 }
0x17f4   :  { %v5821_v16 = vsub.f32 %v5792_v53, %v5816_v20  ;;  %5837 = vadd.xlane.f32.xlu1 %v5836_v52 }
0x17f6   :  { %v5826_v5 = vmul.f32 %v5821_v16, %v5821_v16 }
0x17f8   :  { %v5839_v17 = vsel %vm167_vm3, %v5826_v5, 0.0 }
0x17f9   :  { %5840 = vadd.xlane.f32.xlu0 %v5839_v17 }
0x185c   :  { %v5829_v35 = vpop.xlane.xlu0 %5828 }
0x185d   :  { %v5842_v10 = vmul.f32 0.03125, %v5829_v35 }
0x185f   :  { %v5847_v11 = vadd.f32 1e-05, %v5842_v10 }
0x1861   :  { %7784 = vrsqrt.f32 %v5847_v11 }
0x1862   :  { %v5832_v25 = vpop.xlane.xlu1 %5831 }
0x1863   :  { %v5843_v50 = vmul.f32 0.03125, %v5832_v25 }
0x1865   :  { %v5848_v8 = vadd.f32 1e-05, %v5843_v50 }
0x1867   :  { %7786 = vrsqrt.f32 %v5848_v8 }
0x186b   :  { %v7785_v23 = vpop.eup %7784 }
0x186c   :  { %v5857_v1 = vmul.f32 %v7785_v23, %v5817_v47 }
0x186e   :  { %v5866_v12 = vmul.f32 %v6124_v58, %v5857_v1 }
0x1870   :  { %v5875_v56 = vadd.f32 %v6125_v26, %v5866_v12 }
0x1871   :  { %v7787_v38 = vpop.eup %7786 }
0x1872   :  { %5880 = vst.msk [vmem:[%s9701_s9] sm:$0xff] %vm154_vm2, %v5875_v56  ;;  %v5858_v2 = vmul.f32 %v7787_v38, %v5818_v41 }
0x1874   :  { %v5867_v55 = vmul.f32 %v6124_v58, %v5858_v2 }
0x1876   :  { %v5876_v6 = vadd.f32 %v6125_v26, %v5867_v55 }
0x1878   :  { %5881 = vst.msk [vmem:[%s9701_s9 + $0x8] sm:$0xff] %vm154_vm2, %v5876_v6 }
0x187d   :  { %v5835_v48 = vpop.xlane.xlu0 %5834 }
0x187e   :  { %v5844_v30 = vmul.f32 0.03125, %v5835_v48 }
0x1880   :  { %v5849_v14 = vadd.f32 1e-05, %v5844_v30 }
0x1881   :  { %v5838_v28 = vpop.xlane.xlu1 %5837 }
0x1882   :  { %7788 = vrsqrt.f32 %v5849_v14  ;;  %v5845_v15 = vmul.f32 0.03125, %v5838_v28 }
0x1884   :  { %v5850_v60 = vadd.f32 1e-05, %v5845_v15 }
0x1886   :  { %7790 = vrsqrt.f32 %v5850_v60  ;;  %v5841_v18 = vpop.xlane.xlu0 %5840 }
0x1887   :  { %v5846_v13 = vmul.f32 0.03125, %v5841_v18 }
0x1889   :  { %v5851_v3 = vadd.f32 1e-05, %v5846_v13 }
0x188b   :  { %7792 = vrsqrt.f32 %v5851_v3 }
0x188c   :  { %v7789_v27 = vpop.eup %7788 }
0x188d   :  { %v5859_v4 = vmul.f32 %v7789_v27, %v5819_v59 }
0x188f   :  { %v5868_v0 = vmul.f32 %v6124_v58, %v5859_v4 }
0x1890   :  { %v7791_v63 = vpop.eup %7790 }
0x1891   :  { %v5877_v19 = vadd.f32 %v6125_v26, %v5868_v0  ;;  %v5860_v62 = vmul.f32 %v7791_v63, %v5820_v33 }
0x1893   :  { %5882 = vst.msk [vmem:[%s9701_s9 + $0x10] sm:$0xff] %vm154_vm2, %v5877_v19  ;;  %v5869_v24 = vmul.f32 %v6124_v58, %v5860_v62 }
0x1895   :  { %v7793_v42 = vpop.eup %7792  ;;  %v5878_v44 = vadd.f32 %v6125_v26, %v5869_v24 }
0x1896   :  { %v5861_v46 = vmul.f32 %v7793_v42, %v5821_v16 }
0x1897   :  { %5883 = vst.msk [vmem:[%s9701_s9 + $0x18] sm:$0xff] %vm154_vm2, %v5878_v44 }
0x1898   :  { %v5870_v34 = vmul.f32 %v6124_v58, %v5861_v46 }
0x189a   :  { %v5879_v53 = vadd.f32 %v6125_v26, %v5870_v34 }
0x189c   :  { %5884 = vst.msk [vmem:[%s9701_s9 + $0x20] sm:$0x3] %vm167_vm3, %v5879_v53 }

</bundles_post_ra>
